<compile_context>
chip_gen: v6e
topology: v6e:2x2x1
jax: 0.10.0
libtpu: 0.0.40
codegen_flags: <defaults>
</compile_context>

<pallas_src>
import functools

import jax
import jax.numpy as jnp
from jax.experimental import pallas as pl
from jax.experimental.pallas import tpu as pltpu


def _rk4_odeint_kernel(x_ref, w1t_ref, b1_ref, w2t_ref, b2_ref, o_ref,
                       *, dts, num_batch):
    """Fused fixed-step RK4 (3/8 rule, matching torchdiffeq 'rk4').

    x_ref  : (N*C, HW_blk)  state, channels on sublanes, pixels on lanes
    w1t_ref: (HID, C)       first 1x1-conv weight, pre-transposed (= W1^T)
    b1_ref : (HID, 1)
    w2t_ref: (C, HID)       second 1x1-conv weight, pre-transposed (= W2^T)
    b2_ref : (C, 1)
    o_ref  : (N*C, HW_blk)  state at the final integration time
    """
    nc, hw = x_ref.shape
    c = nc // num_batch
    hid = w1t_ref.shape[0]
    lanes = num_batch * hw                    # batch folded into the lane axis

    w1t = w1t_ref[...].astype(jnp.float32)    # (HID, C)
    w2t = w2t_ref[...].astype(jnp.float32)    # (C, HID)

    def mdot(a, b):
        return jnp.dot(a, b, preferred_element_type=jnp.float32)

    # Fold batch into lanes: y is (C, N*HW_blk), lane-dense (multiple of 128).
    y = jnp.concatenate(
        [x_ref[n * c:(n + 1) * c, :] for n in range(num_batch)],
        axis=-1).astype(jnp.float32)

    # Hoisted constants (computed once, reused by every unrolled stage).
    m = mdot(w1t, w2t)                                               # (HID, HID)
    c1b = jnp.broadcast_to(mdot(w1t, b2_ref[...].astype(jnp.float32)),
                           (hid, lanes))                             # W1^T b2
    b1b = jnp.broadcast_to(b1_ref[...], (hid, lanes)).astype(jnp.float32)
    b2b = jnp.broadcast_to(b2_ref[...], (c, lanes)).astype(jnp.float32)

    # Carried pre-activation: s = W1^T y + b1.  Only ONE K=C matmul ever sits
    # on the chain; per stage the chain is (HID,HID)-matmul + EUP tanh.
    s = mdot(w1t, y) + b1b                                           # (HID, lanes)

    # dts are compile-time constants -> fully unrolled straight-line body.
    for dt in dts:
        h1 = jnp.tanh(s)                      # jnp.tanh lowers to the EUP slot
        h2 = jnp.tanh(s + (dt / 3.0) * (mdot(m, h1) + c1b))
        h3 = jnp.tanh(s + dt * (mdot(m, h2 - (1.0 / 3.0) * h1)
                                + (2.0 / 3.0) * c1b))
        h4 = jnp.tanh(s + dt * (mdot(m, h1 - h2 + h3) + c1b))
        g = h1 + 3.0 * (h2 + h3) + h4
        # y update is OFF the serial chain: the next step only needs s.
        y = y + (dt / 8.0) * mdot(w2t, g) + dt * b2b
        s = s + (dt / 8.0) * mdot(m, g) + dt * c1b

    # Un-fold batch from lanes back to sublanes and store one full (8,128)-
    # aligned tile -> unmasked vst.
    out = jnp.concatenate(
        [y[:, n * hw:(n + 1) * hw] for n in range(num_batch)], axis=0)
    o_ref[...] = out.astype(o_ref.dtype)


def _num_lane_splits():
    """2 on multi-TensorCore chips (v7x) so the 'parallel' grid axis uses both
    cores; 1 on single-TC chips (v5e/v6e) where extra grid steps are overhead."""
    try:
        kind = jax.devices()[0].device_kind.lower()
    except Exception:
        return 1
    return 2 if ("v7" in kind or "7x" in kind) else 1


def neural_ode_block(x_nchw, w1t, b1, w2t, b2, integration_time):
    """Forward of NeuralODEBlock: odeint(odefunc, x, t, method='rk4')[-1]."""
    n, c, h, w = x_nchw.shape
    hid = w1t.shape[0]
    hw = h * w

    # Free reshape only (NCHW is already contiguous as (N*C, H*W)).
    x2 = x_nchw.reshape(n * c, hw)

    # NOTE: dts are baked in as compile-time constants (enables full unroll).
    # TODO(synk): if this wrapper is jit'ed with a traced integration_time,
    # the time grid must be passed statically (host values) instead.
    ts = [float(t) for t in integration_time]
    dts = tuple(ts[i + 1] - ts[i] for i in range(len(ts) - 1))

    splits = _num_lane_splits()
    if hw % (128 * splits) != 0:
        splits = 1
    lane_blk = hw // splits

    kernel = functools.partial(_rk4_odeint_kernel, dts=dts, num_batch=n)

    n_steps = len(dts)
    lanes = n * hw
    cost = pl.CostEstimate(
        flops=(2 * hid * c * lanes                        # initial W1^T y
               + 2 * hid * c * hid + 2 * hid * c          # M, W1^T b2
               + n_steps * (4 * 2 * hid * hid * lanes     # chain + s-carry matmuls
                            + 2 * c * hid * lanes)),      # y update
        transcendentals=4 * n_steps * hid * lanes,
        bytes_accessed=2 * x2.size * x2.dtype.itemsize
        + 4 * (w1t.size + b1.size + w2t.size + b2.size),
    )

    out2 = pl.pallas_call(
        kernel,
        out_shape=jax.ShapeDtypeStruct((n * c, hw), x2.dtype),
        grid_spec=pltpu.PrefetchScalarGridSpec(
            num_scalar_prefetch=0,
            # Whole problem (~20 KB state + ~5 KB weights) fits VMEM on all of
            # v5e/v6e/v7x; the grid only splits the pixel lanes across the two
            # TensorCores on v7x (splits == 1 elsewhere).
            grid=(splits,),
            in_specs=[
                pl.BlockSpec((n * c, lane_blk), lambda i: (0, i)),   # state
                pl.BlockSpec((hid, c), lambda i: (0, 0)),            # W1^T
                pl.BlockSpec((hid, 1), lambda i: (0, 0)),            # b1
                pl.BlockSpec((c, hid), lambda i: (0, 0)),            # W2^T
                pl.BlockSpec((c, 1), lambda i: (0, 0)),              # b2
            ],
            out_specs=pl.BlockSpec((n * c, lane_blk), lambda i: (0, i)),
        ),
        compiler_params=pltpu.CompilerParams(
            dimension_semantics=("parallel",)),
        cost_estimate=cost,
    )(x2, w1t, b1, w2t, b2)

    # Free reshape back to NCHW.
    return out2.reshape(n, c, h, w)


def _reference(x_nchw, w1t, b1, w2t, b2, integration_time):
    """Pure-JAX reference: un-restructured torchdiffeq rk4_alt_step_func."""
    n, c, h, w = x_nchw.shape
    y = x_nchw.reshape(n, c, h * w).astype(jnp.float32)

    def f(z):                               # z: (N, C, HW)
        hidden = jnp.tanh(jnp.einsum('hc,ncp->nhp', w1t, z) + b1[None])
        return jnp.einsum('ch,nhp->ncp', w2t, hidden) + b2[None]

    ts = [float(t) for t in integration_time]
    for i in range(len(ts) - 1):
        dt = ts[i + 1] - ts[i]
        k1 = f(y)
        k2 = f(y + (dt / 3.0) * k1)
        k3 = f(y + dt * (k2 - (1.0 / 3.0) * k1))
        k4 = f(y + dt * (k1 - k2 + k3))
        y = y + (dt * 0.125) * (k1 + 3.0 * (k2 + k3) + k4)
    return y.reshape(n, c, h, w).astype(x_nchw.dtype)


if __name__ == "__main__":
    # Small shapes consistent with a conv-style Neural ODE block.
    N, C, H, W = 2, 4, 16, 16
    HID = 32
    NUM_STEPS = 4

    key = jax.random.PRNGKey(0)
    kx, k1, k2, k3, k4 = jax.random.split(key, 5)

    x = jax.random.normal(kx, (N, C, H, W), dtype=jnp.float32)

    # odefunc parameters (1x1 convs: C -> HID -> C), stored pre-transposed
    # for the channels-on-sublane kernel layout.
    w1t = jax.random.normal(k1, (HID, C), dtype=jnp.float32) * 0.3   # = W1^T
    b1 = jax.random.normal(k2, (HID, 1), dtype=jnp.float32) * 0.05
    w2t = jax.random.normal(k3, (C, HID), dtype=jnp.float32) * 0.3   # = W2^T
    b2 = jax.random.normal(k4, (C, 1), dtype=jnp.float32) * 0.05

    # integration_time = torch.linspace(0, 1, NUM_STEPS + 1)
    integration_time = jnp.linspace(0.0, 1.0, NUM_STEPS + 1)

    out = neural_ode_block(x, w1t, b1, w2t, b2, integration_time)
    out = jax.block_until_ready(out)

    ref = _reference(x, w1t, b1, w2t, b2, integration_time)
    assert out.shape == (N, C, H, W)
    assert jnp.allclose(out, ref, atol=1e-4, rtol=1e-4), "mismatch vs reference"

    print("KERNEL_OK")
</pallas_src>

<mosaic_0001>
module attributes {stable_mosaic.version = 11 : i64} {
  func.func @_rk4_odeint_kernel(%arg0: i32, %arg1: memref<8x256xf32, #tpu.memory_space<vmem>>, %arg2: memref<32x4xf32, #tpu.memory_space<vmem>>, %arg3: memref<32x1xf32, #tpu.memory_space<vmem>>, %arg4: memref<4x32xf32, #tpu.memory_space<vmem>>, %arg5: memref<4x1xf32, #tpu.memory_space<vmem>>, %arg6: memref<8x256xf32, #tpu.memory_space<vmem>>) attributes {dimension_semantics = [#tpu.dimension_semantics<parallel>], iteration_bounds = array<i64: 1>, scalar_prefetch = 0 : i64, scratch_operands = 0 : i64, tpu.core_type = #tpu.core_type<tc>, window_params = [{transform_indices = @transform_0, window_bounds = array<i64: 8, 256>}, {pipeline_mode = #tpu.pipeline_mode<synchronous>, transform_indices = @transform_1, window_bounds = array<i64: 32, 4>}, {pipeline_mode = #tpu.pipeline_mode<synchronous>, transform_indices = @transform_2, window_bounds = array<i64: 32, 1>}, {pipeline_mode = #tpu.pipeline_mode<synchronous>, transform_indices = @transform_3, window_bounds = array<i64: 4, 32>}, {pipeline_mode = #tpu.pipeline_mode<synchronous>, transform_indices = @transform_4, window_bounds = array<i64: 4, 1>}, {transform_indices = @transform_5, window_bounds = array<i64: 8, 256>}]} {
    %c0 = arith.constant 0 : index
    %c0_0 = arith.constant 0 : index
    %0 = vector.load %arg2[%c0, %c0_0] : memref<32x4xf32, #tpu.memory_space<vmem>>, vector<32x4xf32>
    %c0_1 = arith.constant 0 : index
    %c0_2 = arith.constant 0 : index
    %1 = vector.load %arg4[%c0_1, %c0_2] : memref<4x32xf32, #tpu.memory_space<vmem>>, vector<4x32xf32>
    %c0_3 = arith.constant 0 : index
    %c0_4 = arith.constant 0 : index
    %2 = vector.load %arg1[%c0_3, %c0_4] : memref<8x256xf32, #tpu.memory_space<vmem>>, vector<4x256xf32>
    %c4 = arith.constant 4 : index
    %c0_5 = arith.constant 0 : index
    %3 = vector.load %arg1[%c4, %c0_5] : memref<8x256xf32, #tpu.memory_space<vmem>>, vector<4x256xf32>
    %4 = tpu.concatenate %2, %3 in 1 : vector<4x256xf32>, vector<4x256xf32> -> vector<4x512xf32>
    %cst = arith.constant dense<0.000000e+00> : vector<32x32xf32>
    %5 = tpu.matmul %0, %1, %cst {dimension_numbers = #tpu.dot_dimension_numbers<[1], [0], [0], [1], [0, 0, 1, 1], [], []>} : vector<32x4xf32>, vector<4x32xf32>, vector<32x32xf32> -> vector<32x32xf32>
    %c0_6 = arith.constant 0 : index
    %c0_7 = arith.constant 0 : index
    %6 = vector.load %arg5[%c0_6, %c0_7] : memref<4x1xf32, #tpu.memory_space<vmem>>, vector<4x1xf32>
    %cst_8 = arith.constant dense<0.000000e+00> : vector<32x1xf32>
    %7 = tpu.matmul %0, %6, %cst_8 {dimension_numbers = #tpu.dot_dimension_numbers<[1], [0], [0], [1], [0, 0, 1, 1], [], []>} : vector<32x4xf32>, vector<4x1xf32>, vector<32x1xf32> -> vector<32x1xf32>
    %8 = vector.shape_cast %7 : vector<32x1xf32> to vector<32x1xf32>
    %9 = vector.broadcast %8 : vector<32x1xf32> to vector<32x512xf32>
    %c0_9 = arith.constant 0 : index
    %c0_10 = arith.constant 0 : index
    %10 = vector.load %arg3[%c0_9, %c0_10] : memref<32x1xf32, #tpu.memory_space<vmem>>, vector<32x1xf32>
    %11 = vector.shape_cast %10 : vector<32x1xf32> to vector<32x1xf32>
    %12 = vector.broadcast %11 : vector<32x1xf32> to vector<32x512xf32>
    %c0_11 = arith.constant 0 : index
    %c0_12 = arith.constant 0 : index
    %13 = vector.load %arg5[%c0_11, %c0_12] : memref<4x1xf32, #tpu.memory_space<vmem>>, vector<4x1xf32>
    %14 = vector.shape_cast %13 : vector<4x1xf32> to vector<4x1xf32>
    %15 = vector.broadcast %14 : vector<4x1xf32> to vector<4x512xf32>
    %cst_13 = arith.constant dense<0.000000e+00> : vector<32x512xf32>
    %16 = tpu.matmul %0, %4, %cst_13 {dimension_numbers = #tpu.dot_dimension_numbers<[1], [0], [0], [1], [0, 0, 1, 1], [], []>} : vector<32x4xf32>, vector<4x512xf32>, vector<32x512xf32> -> vector<32x512xf32>
    %17 = arith.addf %16, %12 : vector<32x512xf32>
    %18 = math.tanh %17 : vector<32x512xf32>
    %cst_14 = arith.constant dense<0.000000e+00> : vector<32x512xf32>
    %19 = tpu.matmul %5, %18, %cst_14 {dimension_numbers = #tpu.dot_dimension_numbers<[1], [0], [0], [1], [0, 0, 1, 1], [], []>} : vector<32x32xf32>, vector<32x512xf32>, vector<32x512xf32> -> vector<32x512xf32>
    %20 = arith.addf %19, %9 : vector<32x512xf32>
    %cst_15 = arith.constant 0.0833333358 : f32
    %21 = vector.broadcast %cst_15 : f32 to vector<32x512xf32>
    %22 = arith.mulf %21, %20 : vector<32x512xf32>
    %23 = arith.addf %17, %22 : vector<32x512xf32>
    %24 = math.tanh %23 : vector<32x512xf32>
    %cst_16 = arith.constant 0.333333343 : f32
    %25 = vector.broadcast %cst_16 : f32 to vector<32x512xf32>
    %26 = arith.mulf %25, %18 : vector<32x512xf32>
    %27 = arith.subf %24, %26 : vector<32x512xf32>
    %cst_17 = arith.constant dense<0.000000e+00> : vector<32x512xf32>
    %28 = tpu.matmul %5, %27, %cst_17 {dimension_numbers = #tpu.dot_dimension_numbers<[1], [0], [0], [1], [0, 0, 1, 1], [], []>} : vector<32x32xf32>, vector<32x512xf32>, vector<32x512xf32> -> vector<32x512xf32>
    %cst_18 = arith.constant 0.666666686 : f32
    %29 = vector.broadcast %cst_18 : f32 to vector<32x512xf32>
    %30 = arith.mulf %29, %9 : vector<32x512xf32>
    %31 = arith.addf %28, %30 : vector<32x512xf32>
    %cst_19 = arith.constant 2.500000e-01 : f32
    %32 = vector.broadcast %cst_19 : f32 to vector<32x512xf32>
    %33 = arith.mulf %32, %31 : vector<32x512xf32>
    %34 = arith.addf %17, %33 : vector<32x512xf32>
    %35 = math.tanh %34 : vector<32x512xf32>
    %36 = arith.subf %18, %24 : vector<32x512xf32>
    %37 = arith.addf %36, %35 : vector<32x512xf32>
    %cst_20 = arith.constant dense<0.000000e+00> : vector<32x512xf32>
    %38 = tpu.matmul %5, %37, %cst_20 {dimension_numbers = #tpu.dot_dimension_numbers<[1], [0], [0], [1], [0, 0, 1, 1], [], []>} : vector<32x32xf32>, vector<32x512xf32>, vector<32x512xf32> -> vector<32x512xf32>
    %39 = arith.addf %38, %9 : vector<32x512xf32>
    %cst_21 = arith.constant 2.500000e-01 : f32
    %40 = vector.broadcast %cst_21 : f32 to vector<32x512xf32>
    %41 = arith.mulf %40, %39 : vector<32x512xf32>
    %42 = arith.addf %17, %41 : vector<32x512xf32>
    %43 = math.tanh %42 : vector<32x512xf32>
    %44 = arith.addf %24, %35 : vector<32x512xf32>
    %cst_22 = arith.constant 3.000000e+00 : f32
    %45 = vector.broadcast %cst_22 : f32 to vector<32x512xf32>
    %46 = arith.mulf %45, %44 : vector<32x512xf32>
    %47 = arith.addf %18, %46 : vector<32x512xf32>
    %48 = arith.addf %47, %43 : vector<32x512xf32>
    %cst_23 = arith.constant dense<0.000000e+00> : vector<4x512xf32>
    %49 = tpu.matmul %1, %48, %cst_23 {dimension_numbers = #tpu.dot_dimension_numbers<[1], [0], [0], [1], [0, 0, 1, 1], [], []>} : vector<4x32xf32>, vector<32x512xf32>, vector<4x512xf32> -> vector<4x512xf32>
    %cst_24 = arith.constant 3.125000e-02 : f32
    %50 = vector.broadcast %cst_24 : f32 to vector<4x512xf32>
    %51 = arith.mulf %50, %49 : vector<4x512xf32>
    %52 = arith.addf %4, %51 : vector<4x512xf32>
    %cst_25 = arith.constant 2.500000e-01 : f32
    %53 = vector.broadcast %cst_25 : f32 to vector<4x512xf32>
    %54 = arith.mulf %53, %15 : vector<4x512xf32>
    %55 = arith.addf %52, %54 : vector<4x512xf32>
    %cst_26 = arith.constant dense<0.000000e+00> : vector<32x512xf32>
    %56 = tpu.matmul %5, %48, %cst_26 {dimension_numbers = #tpu.dot_dimension_numbers<[1], [0], [0], [1], [0, 0, 1, 1], [], []>} : vector<32x32xf32>, vector<32x512xf32>, vector<32x512xf32> -> vector<32x512xf32>
    %cst_27 = arith.constant 3.125000e-02 : f32
    %57 = vector.broadcast %cst_27 : f32 to vector<32x512xf32>
    %58 = arith.mulf %57, %56 : vector<32x512xf32>
    %59 = arith.addf %17, %58 : vector<32x512xf32>
    %cst_28 = arith.constant 2.500000e-01 : f32
    %60 = vector.broadcast %cst_28 : f32 to vector<32x512xf32>
    %61 = arith.mulf %60, %9 : vector<32x512xf32>
    %62 = arith.addf %59, %61 : vector<32x512xf32>
    %63 = math.tanh %62 : vector<32x512xf32>
    %cst_29 = arith.constant dense<0.000000e+00> : vector<32x512xf32>
    %64 = tpu.matmul %5, %63, %cst_29 {dimension_numbers = #tpu.dot_dimension_numbers<[1], [0], [0], [1], [0, 0, 1, 1], [], []>} : vector<32x32xf32>, vector<32x512xf32>, vector<32x512xf32> -> vector<32x512xf32>
    %65 = arith.addf %64, %9 : vector<32x512xf32>
    %cst_30 = arith.constant 0.0833333358 : f32
    %66 = vector.broadcast %cst_30 : f32 to vector<32x512xf32>
    %67 = arith.mulf %66, %65 : vector<32x512xf32>
    %68 = arith.addf %62, %67 : vector<32x512xf32>
    %69 = math.tanh %68 : vector<32x512xf32>
    %cst_31 = arith.constant 0.333333343 : f32
    %70 = vector.broadcast %cst_31 : f32 to vector<32x512xf32>
    %71 = arith.mulf %70, %63 : vector<32x512xf32>
    %72 = arith.subf %69, %71 : vector<32x512xf32>
    %cst_32 = arith.constant dense<0.000000e+00> : vector<32x512xf32>
    %73 = tpu.matmul %5, %72, %cst_32 {dimension_numbers = #tpu.dot_dimension_numbers<[1], [0], [0], [1], [0, 0, 1, 1], [], []>} : vector<32x32xf32>, vector<32x512xf32>, vector<32x512xf32> -> vector<32x512xf32>
    %cst_33 = arith.constant 0.666666686 : f32
    %74 = vector.broadcast %cst_33 : f32 to vector<32x512xf32>
    %75 = arith.mulf %74, %9 : vector<32x512xf32>
    %76 = arith.addf %73, %75 : vector<32x512xf32>
    %cst_34 = arith.constant 2.500000e-01 : f32
    %77 = vector.broadcast %cst_34 : f32 to vector<32x512xf32>
    %78 = arith.mulf %77, %76 : vector<32x512xf32>
    %79 = arith.addf %62, %78 : vector<32x512xf32>
    %80 = math.tanh %79 : vector<32x512xf32>
    %81 = arith.subf %63, %69 : vector<32x512xf32>
    %82 = arith.addf %81, %80 : vector<32x512xf32>
    %cst_35 = arith.constant dense<0.000000e+00> : vector<32x512xf32>
    %83 = tpu.matmul %5, %82, %cst_35 {dimension_numbers = #tpu.dot_dimension_numbers<[1], [0], [0], [1], [0, 0, 1, 1], [], []>} : vector<32x32xf32>, vector<32x512xf32>, vector<32x512xf32> -> vector<32x512xf32>
    %84 = arith.addf %83, %9 : vector<32x512xf32>
    %cst_36 = arith.constant 2.500000e-01 : f32
    %85 = vector.broadcast %cst_36 : f32 to vector<32x512xf32>
    %86 = arith.mulf %85, %84 : vector<32x512xf32>
    %87 = arith.addf %62, %86 : vector<32x512xf32>
    %88 = math.tanh %87 : vector<32x512xf32>
    %89 = arith.addf %69, %80 : vector<32x512xf32>
    %cst_37 = arith.constant 3.000000e+00 : f32
    %90 = vector.broadcast %cst_37 : f32 to vector<32x512xf32>
    %91 = arith.mulf %90, %89 : vector<32x512xf32>
    %92 = arith.addf %63, %91 : vector<32x512xf32>
    %93 = arith.addf %92, %88 : vector<32x512xf32>
    %cst_38 = arith.constant dense<0.000000e+00> : vector<4x512xf32>
    %94 = tpu.matmul %1, %93, %cst_38 {dimension_numbers = #tpu.dot_dimension_numbers<[1], [0], [0], [1], [0, 0, 1, 1], [], []>} : vector<4x32xf32>, vector<32x512xf32>, vector<4x512xf32> -> vector<4x512xf32>
    %cst_39 = arith.constant 3.125000e-02 : f32
    %95 = vector.broadcast %cst_39 : f32 to vector<4x512xf32>
    %96 = arith.mulf %95, %94 : vector<4x512xf32>
    %97 = arith.addf %55, %96 : vector<4x512xf32>
    %cst_40 = arith.constant 2.500000e-01 : f32
    %98 = vector.broadcast %cst_40 : f32 to vector<4x512xf32>
    %99 = arith.mulf %98, %15 : vector<4x512xf32>
    %100 = arith.addf %97, %99 : vector<4x512xf32>
    %cst_41 = arith.constant dense<0.000000e+00> : vector<32x512xf32>
    %101 = tpu.matmul %5, %93, %cst_41 {dimension_numbers = #tpu.dot_dimension_numbers<[1], [0], [0], [1], [0, 0, 1, 1], [], []>} : vector<32x32xf32>, vector<32x512xf32>, vector<32x512xf32> -> vector<32x512xf32>
    %cst_42 = arith.constant 3.125000e-02 : f32
    %102 = vector.broadcast %cst_42 : f32 to vector<32x512xf32>
    %103 = arith.mulf %102, %101 : vector<32x512xf32>
    %104 = arith.addf %62, %103 : vector<32x512xf32>
    %cst_43 = arith.constant 2.500000e-01 : f32
    %105 = vector.broadcast %cst_43 : f32 to vector<32x512xf32>
    %106 = arith.mulf %105, %9 : vector<32x512xf32>
    %107 = arith.addf %104, %106 : vector<32x512xf32>
    %108 = math.tanh %107 : vector<32x512xf32>
    %cst_44 = arith.constant dense<0.000000e+00> : vector<32x512xf32>
    %109 = tpu.matmul %5, %108, %cst_44 {dimension_numbers = #tpu.dot_dimension_numbers<[1], [0], [0], [1], [0, 0, 1, 1], [], []>} : vector<32x32xf32>, vector<32x512xf32>, vector<32x512xf32> -> vector<32x512xf32>
    %110 = arith.addf %109, %9 : vector<32x512xf32>
    %cst_45 = arith.constant 0.0833333358 : f32
    %111 = vector.broadcast %cst_45 : f32 to vector<32x512xf32>
    %112 = arith.mulf %111, %110 : vector<32x512xf32>
    %113 = arith.addf %107, %112 : vector<32x512xf32>
    %114 = math.tanh %113 : vector<32x512xf32>
    %cst_46 = arith.constant 0.333333343 : f32
    %115 = vector.broadcast %cst_46 : f32 to vector<32x512xf32>
    %116 = arith.mulf %115, %108 : vector<32x512xf32>
    %117 = arith.subf %114, %116 : vector<32x512xf32>
    %cst_47 = arith.constant dense<0.000000e+00> : vector<32x512xf32>
    %118 = tpu.matmul %5, %117, %cst_47 {dimension_numbers = #tpu.dot_dimension_numbers<[1], [0], [0], [1], [0, 0, 1, 1], [], []>} : vector<32x32xf32>, vector<32x512xf32>, vector<32x512xf32> -> vector<32x512xf32>
    %cst_48 = arith.constant 0.666666686 : f32
    %119 = vector.broadcast %cst_48 : f32 to vector<32x512xf32>
    %120 = arith.mulf %119, %9 : vector<32x512xf32>
    %121 = arith.addf %118, %120 : vector<32x512xf32>
    %cst_49 = arith.constant 2.500000e-01 : f32
    %122 = vector.broadcast %cst_49 : f32 to vector<32x512xf32>
    %123 = arith.mulf %122, %121 : vector<32x512xf32>
    %124 = arith.addf %107, %123 : vector<32x512xf32>
    %125 = math.tanh %124 : vector<32x512xf32>
    %126 = arith.subf %108, %114 : vector<32x512xf32>
    %127 = arith.addf %126, %125 : vector<32x512xf32>
    %cst_50 = arith.constant dense<0.000000e+00> : vector<32x512xf32>
    %128 = tpu.matmul %5, %127, %cst_50 {dimension_numbers = #tpu.dot_dimension_numbers<[1], [0], [0], [1], [0, 0, 1, 1], [], []>} : vector<32x32xf32>, vector<32x512xf32>, vector<32x512xf32> -> vector<32x512xf32>
    %129 = arith.addf %128, %9 : vector<32x512xf32>
    %cst_51 = arith.constant 2.500000e-01 : f32
    %130 = vector.broadcast %cst_51 : f32 to vector<32x512xf32>
    %131 = arith.mulf %130, %129 : vector<32x512xf32>
    %132 = arith.addf %107, %131 : vector<32x512xf32>
    %133 = math.tanh %132 : vector<32x512xf32>
    %134 = arith.addf %114, %125 : vector<32x512xf32>
    %cst_52 = arith.constant 3.000000e+00 : f32
    %135 = vector.broadcast %cst_52 : f32 to vector<32x512xf32>
    %136 = arith.mulf %135, %134 : vector<32x512xf32>
    %137 = arith.addf %108, %136 : vector<32x512xf32>
    %138 = arith.addf %137, %133 : vector<32x512xf32>
    %cst_53 = arith.constant dense<0.000000e+00> : vector<4x512xf32>
    %139 = tpu.matmul %1, %138, %cst_53 {dimension_numbers = #tpu.dot_dimension_numbers<[1], [0], [0], [1], [0, 0, 1, 1], [], []>} : vector<4x32xf32>, vector<32x512xf32>, vector<4x512xf32> -> vector<4x512xf32>
    %cst_54 = arith.constant 3.125000e-02 : f32
    %140 = vector.broadcast %cst_54 : f32 to vector<4x512xf32>
    %141 = arith.mulf %140, %139 : vector<4x512xf32>
    %142 = arith.addf %100, %141 : vector<4x512xf32>
    %cst_55 = arith.constant 2.500000e-01 : f32
    %143 = vector.broadcast %cst_55 : f32 to vector<4x512xf32>
    %144 = arith.mulf %143, %15 : vector<4x512xf32>
    %145 = arith.addf %142, %144 : vector<4x512xf32>
    %cst_56 = arith.constant dense<0.000000e+00> : vector<32x512xf32>
    %146 = tpu.matmul %5, %138, %cst_56 {dimension_numbers = #tpu.dot_dimension_numbers<[1], [0], [0], [1], [0, 0, 1, 1], [], []>} : vector<32x32xf32>, vector<32x512xf32>, vector<32x512xf32> -> vector<32x512xf32>
    %cst_57 = arith.constant 3.125000e-02 : f32
    %147 = vector.broadcast %cst_57 : f32 to vector<32x512xf32>
    %148 = arith.mulf %147, %146 : vector<32x512xf32>
    %149 = arith.addf %107, %148 : vector<32x512xf32>
    %cst_58 = arith.constant 2.500000e-01 : f32
    %150 = vector.broadcast %cst_58 : f32 to vector<32x512xf32>
    %151 = arith.mulf %150, %9 : vector<32x512xf32>
    %152 = arith.addf %149, %151 : vector<32x512xf32>
    %153 = math.tanh %152 : vector<32x512xf32>
    %cst_59 = arith.constant dense<0.000000e+00> : vector<32x512xf32>
    %154 = tpu.matmul %5, %153, %cst_59 {dimension_numbers = #tpu.dot_dimension_numbers<[1], [0], [0], [1], [0, 0, 1, 1], [], []>} : vector<32x32xf32>, vector<32x512xf32>, vector<32x512xf32> -> vector<32x512xf32>
    %155 = arith.addf %154, %9 : vector<32x512xf32>
    %cst_60 = arith.constant 0.0833333358 : f32
    %156 = vector.broadcast %cst_60 : f32 to vector<32x512xf32>
    %157 = arith.mulf %156, %155 : vector<32x512xf32>
    %158 = arith.addf %152, %157 : vector<32x512xf32>
    %159 = math.tanh %158 : vector<32x512xf32>
    %cst_61 = arith.constant 0.333333343 : f32
    %160 = vector.broadcast %cst_61 : f32 to vector<32x512xf32>
    %161 = arith.mulf %160, %153 : vector<32x512xf32>
    %162 = arith.subf %159, %161 : vector<32x512xf32>
    %cst_62 = arith.constant dense<0.000000e+00> : vector<32x512xf32>
    %163 = tpu.matmul %5, %162, %cst_62 {dimension_numbers = #tpu.dot_dimension_numbers<[1], [0], [0], [1], [0, 0, 1, 1], [], []>} : vector<32x32xf32>, vector<32x512xf32>, vector<32x512xf32> -> vector<32x512xf32>
    %cst_63 = arith.constant 0.666666686 : f32
    %164 = vector.broadcast %cst_63 : f32 to vector<32x512xf32>
    %165 = arith.mulf %164, %9 : vector<32x512xf32>
    %166 = arith.addf %163, %165 : vector<32x512xf32>
    %cst_64 = arith.constant 2.500000e-01 : f32
    %167 = vector.broadcast %cst_64 : f32 to vector<32x512xf32>
    %168 = arith.mulf %167, %166 : vector<32x512xf32>
    %169 = arith.addf %152, %168 : vector<32x512xf32>
    %170 = math.tanh %169 : vector<32x512xf32>
    %171 = arith.subf %153, %159 : vector<32x512xf32>
    %172 = arith.addf %171, %170 : vector<32x512xf32>
    %cst_65 = arith.constant dense<0.000000e+00> : vector<32x512xf32>
    %173 = tpu.matmul %5, %172, %cst_65 {dimension_numbers = #tpu.dot_dimension_numbers<[1], [0], [0], [1], [0, 0, 1, 1], [], []>} : vector<32x32xf32>, vector<32x512xf32>, vector<32x512xf32> -> vector<32x512xf32>
    %174 = arith.addf %173, %9 : vector<32x512xf32>
    %cst_66 = arith.constant 2.500000e-01 : f32
    %175 = vector.broadcast %cst_66 : f32 to vector<32x512xf32>
    %176 = arith.mulf %175, %174 : vector<32x512xf32>
    %177 = arith.addf %152, %176 : vector<32x512xf32>
    %178 = math.tanh %177 : vector<32x512xf32>
    %179 = arith.addf %159, %170 : vector<32x512xf32>
    %cst_67 = arith.constant 3.000000e+00 : f32
    %180 = vector.broadcast %cst_67 : f32 to vector<32x512xf32>
    %181 = arith.mulf %180, %179 : vector<32x512xf32>
    %182 = arith.addf %153, %181 : vector<32x512xf32>
    %183 = arith.addf %182, %178 : vector<32x512xf32>
    %cst_68 = arith.constant dense<0.000000e+00> : vector<4x512xf32>
    %184 = tpu.matmul %1, %183, %cst_68 {dimension_numbers = #tpu.dot_dimension_numbers<[1], [0], [0], [1], [0, 0, 1, 1], [], []>} : vector<4x32xf32>, vector<32x512xf32>, vector<4x512xf32> -> vector<4x512xf32>
    %cst_69 = arith.constant 3.125000e-02 : f32
    %185 = vector.broadcast %cst_69 : f32 to vector<4x512xf32>
    %186 = arith.mulf %185, %184 : vector<4x512xf32>
    %187 = arith.addf %145, %186 : vector<4x512xf32>
    %cst_70 = arith.constant 2.500000e-01 : f32
    %188 = vector.broadcast %cst_70 : f32 to vector<4x512xf32>
    %189 = arith.mulf %188, %15 : vector<4x512xf32>
    %190 = arith.addf %187, %189 : vector<4x512xf32>
    %191 = vector.extract_strided_slice %190 {offsets = [0, 0], sizes = [4, 256], strides = [1, 1]} : vector<4x512xf32> to vector<4x256xf32>
    %192 = vector.extract_strided_slice %190 {offsets = [0, 256], sizes = [4, 256], strides = [1, 1]} : vector<4x512xf32> to vector<4x256xf32>
    %193 = tpu.concatenate %191, %192 in 0 : vector<4x256xf32>, vector<4x256xf32> -> vector<8x256xf32>
    %c0_71 = arith.constant 0 : index
    %c0_72 = arith.constant 0 : index
    %194 = vector.load %arg6[%c0_71, %c0_72] : memref<8x256xf32, #tpu.memory_space<vmem>>, vector<8x256xf32>
    tpu.vector_store %arg6[%c0_71, %c0_72], %193 {strides = array<i32>} : memref<8x256xf32, #tpu.memory_space<vmem>>, vector<8x256xf32>,
    return
  }
  func.func @transform_0(%arg0: i32) -> (i32, i32) {
    %c0_i32 = arith.constant 0 : i32
    %c0_i32_0 = arith.constant 0 : i32
    return %c0_i32, %arg0 : i32, i32
  }
  func.func @transform_1(%arg0: i32) -> (i32, i32) {
    %c0_i32 = arith.constant 0 : i32
    %c0_i32_0 = arith.constant 0 : i32
    %c0_i32_1 = arith.constant 0 : i32
    return %c0_i32, %c0_i32_0 : i32, i32
  }
  func.func @transform_2(%arg0: i32) -> (i32, i32) {
    %c0_i32 = arith.constant 0 : i32
    %c0_i32_0 = arith.constant 0 : i32
    %c0_i32_1 = arith.constant 0 : i32
    return %c0_i32, %c0_i32_0 : i32, i32
  }
  func.func @transform_3(%arg0: i32) -> (i32, i32) {
    %c0_i32 = arith.constant 0 : i32
    %c0_i32_0 = arith.constant 0 : i32
    %c0_i32_1 = arith.constant 0 : i32
    return %c0_i32, %c0_i32_0 : i32, i32
  }
  func.func @transform_4(%arg0: i32) -> (i32, i32) {
    %c0_i32 = arith.constant 0 : i32
    %c0_i32_0 = arith.constant 0 : i32
    %c0_i32_1 = arith.constant 0 : i32
    return %c0_i32, %c0_i32_0 : i32, i32
  }
  func.func @transform_5(%arg0: i32) -> (i32, i32) {
    %c0_i32 = arith.constant 0 : i32
    %c0_i32_0 = arith.constant 0 : i32
    return %c0_i32, %arg0 : i32, i32
  }
}

</mosaic_0001>

<bundles_post_ra>
// kernel: tpu_custom_call.1
= control target key start
LH: loop header
LB: loop body
LE: loop exit
PB: predicated region body
PF: predicated region fallthrough
CT: control target
= control target key end

     0   :  { %vm49_vm0 = vcmask 1043456   ;;  %vm36_vm1 = vcmask 31744   ;;  %s8101_s0 = inlined_call_operand.vmem [shape: f32[8,256], index: 0, kind: input, shape index: {}]   ;;  %s8102_s1 = inlined_call_operand.vmem [shape: f32[32,4], index: 1, kind: input, shape index: {}]   ;;  %s8103_s2 = inlined_call_operand.vmem [shape: f32[32,1], index: 2, kind: input, shape index: {}]   ;;  %s8104_s3 = inlined_call_operand.vmem [shape: f32[4,32], index: 3, kind: input, shape index: {}]   ;;  %s8105_s4 = inlined_call_operand.vmem [shape: f32[4,1], index: 4, kind: input, shape index: {}]   ;;  %s8106_s5 = inlined_call_operand.hbm [shape: f32[8,256], index: 5, kind: output, shape index: {}]  }
   0x1   :  { %v25_v0 = vld [vmem:[%s8104_s3] sm:$0xf]  ;;  %v22_v3 = vld [vmem:[%s8102_s1 + $0x8] sm:$0xff]  ;;  %v23_v4 = vld [vmem:[%s8102_s1 + $0x10] sm:$0xff] }
   0x2   :  { %v5853_v1 = vld [vmem:[%s8105_s4] sm:$0xf]  ;;  %5253 = vmatprep.subr.msk.mxu0 %vm49_vm0, %v25_v0  ;;  %v5872_v5 = vld [vmem:[%s8101_s0 + $0x8] sm:$0xf0]  ;;  %v27_v6 = vld [vmem:[%s8101_s0 + $0x8] sm:$0xf] }
   0x3   :  { %v21_v2 = vld [vmem:[%s8102_s1] sm:$0xff]  ;;  %5261 = vmatprep.subr.msk.mxu1 %vm49_vm0, %v5853_v1  ;;  %5254 = vmatpush3.msk.msra.mxu0 %vm49_vm0, %v25_v0  ;;  %8361 = vst [vmem:[#allocation5_spill] sm:$0xff] %v5872_v5  ;;  %v8107_v7 = vrot.slane %v5872_v5, 4 }
   0x4   :  { %5255 = vmatprep.mubr.msk.f32.mxu0 %vm36_vm1, %v21_v2  ;;  %5262 = vmatpush3.msk.msra.mxu1 %vm49_vm0, %v5853_v1  ;;  %v5884_v8 = vld [vmem:[%s8101_s0] sm:$0xf0]  ;;  %v26_v9 = vld [vmem:[%s8101_s0] sm:$0xf] }
   0x5   :  { %5263 = vmatprep.mubr.msk.f32.mxu1 %vm36_vm1, %v21_v2  ;;  %8362 = vst [vmem:[#allocation6_spill] sm:$0xff] %v5884_v8  ;;  %5256 = vmatmul.mubr.msk.f32.vlgmr.msra.gmra.mxu0 %vm36_vm1, %v22_v3  ;;  %v8108_v10 = vrot.slane %v5884_v8, 4 }
   0x6   :  { %5264 = vmatmul.mubr.msk.f32.vlgmr.msra.gmra.mxu1 %vm36_vm1, %v22_v3 }
   0x7   :  { %10 = vsyncpa [#allocation3], 0  ;;  %5258 = vmatprep.mubr.msk.f32.mxu0 %vm36_vm1, %v23_v4  ;;  %5266 = vmatprep.mubr.msk.f32.mxu1 %vm36_vm1, %v23_v4  ;;  %v24_v11 = vld [vmem:[%s8102_s1 + $0x18] sm:$0xff]  ;;  %v248_v12 = vld [vmem:[%s8103_s2 + $0x8] sm:$0xff]  ;;  %v8109_v14 = vmov 0.0   ;;  %v5815_v15 = vmov 0  }
   0x8   :  { %5103 = vmatprep.subr.msk.mxu0 %vm49_vm0, %v27_v6  ;;  %5109 = vmatprep.subr.msk.mxu1 %vm49_vm0, %v8107_v7  ;;  %v250_v13 = vld [vmem:[%s8103_s2 + $0x18] sm:$0xff]  ;;  %v247_v16 = vld [vmem:[%s8103_s2] sm:$0xff]  ;;  %v249_v17 = vld [vmem:[%s8103_s2 + $0x10] sm:$0xff]  ;;  %vm479_vm2 = vcmask 261120  }
   0x9   :  { %5104 = vmatpush1.msk.msra.mxu0 %vm49_vm0, %v26_v9  ;;  %5110 = vmatpush1.msk.msra.mxu1 %vm49_vm0, %v8108_v10 }
   0xa   :  { %5259 = vmatmul.mubr.msk.f32.gmra.mxu0 %vm36_vm1, %v24_v11  ;;  %5267 = vmatmul.mubr.msk.f32.gmra.mxu1 %vm36_vm1, %v24_v11 }
   0xb   :  { %349 = vmatprep.mubr.f32.mxu0 %v8109_v14  ;;  %438 = vmatprep.mubr.f32.mxu1 %v8109_v14 }
   0xc   :  { %5273 = vset.pattern.permute.xlu1 %v5815_v15  ;;  %5272 = vset.pattern.permute.xlu0 %v5815_v15 }
   0xd   :  { %258 = vperm.xlu1 %5273, %v248_v12   ;;  %268 = vperm.xlu0 %5272, %v250_v13  }
   0xe   :  { %5105 = vmatmul.mubr.msk.f32.vlgmr.msra.gmra.mxu0 %vm36_vm1, %v21_v2  ;;  %5111 = vmatmul.mubr.msk.f32.vlgmr.msra.gmra.mxu1 %vm36_vm1, %v21_v2 }
   0xf   :  { %355 = vmatprep.mubr.f32.mxu0 %v8109_v14  ;;  %444 = vmatprep.mubr.f32.mxu1 %v8109_v14 }
  0x11   :  { %253 = vperm.xlu1 %5273, %v247_v16   ;;  %263 = vperm.xlu0 %5272, %v249_v17  }
  0x12   :  { %5106 = vmatmul.mubr.msk.f32.gmra.mxu0 %vm36_vm1, %v22_v3  ;;  %5112 = vmatmul.mubr.msk.f32.gmra.mxu1 %vm36_vm1, %v22_v3 }
  0x13   :  { %361 = vmatprep.mubr.f32.mxu0 %v8109_v14  ;;  %450 = vmatprep.mubr.f32.mxu1 %v8109_v14 }
  0x16   :  { %5107 = vmatmul.mubr.msk.f32.gmra.mxu0 %vm36_vm1, %v23_v4  ;;  %5113 = vmatmul.mubr.msk.f32.gmra.mxu1 %vm36_vm1, %v23_v4 }
  0x17   :  { %367 = vmatprep.mubr.f32.mxu0 %v8109_v14  ;;  %456 = vmatprep.mubr.f32.mxu1 %v8109_v14 }
  0x1a   :  { %5108 = vmatmul.mubr.msk.f32.gmra.mxu0 %vm36_vm1, %v24_v11  ;;  %5114 = vmatmul.mubr.msk.f32.gmra.mxu1 %vm36_vm1, %v24_v11 }
  0x1b   :  { %556 = vmatprep.mubr.f32.mxu0 %v8109_v14  ;;  %645 = vmatprep.mubr.f32.mxu1 %v8109_v14 }
  0x88   :  { %v259_v26 = vpop.permute.xlu1 %258  ;;  %v269_v31 = vpop.permute.xlu0 %268 }
  0x8c   :  { %v254_v34 = vpop.permute.xlu1 %253  ;;  %v264_v43 = vpop.permute.xlu0 %263 }
  0xc5   :  { %v5937_v18 = vpop.f32.mrf.mxu0 }
  0xc6   :  { %8363 = vst [vmem:[#allocation7_spill] sm:$0xff] %v5937_v18  ;;  %v5265_v19 = vpop.f32.mrf.mxu1 }
  0xc7   :  { %v5939_v20 = vpop.f32.mrf.mxu0 }
  0xc8   :  { %8364 = vst [vmem:[#allocation8_spill] sm:$0xff] %v5939_v20  ;;  %v208_v21 = vpop.f32.mrf.mxu1 }
  0xca   :  { %v5941_v22 = vpop.f32.mrf.mxu0  ;;  %v5268_v23 = vpop.f32.mrf.mxu1 }
  0xcb   :  { %8365 = vst [vmem:[#allocation9_spill] sm:$0xff] %v5941_v22  ;;  %244 = vperm.xlu0 %5272, %v5268_v23  }
  0xcc   :  { %v5943_v24 = vpop.f32.mrf.mxu0  ;;  %v218_v25 = vpop.f32.mrf.mxu1 }
  0xcd   :  { %8366 = vst [vmem:[#allocation10_spill] sm:$0xff] %v5943_v24  ;;  %239 = vperm.xlu1 %5273, %v218_v25  }
  0xce   :  { %v351_v27 = vpop.f32.mrf.mxu0  ;;  %v440_v28 = vpop.f32.mrf.mxu1 }
  0xcf   :  { %234 = vperm.xlu0 %5272, %v5265_v19   ;;  %v5946_v35 = vadd.f32 %v351_v27, %v254_v34  ;;  %v5987_v61 = vadd.f32 %v440_v28, %v254_v34 }
  0xd0   :  { %v353_v29 = vpop.f32.mrf.mxu0  ;;  %v442_v30 = vpop.f32.mrf.mxu1 }
  0xd1   :  { %229 = vperm.xlu1 %5273, %v208_v21   ;;  %8367 = vst [vmem:[#allocation11_spill] sm:$0xff] %v5946_v35  ;;  %v5948_v38 = vadd.f32 %v353_v29, %v254_v34  ;;  %5274 = vtanh.f32 %v5946_v35  ;;  %v5984_v60 = vadd.f32 %v442_v30, %v254_v34 }
  0xd2   :  { %v357_v32 = vpop.f32.mrf.mxu0  ;;  %v446_v33 = vpop.f32.mrf.mxu1 }
  0xd3   :  { %272 = vperm.xlu0 %5272, %v5853_v1   ;;  %8368 = vst [vmem:[#allocation12_spill] sm:$0xff] %v5948_v38  ;;  %v5950_v39 = vadd.f32 %v357_v32, %v259_v26  ;;  %5276 = vtanh.f32 %v5948_v38  ;;  %v5981_v59 = vadd.f32 %v446_v33, %v259_v26 }
  0xd4   :  { %v359_v36 = vpop.f32.mrf.mxu0  ;;  %v448_v37 = vpop.f32.mrf.mxu1 }
  0xd5   :  { %8369 = vst [vmem:[#allocation13_spill] sm:$0xff] %v5950_v39  ;;  %v5952_v42 = vadd.f32 %v359_v36, %v259_v26  ;;  %5278 = vtanh.f32 %v5950_v39  ;;  %v5978_v58 = vadd.f32 %v448_v37, %v259_v26 }
  0xd6   :  { %v363_v40 = vpop.f32.mrf.mxu0  ;;  %v452_v41 = vpop.f32.mrf.mxu1 }
  0xd7   :  { %v5955_v44 = vadd.f32 %v363_v40, %v264_v43  ;;  %5280 = vtanh.f32 %v5952_v42  ;;  %v5975_v57 = vadd.f32 %v452_v41, %v264_v43 }
  0xd8   :  { %v365_v45 = vpop.f32.mrf.mxu0  ;;  %v454_v46 = vpop.f32.mrf.mxu1 }
  0xd9   :  { %v5958_v47 = vadd.f32 %v365_v45, %v264_v43  ;;  %5282 = vtanh.f32 %v5955_v44  ;;  %v5972_v56 = vadd.f32 %v454_v46, %v264_v43 }
  0xda   :  { %v369_v48 = vpop.f32.mrf.mxu0  ;;  %v458_v49 = vpop.f32.mrf.mxu1 }
  0xdb   :  { %v5962_v50 = vadd.f32 %v369_v48, %v269_v31  ;;  %5284 = vtanh.f32 %v5958_v47  ;;  %v5966_v53 = vadd.f32 %v458_v49, %v269_v31 }
  0xdc   :  { %v371_v51 = vpop.f32.mrf.mxu0  ;;  %v460_v52 = vpop.f32.mrf.mxu1 }
  0xdd   :  { %v5968_v54 = vadd.f32 %v371_v51, %v269_v31  ;;  %v5970_v55 = vadd.f32 %v460_v52, %v269_v31  ;;  %5286 = vtanh.f32 %v5962_v50 }
  0xde   :  { %v5991_v62 = vpop.eup %5274 }
  0xdf   :  { %5288 = vtanh.f32 %v5968_v54  ;;  %8370 = vst [vmem:[#allocation14_spill] sm:$0xff] %v5991_v62 }
  0xe0   :  { %5290 = vtanh.f32 %v5970_v55  ;;  %v5994_v63 = vpop.eup %5276 }
  0xe1   :  { %5292 = vtanh.f32 %v5966_v53  ;;  %8371 = vst [vmem:[#allocation15_spill] sm:$0xff] %v5994_v63 }
  0xe2   :  { %5294 = vtanh.f32 %v5972_v56  ;;  %v5997_v0 = vpop.eup %5278 }
  0xe3   :  { %5296 = vtanh.f32 %v5975_v57  ;;  %8372 = vst [vmem:[#allocation16_spill] sm:$0xff] %v5997_v0 }
  0xe4   :  { %5298 = vtanh.f32 %v5978_v58  ;;  %v6000_v1 = vpop.eup %5280 }
  0xe5   :  { %5300 = vtanh.f32 %v5981_v59  ;;  %8373 = vst [vmem:[#allocation17_spill] sm:$0xff] %v6000_v1 }
  0xe6   :  { %5302 = vtanh.f32 %v5984_v60  ;;  %v6002_v2 = vpop.eup %5282 }
  0xe7   :  { %5304 = vtanh.f32 %v5987_v61  ;;  %8374 = vst [vmem:[#allocation18_spill] sm:$0xff] %v6002_v2 }
  0xe8   :  { %v6004_v3 = vpop.eup %5284 }
  0xe9   :  { %8375 = vst [vmem:[#allocation19_spill] sm:$0xff] %v6004_v3 }
  0xea   :  { %v6006_v4 = vpop.eup %5286 }
  0xeb   :  { %8376 = vst [vmem:[#allocation20_spill] sm:$0xff] %v6006_v4 }
  0xec   :  { %v6008_v6 = vpop.eup %5288 }
  0xed   :  { %8377 = vst [vmem:[#allocation21_spill] sm:$0xff] %v6008_v6  ;;  %v6010_v9 = vpop.eup %5290  ;;  %516 = vmatprep.subr.mxu0 %v6008_v6 }
  0xee   :  { %8378 = vst [vmem:[#allocation22_spill] sm:$0xff] %v6010_v9  ;;  %v6013_v11 = vpop.eup %5292  ;;  %605 = vmatprep.subr.mxu1 %v6010_v9  ;;  %517 = vmatpush1.msra.mxu0 %v6006_v4 }
  0xef   :  { %8379 = vst [vmem:[#allocation23_spill] sm:$0xff] %v6013_v11  ;;  %v6017_v12 = vpop.eup %5294  ;;  %606 = vmatpush1.msra.mxu1 %v6013_v11  ;;  %518 = vmatprep.subr.mxu0 %v6004_v3 }
  0xf0   :  { %8380 = vst [vmem:[#allocation24_spill] sm:$0xff] %v6017_v12  ;;  %v6021_v13 = vpop.eup %5296  ;;  %607 = vmatprep.subr.mxu1 %v6017_v12  ;;  %519 = vmatpush1.msra.mxu0 %v6002_v2 }
  0xf1   :  { %8381 = vst [vmem:[#allocation25_spill] sm:$0xff] %v6021_v13  ;;  %v6025_v15 = vpop.eup %5298  ;;  %608 = vmatpush1.msra.mxu1 %v6021_v13  ;;  %520 = vmatprep.subr.mxu0 %v6000_v1 }
  0xf2   :  { %8382 = vst [vmem:[#allocation26_spill] sm:$0xff] %v6025_v15  ;;  %v6029_v16 = vpop.eup %5300  ;;  %609 = vmatprep.subr.mxu1 %v6025_v15  ;;  %521 = vmatpush1.msra.mxu0 %v5997_v0 }
  0xf3   :  { %8383 = vst [vmem:[#allocation27_spill] sm:$0xff] %v6029_v16  ;;  %v6033_v17 = vpop.eup %5302  ;;  %610 = vmatpush1.msra.mxu1 %v6029_v16  ;;  %522 = vmatprep.subr.mxu0 %v5994_v63 }
  0xf4   :  { %8384 = vst [vmem:[#allocation28_spill] sm:$0xff] %v6033_v17  ;;  %v6037_v19 = vpop.eup %5304  ;;  %611 = vmatprep.subr.mxu1 %v6033_v17  ;;  %523 = vmatpush1.msra.mxu0 %v5991_v62 }
  0xf5   :  { %8385 = vst [vmem:[#allocation29_spill] sm:$0xff] %v6037_v19  ;;  %612 = vmatpush1.msra.mxu1 %v6037_v19  ;;  %5115 = vmatmul.mubr.msk.f32.vlgmr.msra.gmra.mxu0 %vm479_vm2, %v5939_v20 }
  0xf6   :  { %5119 = vmatmul.mubr.msk.f32.vlgmr.msra.gmra.mxu1 %vm479_vm2, %v5939_v20  ;;  %562 = vmatprep.mubr.f32.mxu0 %v8109_v14 }
  0xf7   :  { %651 = vmatprep.mubr.f32.mxu1 %v8109_v14 }
  0xf9   :  { %5116 = vmatmul.mubr.msk.f32.gmra.mxu0 %vm479_vm2, %v5937_v18 }
  0xfa   :  { %5120 = vmatmul.mubr.msk.f32.gmra.mxu1 %vm479_vm2, %v5937_v18  ;;  %568 = vmatprep.mubr.f32.mxu0 %v8109_v14 }
  0xfb   :  { %657 = vmatprep.mubr.f32.mxu1 %v8109_v14 }
  0xfd   :  { %5117 = vmatmul.mubr.msk.f32.gmra.mxu0 %vm479_vm2, %v5943_v24 }
  0xfe   :  { %5121 = vmatmul.mubr.msk.f32.gmra.mxu1 %vm479_vm2, %v5943_v24  ;;  %574 = vmatprep.mubr.f32.mxu0 %v8109_v14 }
  0xff   :  { %663 = vmatprep.mubr.f32.mxu1 %v8109_v14 }
 0x101   :  { %5118 = vmatmul.mubr.msk.f32.gmra.mxu0 %vm479_vm2, %v5941_v22 }
 0x102   :  { %5122 = vmatmul.mubr.msk.f32.gmra.mxu1 %vm479_vm2, %v5941_v22  ;;  %818 = vmatprep.mubr.f32.mxu0 %v8109_v14 }
 0x103   :  { %907 = vmatprep.mubr.f32.mxu1 %v8109_v14 }
 0x146   :  { %v6068_v23 = vpop.permute.xlu0 %244 }
 0x147   :  { %8387 = vst [vmem:[#allocation31_spill] sm:$0xff] %v6068_v23 }
 0x148   :  { %v6066_v21 = vpop.permute.xlu1 %239 }
 0x149   :  { %8386 = vst [vmem:[#allocation30_spill] sm:$0xff] %v6066_v21 }
 0x14a   :  { %v6074_v33 = vpop.permute.xlu0 %234 }
 0x14b   :  { %8389 = vst [vmem:[#allocation33_spill] sm:$0xff] %v6074_v33 }
 0x14c   :  { %v6070_v25 = vpop.permute.xlu1 %229 }
 0x14d   :  { %8388 = vst [vmem:[#allocation32_spill] sm:$0xff] %v6070_v25 }
 0x1b5   :  { %v558_v26 = vpop.f32.mrf.mxu0 }
 0x1b6   :  { %v559_v27 = vadd.f32 %v558_v26, %v6070_v25  ;;  %v647_v28 = vpop.f32.mrf.mxu1 }
 0x1b7   :  { %v560_v29 = vpop.f32.mrf.mxu0 }
 0x1b8   :  { %v670_v30 = vmul.f32 0.083333336, %v559_v27  ;;  %v561_v31 = vadd.f32 %v560_v29, %v6070_v25  ;;  %v649_v32 = vpop.f32.mrf.mxu1 }
 0x1b9   :  { %v564_v34 = vpop.f32.mrf.mxu0 }
 0x1ba   :  { %v671_v36 = vmul.f32 0.083333336, %v561_v31  ;;  %v565_v37 = vadd.f32 %v564_v34, %v6074_v33  ;;  %v653_v40 = vpop.f32.mrf.mxu1  ;;  %v686_v43 = vadd.f32 %v670_v30, %v5946_v35  ;;  %v648_v31 = vadd.f32 %v647_v28, %v6070_v25 }
 0x1bb   :  { %v566_v41 = vpop.f32.mrf.mxu0 }
 0x1bc   :  { %v674_v45 = vmul.f32 0.083333336, %v565_v37  ;;  %v567_v46 = vadd.f32 %v566_v41, %v6074_v33  ;;  %v655_v48 = vpop.f32.mrf.mxu1  ;;  %v687_v49 = vadd.f32 %v671_v36, %v5948_v38  ;;  %5306 = vtanh.f32 %v686_v43 }
 0x1bd   :  { %v570_v51 = vpop.f32.mrf.mxu0  ;;  %v656_v26 = vadd.f32 %v655_v48, %v6074_v33  ;;  %v654_v48 = vadd.f32 %v653_v40, %v6074_v33 }
 0x1be   :  { %v675_v52 = vmul.f32 0.083333336, %v567_v46  ;;  %v571_v27 = vadd.f32 %v570_v51, %v6066_v21  ;;  %v659_v29 = vpop.f32.mrf.mxu1  ;;  %v690_v34 = vadd.f32 %v674_v45, %v5950_v39  ;;  %5308 = vtanh.f32 %v687_v49 }
 0x1bf   :  { %v660_v7 = vadd.f32 %v659_v29, %v6066_v21  ;;  %v572_v30 = vpop.f32.mrf.mxu0  ;;  %v650_v46 = vadd.f32 %v649_v32, %v6070_v25  ;;  %v677_v14 = vmul.f32 0.083333336, %v656_v26 }
 0x1c0   :  { %v691_v37 = vadd.f32 %v675_v52, %v5952_v42  ;;  %v678_v41 = vmul.f32 0.083333336, %v571_v27  ;;  %v573_v36 = vadd.f32 %v572_v30, %v6066_v21  ;;  %v661_v10 = vpop.f32.mrf.mxu1  ;;  %5310 = vtanh.f32 %v690_v34 }
 0x1c1   :  { %v662_v51 = vadd.f32 %v661_v10, %v6066_v21  ;;  %v576_v28 = vpop.f32.mrf.mxu0  ;;  %v680_v52 = vmul.f32 0.083333336, %v660_v7 }
 0x1c2   :  { %v694_v45 = vadd.f32 %v678_v41, %v5955_v44  ;;  %v679_v29 = vmul.f32 0.083333336, %v573_v36  ;;  %v577_v43 = vadd.f32 %v576_v28, %v6068_v23  ;;  %v665_v5 = vpop.f32.mrf.mxu1  ;;  %5312 = vtanh.f32 %v691_v37 }
 0x1c3   :  { %v681_v27 = vmul.f32 0.083333336, %v662_v51  ;;  %v666_v30 = vadd.f32 %v665_v5, %v6068_v23  ;;  %v578_v49 = vpop.f32.mrf.mxu0  ;;  %v676_v28 = vmul.f32 0.083333336, %v654_v48  ;;  %v673_v5 = vmul.f32 0.083333336, %v650_v46 }
 0x1c4   :  { %v695_v32 = vadd.f32 %v679_v29, %v5958_v47  ;;  %v682_v40 = vmul.f32 0.083333336, %v577_v43  ;;  %v579_v10 = vadd.f32 %v578_v49, %v6068_v23  ;;  %v667_v8 = vpop.f32.mrf.mxu1  ;;  %5314 = vtanh.f32 %v694_v45 }
 0x1c5   :  { %v697_v26 = vadd.f32 %v681_v27, %v5972_v56  ;;  %v684_v41 = vmul.f32 0.083333336, %v666_v30  ;;  %v668_v36 = vadd.f32 %v667_v8, %v6068_v23  ;;  %v672_v29 = vmul.f32 0.083333336, %v648_v31 }
 0x1c6   :  { %5316 = vtanh.f32 %v695_v32  ;;  %v698_v7 = vadd.f32 %v682_v40, %v5962_v50  ;;  %v683_v34 = vmul.f32 0.083333336, %v579_v10  ;;  %v696_v43 = vadd.f32 %v680_v52, %v5975_v57 }
 0x1c7   :  { %5318 = vtanh.f32 %v697_v26  ;;  %v700_v37 = vadd.f32 %v684_v41, %v5966_v53  ;;  %v685_v51 = vmul.f32 0.083333336, %v668_v36  ;;  %v693_v27 = vadd.f32 %v677_v14, %v5978_v58 }
 0x1c8   :  { %5320 = vtanh.f32 %v698_v7  ;;  %v699_v45 = vadd.f32 %v683_v34, %v5968_v54  ;;  %v692_v48 = vadd.f32 %v676_v28, %v5981_v59  ;;  %v689_v46 = vadd.f32 %v673_v5, %v5984_v60 }
 0x1c9   :  { %5322 = vtanh.f32 %v700_v37  ;;  %v701_v8 = vadd.f32 %v685_v51, %v5970_v55  ;;  %v688_v30 = vadd.f32 %v672_v29, %v5987_v61  ;;  %v6106_v31 = vpop.eup %5306  ;;  %v731_v36 = vmul.f32 0.33333334, %v6008_v6 }
 0x1ca   :  { %5324 = vtanh.f32 %v699_v45  ;;  %v733_v7 = vmul.f32 0.33333334, %v6010_v9  ;;  %v730_v34 = vmul.f32 0.33333334, %v6006_v4  ;;  %v732_v51 = vmul.f32 0.33333334, %v6013_v11 }
 0x1cb   :  { %5326 = vtanh.f32 %v701_v8  ;;  %v6108_v52 = vpop.eup %5308  ;;  %v727_v29 = vmul.f32 0.33333334, %v6004_v3  ;;  %v729_v8 = vmul.f32 0.33333334, %v6017_v12  ;;  %v728_v11 = vmul.f32 0.33333334, %v6021_v13 }
 0x1cc   :  { %5328 = vtanh.f32 %v696_v43  ;;  %v723_v3 = vmul.f32 0.33333334, %v6000_v1  ;;  %v724_v1 = vmul.f32 0.33333334, %v6029_v16 }
 0x1cd   :  { %5330 = vtanh.f32 %v693_v27  ;;  %v6110_v14 = vpop.eup %5310 }
 0x1ce   :  { %5332 = vtanh.f32 %v692_v48  ;;  %v726_v48 = vmul.f32 0.33333334, %v6002_v2  ;;  %v725_v2 = vmul.f32 0.33333334, %v6025_v15  ;;  %v721_v15 = vmul.f32 0.33333334, %v6033_v17 }
 0x1cf   :  { %5334 = vtanh.f32 %v689_v46  ;;  %v6112_v49 = vpop.eup %5312 }
 0x1d0   :  { %5336 = vtanh.f32 %v688_v30  ;;  %8390 = vst [vmem:[#allocation34_spill] sm:$0xff] %v6112_v49 }
 0x1d1   :  { %v6114_v32 = vpop.eup %5314 }
 0x1d3   :  { %v6116_v40 = vpop.eup %5316 }
 0x1d4   :  { %v6118_v10 = vpop.eup %5318 }
 0x1d5   :  { %v6120_v26 = vpop.eup %5320 }
 0x1d6   :  { %v6122_v41 = vpop.eup %5322  ;;  %v746_v27 = vsub.f32 %v6120_v26, %v730_v34  ;;  %v742_v34 = vsub.f32 %v6114_v32, %v726_v48 }
 0x1d7   :  { %v6125_v28 = vpop.eup %5324  ;;  %v748_v30 = vsub.f32 %v6122_v41, %v732_v51 }
 0x1d8   :  { %v6129_v5 = vpop.eup %5326  ;;  %v747_v37 = vsub.f32 %v6125_v28, %v731_v36  ;;  %v743_v36 = vsub.f32 %v6116_v40, %v727_v29  ;;  %v739_v29 = vsub.f32 %v6112_v49, %v723_v3 }
 0x1d9   :  { %v6134_v43 = vpop.eup %5328  ;;  %v749_v45 = vsub.f32 %v6129_v5, %v733_v7  ;;  %v745_v7 = vsub.f32 %v6118_v10, %v729_v8 }
 0x1da   :  { %8391 = vst [vmem:[#allocation35_spill] sm:$0xff] %v6134_v43  ;;  %v6140_v46 = vpop.eup %5330  ;;  %778 = vmatprep.subr.mxu0 %v747_v37  ;;  %v722_v37 = vmul.f32 0.33333334, %v5997_v0  ;;  %v744_v51 = vsub.f32 %v6134_v43, %v728_v11 }
 0x1db   :  { %8392 = vst [vmem:[#allocation36_spill] sm:$0xff] %v6140_v46  ;;  %v6146_v4 = vpop.eup %5332  ;;  %867 = vmatprep.subr.mxu1 %v749_v45  ;;  %779 = vmatpush1.msra.mxu0 %v746_v27  ;;  %v719_v45 = vmul.f32 0.33333334, %v5994_v63  ;;  %v741_v8 = vsub.f32 %v6140_v46, %v725_v2 }
 0x1dc   :  { %8393 = vst [vmem:[#allocation37_spill] sm:$0xff] %v6146_v4  ;;  %v6152_v12 = vpop.eup %5334  ;;  %868 = vmatpush1.msra.mxu1 %v748_v30  ;;  %780 = vmatprep.subr.mxu0 %v743_v36  ;;  %v738_v48 = vsub.f32 %v6110_v14, %v722_v37  ;;  %v718_v30 = vmul.f32 0.33333334, %v5991_v62  ;;  %v740_v3 = vsub.f32 %v6146_v4, %v724_v1  ;;  %v720_v36 = vmul.f32 0.33333334, %v6037_v19 }
 0x1dd   :  { %v6158_v27 = vpop.eup %5336  ;;  %869 = vmatprep.subr.mxu1 %v745_v7  ;;  %781 = vmatpush1.msra.mxu0 %v742_v34  ;;  %v735_v11 = vsub.f32 %v6108_v52, %v719_v45  ;;  %v737_v7 = vsub.f32 %v6152_v12, %v721_v15  ;;  %v8394_v1 = vmov 0.0   ;;  %v6195_v15 = vmul.f32 0.6666667, %v6070_v25 }
 0x1de   :  { %870 = vmatpush1.msra.mxu1 %v744_v51  ;;  %782 = vmatprep.subr.mxu0 %v739_v29  ;;  %v734_v2 = vsub.f32 %v6106_v31, %v718_v30  ;;  %v736_v34 = vsub.f32 %v6158_v27, %v720_v36 }
 0x1df   :  { %871 = vmatprep.subr.mxu1 %v741_v8  ;;  %783 = vmatpush1.msra.mxu0 %v738_v48  ;;  %8395 = vst [vmem:[#allocation38_spill] sm:$0xff] %v6195_v15 }
 0x1e0   :  { %872 = vmatpush1.msra.mxu1 %v740_v3  ;;  %784 = vmatprep.subr.mxu0 %v735_v11  ;;  %v6200_v3 = vmul.f32 0.6666667, %v6074_v33 }
 0x1e1   :  { %873 = vmatprep.subr.mxu1 %v737_v7  ;;  %785 = vmatpush1.msra.mxu0 %v734_v2 }
 0x1e2   :  { %874 = vmatpush1.msra.mxu1 %v736_v34  ;;  %5123 = vmatmul.mubr.msk.f32.vlgmr.msra.gmra.mxu0 %vm479_vm2, %v5939_v20  ;;  %8396 = vst [vmem:[#allocation39_spill] sm:$0xff] %v6200_v3 }
 0x1e3   :  { %5127 = vmatmul.mubr.msk.f32.vlgmr.msra.gmra.mxu1 %vm479_vm2, %v5939_v20  ;;  %824 = vmatprep.mubr.f32.mxu0 %v8394_v1 }
 0x1e4   :  { %913 = vmatprep.mubr.f32.mxu1 %v8394_v1 }
 0x1e6   :  { %5124 = vmatmul.mubr.msk.f32.gmra.mxu0 %vm479_vm2, %v5937_v18 }
 0x1e7   :  { %5128 = vmatmul.mubr.msk.f32.gmra.mxu1 %vm479_vm2, %v5937_v18  ;;  %830 = vmatprep.mubr.f32.mxu0 %v8394_v1 }
 0x1e8   :  { %919 = vmatprep.mubr.f32.mxu1 %v8394_v1 }
 0x1ea   :  { %5125 = vmatmul.mubr.msk.f32.gmra.mxu0 %vm479_vm2, %v5943_v24 }
 0x1eb   :  { %5129 = vmatmul.mubr.msk.f32.gmra.mxu1 %vm479_vm2, %v5943_v24  ;;  %836 = vmatprep.mubr.f32.mxu0 %v8394_v1 }
 0x1ec   :  { %925 = vmatprep.mubr.f32.mxu1 %v8394_v1 }
 0x1ee   :  { %5126 = vmatmul.mubr.msk.f32.gmra.mxu0 %vm479_vm2, %v5941_v22 }
 0x1ef   :  { %5130 = vmatmul.mubr.msk.f32.gmra.mxu1 %vm479_vm2, %v5941_v22  ;;  %1076 = vmatprep.mubr.f32.mxu0 %v8394_v1 }
 0x1f0   :  { %1165 = vmatprep.mubr.f32.mxu1 %v8394_v1 }
 0x2a2   :  { %v820_v37 = vpop.f32.mrf.mxu0 }
 0x2a3   :  { %v821_v51 = vadd.f32 %v820_v37, %v6195_v15  ;;  %v909_v29 = vpop.f32.mrf.mxu1 }
 0x2a4   :  { %v822_v45 = vpop.f32.mrf.mxu0  ;;  %v910_v20 = vadd.f32 %v909_v29, %v6195_v15 }
 0x2a5   :  { %v932_v8 = vmul.f32 0.25, %v821_v51  ;;  %v823_v48 = vadd.f32 %v822_v45, %v6195_v15  ;;  %v911_v30 = vpop.f32.mrf.mxu1  ;;  %v6206_v51 = vmul.f32 0.6666667, %v6066_v21 }
 0x2a6   :  { %v826_v11 = vpop.f32.mrf.mxu0 }
 0x2a7   :  { %v933_v36 = vmul.f32 0.25, %v823_v48  ;;  %v827_v7 = vadd.f32 %v826_v11, %v6200_v3  ;;  %v915_v2 = vpop.f32.mrf.mxu1  ;;  %v948_v25 = vadd.f32 %v932_v8, %v5946_v35  ;;  %8397 = vst [vmem:[#allocation40_spill] sm:$0xff] %v6206_v51  ;;  %v6215_v35 = vmul.f32 0.6666667, %v6068_v23 }
 0x2a8   :  { %v828_v34 = vpop.f32.mrf.mxu0  ;;  %v916_v29 = vadd.f32 %v915_v2, %v6200_v3 }
 0x2a9   :  { %v936_v22 = vmul.f32 0.25, %v827_v7  ;;  %v829_v37 = vadd.f32 %v828_v34, %v6200_v3  ;;  %v917_v24 = vpop.f32.mrf.mxu1  ;;  %v949_v45 = vadd.f32 %v933_v36, %v5948_v38  ;;  %8398 = vst [vmem:[#allocation41_spill] sm:$0xff] %v6215_v35  ;;  %5338 = vtanh.f32 %v948_v25 }
 0x2aa   :  { %v832_v18 = vpop.f32.mrf.mxu0  ;;  %v918_v1 = vadd.f32 %v917_v24, %v6200_v3 }
 0x2ab   :  { %v937_v33 = vmul.f32 0.25, %v829_v37  ;;  %v833_v48 = vadd.f32 %v832_v18, %v6206_v51  ;;  %v921_v11 = vpop.f32.mrf.mxu1  ;;  %v952_v8 = vadd.f32 %v936_v22, %v5950_v39  ;;  %5340 = vtanh.f32 %v949_v45 }
 0x2ac   :  { %v922_v7 = vadd.f32 %v921_v11, %v6206_v51  ;;  %v834_v34 = vpop.f32.mrf.mxu0  ;;  %v912_v18 = vadd.f32 %v911_v30, %v6195_v15  ;;  %v939_v11 = vmul.f32 0.25, %v918_v1  ;;  %v8404_v15 = vld [vmem:[#allocation24_spill] sm:$0xff] }
 0x2ad   :  { %v953_v36 = vadd.f32 %v937_v33, %v5952_v42  ;;  %v940_v21 = vmul.f32 0.25, %v833_v48  ;;  %v835_v37 = vadd.f32 %v834_v34, %v6206_v51  ;;  %v923_v24 = vpop.f32.mrf.mxu1  ;;  %5342 = vtanh.f32 %v952_v8 }
 0x2ae   :  { %v924_v22 = vadd.f32 %v923_v24, %v6206_v51  ;;  %v838_v39 = vpop.f32.mrf.mxu0  ;;  %v942_v33 = vmul.f32 0.25, %v922_v7 }
 0x2af   :  { %v956_v38 = vadd.f32 %v940_v21, %v5955_v44  ;;  %v941_v23 = vmul.f32 0.25, %v835_v37  ;;  %v839_v25 = vadd.f32 %v838_v39, %v6215_v35  ;;  %v927_v19 = vpop.f32.mrf.mxu1  ;;  %5344 = vtanh.f32 %v953_v36 }
 0x2b0   :  { %v943_v48 = vmul.f32 0.25, %v924_v22  ;;  %v928_v34 = vadd.f32 %v927_v19, %v6215_v35  ;;  %v840_v45 = vpop.f32.mrf.mxu0  ;;  %v938_v37 = vmul.f32 0.25, %v916_v29  ;;  %v935_v19 = vmul.f32 0.25, %v912_v18 }
 0x2b1   :  { %v957_v30 = vadd.f32 %v941_v23, %v5958_v47  ;;  %v944_v2 = vmul.f32 0.25, %v839_v25  ;;  %v841_v24 = vadd.f32 %v840_v45, %v6215_v35  ;;  %v929_v51 = vpop.f32.mrf.mxu1  ;;  %5346 = vtanh.f32 %v956_v38 }
 0x2b2   :  { %v959_v21 = vadd.f32 %v943_v48, %v5972_v56  ;;  %v946_v1 = vmul.f32 0.25, %v928_v34  ;;  %v930_v39 = vadd.f32 %v929_v51, %v6215_v35  ;;  %v934_v22 = vmul.f32 0.25, %v910_v20 }
 0x2b3   :  { %5348 = vtanh.f32 %v957_v30  ;;  %v960_v8 = vadd.f32 %v944_v2, %v5962_v50  ;;  %v945_v7 = vmul.f32 0.25, %v841_v24  ;;  %v958_v25 = vadd.f32 %v942_v33, %v5975_v57 }
 0x2b4   :  { %5350 = vtanh.f32 %v959_v21  ;;  %v962_v36 = vadd.f32 %v946_v1, %v5966_v53  ;;  %v947_v23 = vmul.f32 0.25, %v930_v39  ;;  %v955_v48 = vadd.f32 %v939_v11, %v5978_v58 }
 0x2b5   :  { %5352 = vtanh.f32 %v960_v8  ;;  %v961_v38 = vadd.f32 %v945_v7, %v5968_v54  ;;  %v954_v29 = vadd.f32 %v938_v37, %v5981_v59  ;;  %v951_v18 = vadd.f32 %v935_v19, %v5984_v60  ;;  %v8400_v7 = vld [vmem:[#allocation20_spill] sm:$0xff] }
 0x2b6   :  { %5354 = vtanh.f32 %v962_v36  ;;  %v963_v51 = vadd.f32 %v947_v23, %v5970_v55  ;;  %v950_v34 = vadd.f32 %v934_v22, %v5987_v61  ;;  %v6238_v20 = vpop.eup %5338  ;;  %v993_v39 = vsub.f32 %v6008_v6, %v6125_v28 }
 0x2b7   :  { %5356 = vtanh.f32 %v961_v38  ;;  %v995_v8 = vsub.f32 %v6010_v9, %v6129_v5  ;;  %v992_v19 = vsub.f32 %v8400_v7, %v6120_v26  ;;  %v981_v36 = vsub.f32 %v5994_v63, %v6108_v52  ;;  %v8401_v38 = vld [vmem:[#allocation23_spill] sm:$0xff] }
 0x2b8   :  { %5358 = vtanh.f32 %v963_v51  ;;  %v6240_v33 = vpop.eup %5340  ;;  %v980_v23 = vsub.f32 %v5991_v62, %v6106_v31  ;;  %v8402_v51 = vld [vmem:[#allocation19_spill] sm:$0xff]  ;;  %v991_v7 = vsub.f32 %v8404_v15, %v6118_v10 }
 0x2b9   :  { %5360 = vtanh.f32 %v958_v25 }
 0x2ba   :  { %5362 = vtanh.f32 %v955_v48  ;;  %v6242_v11 = vpop.eup %5342  ;;  %v994_v48 = vsub.f32 %v8401_v38, %v6122_v41 }
 0x2bb   :  { %5364 = vtanh.f32 %v954_v29  ;;  %v989_v29 = vsub.f32 %v8402_v51, %v6116_v40 }
 0x2bc   :  { %5366 = vtanh.f32 %v951_v18  ;;  %v6244_v45 = vpop.eup %5344  ;;  %v984_v18 = vsub.f32 %v5997_v0, %v6110_v14  ;;  %v990_v0 = vsub.f32 %v6021_v13, %v6134_v43 }
 0x2bd   :  { %5368 = vtanh.f32 %v950_v34  ;;  %8399 = vst [vmem:[#allocation42_spill] sm:$0xff] %v6244_v45 }
 0x2be   :  { %v6246_v30 = vpop.eup %5346 }
 0x2c0   :  { %v6248_v2 = vpop.eup %5348 }
 0x2c1   :  { %v6250_v24 = vpop.eup %5350  ;;  %v1005_v38 = vadd.f32 %v6248_v2, %v989_v29 }
 0x2c2   :  { %v6252_v21 = vpop.eup %5352  ;;  %v1007_v15 = vadd.f32 %v6250_v24, %v991_v7  ;;  %v983_v7 = vsub.f32 %v6033_v17, %v6152_v12 }
 0x2c3   :  { %v6254_v1 = vpop.eup %5354  ;;  %v1008_v3 = vadd.f32 %v6252_v21, %v992_v19 }
 0x2c4   :  { %v6258_v37 = vpop.eup %5356  ;;  %v1010_v51 = vadd.f32 %v6254_v1, %v994_v48 }
 0x2c5   :  { %v6268_v22 = vpop.eup %5358  ;;  %v1009_v25 = vadd.f32 %v6258_v37, %v993_v39  ;;  %v8405_v39 = vld [vmem:[#allocation18_spill] sm:$0xff] }
 0x2c6   :  { %v6277_v34 = vpop.eup %5360  ;;  %v1011_v35 = vadd.f32 %v6268_v22, %v995_v8  ;;  %v988_v9 = vsub.f32 %v8405_v39, %v6114_v32  ;;  %v8407_v8 = vld [vmem:[#allocation17_spill] sm:$0xff] }
 0x2c7   :  { %8403 = vst [vmem:[#allocation43_spill] sm:$0xff] %v6277_v34  ;;  %v6285_v63 = vpop.eup %5362  ;;  %1036 = vmatprep.subr.mxu0 %v1009_v25  ;;  %v985_v6 = vsub.f32 %v8407_v8, %v6112_v49  ;;  %v8409_v25 = vld [vmem:[#allocation26_spill] sm:$0xff]  ;;  %v1006_v29 = vadd.f32 %v6277_v34, %v990_v0  ;;  %v986_v8 = vsub.f32 %v6029_v16, %v6146_v4 }
 0x2c8   :  { %8406 = vst [vmem:[#allocation44_spill] sm:$0xff] %v6285_v63  ;;  %v6293_v19 = vpop.eup %5364  ;;  %1125 = vmatprep.subr.mxu1 %v1011_v35  ;;  %1037 = vmatpush1.msra.mxu0 %v1008_v3  ;;  %v1004_v39 = vadd.f32 %v6246_v30, %v988_v9  ;;  %v987_v62 = vsub.f32 %v8409_v25, %v6140_v46 }
 0x2c9   :  { %8408 = vst [vmem:[#allocation45_spill] sm:$0xff] %v6293_v19  ;;  %v6299_v48 = vpop.eup %5366  ;;  %1126 = vmatpush1.msra.mxu1 %v1010_v51  ;;  %1038 = vmatprep.subr.mxu0 %v1005_v38  ;;  %v1001_v13 = vadd.f32 %v6244_v45, %v985_v6  ;;  %v1000_v3 = vadd.f32 %v6242_v11, %v984_v18  ;;  %v8410_v38 = vld [vmem:[#allocation29_spill] sm:$0xff] }
 0x2ca   :  { %v6305_v35 = vpop.eup %5368  ;;  %1127 = vmatprep.subr.mxu1 %v1007_v15  ;;  %1039 = vmatpush1.msra.mxu0 %v1004_v39  ;;  %v1003_v9 = vadd.f32 %v6285_v63, %v987_v62  ;;  %v1002_v0 = vadd.f32 %v6293_v19, %v986_v8  ;;  %v997_v6 = vadd.f32 %v6240_v33, %v981_v36  ;;  %v8412_v36 = vmov 0.0   ;;  %v8413_v39 = vld [vmem:[#allocation7_spill] sm:$0xff]  ;;  %v8415_v8 = vld [vmem:[#allocation9_spill] sm:$0xff]  ;;  %v8419_v19 = vld [vmem:[#allocation12_spill] sm:$0xff] }
 0x2cb   :  { %1128 = vmatpush1.msra.mxu1 %v1006_v29  ;;  %1040 = vmatprep.subr.mxu0 %v1001_v13  ;;  %v982_v51 = vsub.f32 %v8410_v38, %v6158_v27  ;;  %v999_v15 = vadd.f32 %v6299_v48, %v983_v7  ;;  %v996_v62 = vadd.f32 %v6238_v20, %v980_v23  ;;  %v8411_v13 = vld [vmem:[#allocation8_spill] sm:$0xff]  ;;  %v8414_v23 = vld [vmem:[#allocation10_spill] sm:$0xff] }
 0x2cc   :  { %1129 = vmatprep.subr.mxu1 %v1003_v9  ;;  %1041 = vmatpush1.msra.mxu0 %v1000_v3  ;;  %v8416_v9 = vld [vmem:[#allocation32_spill] sm:$0xff] }
 0x2cd   :  { %1130 = vmatpush1.msra.mxu1 %v1002_v0  ;;  %1042 = vmatprep.subr.mxu0 %v997_v6  ;;  %v998_v18 = vadd.f32 %v6305_v35, %v982_v51 }
 0x2ce   :  { %1131 = vmatprep.subr.mxu1 %v999_v15  ;;  %1043 = vmatpush1.msra.mxu0 %v996_v62 }
 0x2cf   :  { %1132 = vmatpush1.msra.mxu1 %v998_v18  ;;  %5131 = vmatmul.mubr.msk.f32.vlgmr.msra.gmra.mxu0 %vm479_vm2, %v8411_v13 }
 0x2d0   :  { %5135 = vmatmul.mubr.msk.f32.vlgmr.msra.gmra.mxu1 %vm479_vm2, %v8411_v13  ;;  %1082 = vmatprep.mubr.f32.mxu0 %v8412_v36 }
 0x2d1   :  { %1171 = vmatprep.mubr.f32.mxu1 %v8412_v36 }
 0x2d3   :  { %5132 = vmatmul.mubr.msk.f32.gmra.mxu0 %vm479_vm2, %v8413_v39 }
 0x2d4   :  { %5136 = vmatmul.mubr.msk.f32.gmra.mxu1 %vm479_vm2, %v8413_v39  ;;  %1088 = vmatprep.mubr.f32.mxu0 %v8412_v36 }
 0x2d5   :  { %1177 = vmatprep.mubr.f32.mxu1 %v8412_v36 }
 0x2d7   :  { %5133 = vmatmul.mubr.msk.f32.gmra.mxu0 %vm479_vm2, %v8414_v23 }
 0x2d8   :  { %5137 = vmatmul.mubr.msk.f32.gmra.mxu1 %vm479_vm2, %v8414_v23  ;;  %1094 = vmatprep.mubr.f32.mxu0 %v8412_v36  ;;  %v8417_v23 = vld [vmem:[#allocation33_spill] sm:$0xff] }
 0x2d9   :  { %1183 = vmatprep.mubr.f32.mxu1 %v8412_v36 }
 0x2db   :  { %5134 = vmatmul.mubr.msk.f32.gmra.mxu0 %vm479_vm2, %v8415_v8 }
 0x2dc   :  { %5138 = vmatmul.mubr.msk.f32.gmra.mxu1 %vm479_vm2, %v8415_v8  ;;  %1368 = vmatprep.mubr.f32.mxu0 %v8412_v36  ;;  %v8418_v8 = vld [vmem:[#allocation11_spill] sm:$0xff] }
 0x2dd   :  { %1439 = vmatprep.mubr.f32.mxu1 %v8412_v36 }
 0x38f   :  { %v1078_v29 = vpop.f32.mrf.mxu0 }
 0x390   :  { %v1079_v3 = vadd.f32 %v1078_v29, %v8416_v9  ;;  %v1167_v7 = vpop.f32.mrf.mxu1 }
 0x391   :  { %v1080_v0 = vpop.f32.mrf.mxu0 }
 0x392   :  { %v1190_v6 = vmul.f32 0.25, %v1079_v3  ;;  %v1081_v51 = vadd.f32 %v1080_v0, %v8416_v9  ;;  %v1169_v15 = vpop.f32.mrf.mxu1  ;;  %v8420_v0 = vld [vmem:[#allocation30_spill] sm:$0xff] }
 0x393   :  { %v1084_v62 = vpop.f32.mrf.mxu0 }
 0x394   :  { %v1191_v18 = vmul.f32 0.25, %v1081_v51  ;;  %v1085_v39 = vadd.f32 %v1084_v62, %v8417_v23  ;;  %v1173_v13 = vpop.f32.mrf.mxu1  ;;  %v1206_v17 = vadd.f32 %v1190_v6, %v8418_v8  ;;  %v1168_v51 = vadd.f32 %v1167_v7, %v8416_v9  ;;  %v8421_v62 = vld [vmem:[#allocation13_spill] sm:$0xff] }
 0x395   :  { %v1086_v38 = vpop.f32.mrf.mxu0 }
 0x396   :  { %v1194_v16 = vmul.f32 0.25, %v1085_v39  ;;  %v1087_v36 = vadd.f32 %v1086_v38, %v8417_v23  ;;  %v1175_v25 = vpop.f32.mrf.mxu1  ;;  %v1207_v29 = vadd.f32 %v1191_v18, %v8419_v19  ;;  %5370 = vtanh.f32 %v1206_v17 }
 0x397   :  { %v1090_v4 = vpop.f32.mrf.mxu0  ;;  %v1176_v3 = vadd.f32 %v1175_v25, %v8417_v23  ;;  %v1170_v25 = vadd.f32 %v1169_v15, %v8416_v9 }
 0x398   :  { %v1195_v63 = vmul.f32 0.25, %v1087_v36  ;;  %v1091_v46 = vadd.f32 %v1090_v4, %v8420_v0  ;;  %v1179_v45 = vpop.f32.mrf.mxu1  ;;  %v1210_v49 = vadd.f32 %v1194_v16, %v8421_v62  ;;  %5372 = vtanh.f32 %v1207_v29  ;;  %v8422_v62 = vld [vmem:[#allocation31_spill] sm:$0xff] }
 0x399   :  { %v1180_v34 = vadd.f32 %v1179_v45, %v8420_v0  ;;  %v1092_v6 = vpop.f32.mrf.mxu0  ;;  %v1174_v4 = vadd.f32 %v1173_v13, %v8417_v23  ;;  %v1197_v8 = vmul.f32 0.25, %v1176_v3 }
 0x39a   :  { %v1211_v38 = vadd.f32 %v1195_v63, %v5952_v42  ;;  %v1198_v39 = vmul.f32 0.25, %v1091_v46  ;;  %v1093_v18 = vadd.f32 %v1092_v6, %v8420_v0  ;;  %v1181_v19 = vpop.f32.mrf.mxu1  ;;  %5374 = vtanh.f32 %v1210_v49 }
 0x39b   :  { %v1182_v36 = vadd.f32 %v1181_v19, %v8420_v0  ;;  %v1096_v7 = vpop.f32.mrf.mxu0  ;;  %v1200_v63 = vmul.f32 0.25, %v1180_v34 }
 0x39c   :  { %v1214_v16 = vadd.f32 %v1198_v39, %v5955_v44  ;;  %v1199_v45 = vmul.f32 0.25, %v1093_v18  ;;  %v1097_v17 = vadd.f32 %v1096_v7, %v8422_v62  ;;  %v1185_v43 = vpop.f32.mrf.mxu1  ;;  %5376 = vtanh.f32 %v1211_v38 }
 0x39d   :  { %v1201_v46 = vmul.f32 0.25, %v1182_v36  ;;  %v1186_v6 = vadd.f32 %v1185_v43, %v8422_v62  ;;  %v1098_v29 = vpop.f32.mrf.mxu0  ;;  %v1196_v7 = vmul.f32 0.25, %v1174_v4  ;;  %v1193_v43 = vmul.f32 0.25, %v1170_v25 }
 0x39e   :  { %v1215_v15 = vadd.f32 %v1199_v45, %v5958_v47  ;;  %v1202_v13 = vmul.f32 0.25, %v1097_v17  ;;  %v1099_v19 = vadd.f32 %v1098_v29, %v8422_v62  ;;  %v1187_v0 = vpop.f32.mrf.mxu1  ;;  %5378 = vtanh.f32 %v1214_v16 }
 0x39f   :  { %v1217_v3 = vadd.f32 %v1201_v46, %v5972_v56  ;;  %v1204_v39 = vmul.f32 0.25, %v1186_v6  ;;  %v1188_v18 = vadd.f32 %v1187_v0, %v8422_v62  ;;  %v1192_v45 = vmul.f32 0.25, %v1168_v51 }
 0x3a0   :  { %5380 = vtanh.f32 %v1215_v15  ;;  %v1218_v49 = vadd.f32 %v1202_v13, %v5962_v50  ;;  %v1203_v34 = vmul.f32 0.25, %v1099_v19  ;;  %v1216_v17 = vadd.f32 %v1200_v63, %v5975_v57 }
 0x3a1   :  { %5382 = vtanh.f32 %v1217_v3  ;;  %v1220_v38 = vadd.f32 %v1204_v39, %v5966_v53  ;;  %v1205_v36 = vmul.f32 0.25, %v1188_v18  ;;  %v1213_v46 = vadd.f32 %v1197_v8, %v5978_v58 }
 0x3a2   :  { %5384 = vtanh.f32 %v1218_v49  ;;  %v1219_v16 = vadd.f32 %v1203_v34, %v5968_v54  ;;  %v1212_v4 = vadd.f32 %v1196_v7, %v5981_v59  ;;  %v1209_v25 = vadd.f32 %v1193_v43, %v5984_v60 }
 0x3a3   :  { %5386 = vtanh.f32 %v1220_v38  ;;  %v1221_v0 = vadd.f32 %v1205_v36, %v5970_v55  ;;  %v1208_v6 = vadd.f32 %v1192_v45, %v5987_v61  ;;  %v6374_v51 = vpop.eup %5370  ;;  %v1238_v63 = vadd.f32 %v6238_v20, %v6106_v31 }
 0x3a4   :  { %5388 = vtanh.f32 %v1219_v16  ;;  %v1251_v8 = vadd.f32 %v6258_v37, %v6125_v28  ;;  %v1239_v15 = vadd.f32 %v6240_v33, %v6108_v52  ;;  %v1253_v13 = vadd.f32 %v6268_v22, %v6129_v5 }
 0x3a5   :  { %5390 = vtanh.f32 %v1221_v0  ;;  %v6378_v29 = vpop.eup %5372  ;;  %v1250_v19 = vadd.f32 %v6252_v21, %v6120_v26  ;;  %v1240_v3 = vadd.f32 %v6305_v35, %v6158_v27  ;;  %v1252_v20 = vadd.f32 %v6254_v1, %v6122_v41  ;;  %v8423_v41 = vld [vmem:[#allocation35_spill] sm:$0xff]  ;;  %v8431_v0 = vld [vmem:[#allocation14_spill] sm:$0xff] }
 0x3a6   :  { %5392 = vtanh.f32 %v1216_v17  ;;  %v1247_v28 = vadd.f32 %v6248_v2, %v6116_v40  ;;  %v1242_v52 = vadd.f32 %v6242_v11, %v6110_v14  ;;  %v1249_v5 = vadd.f32 %v6250_v24, %v6118_v10  ;;  %v8424_v1 = vld [vmem:[#allocation43_spill] sm:$0xff]  ;;  %v8425_v40 = vld [vmem:[#allocation34_spill] sm:$0xff]  ;;  %v8427_v10 = vld [vmem:[#allocation36_spill] sm:$0xff] }
 0x3a7   :  { %5394 = vtanh.f32 %v1213_v46  ;;  %v6390_v31 = vpop.eup %5374  ;;  %v1246_v26 = vadd.f32 %v6246_v30, %v6114_v32  ;;  %v1241_v27 = vadd.f32 %v6299_v48, %v6152_v12  ;;  %v1254_v21 = vmul.f32 3.0, %v1238_v63  ;;  %v8426_v2 = vld [vmem:[#allocation42_spill] sm:$0xff]  ;;  %v8428_v24 = vld [vmem:[#allocation44_spill] sm:$0xff]  ;;  %v8429_v32 = vld [vmem:[#allocation37_spill] sm:$0xff] }
 0x3a8   :  { %5396 = vtanh.f32 %v1212_v4  ;;  %v1267_v22 = vmul.f32 3.0, %v1251_v8  ;;  %v1248_v35 = vadd.f32 %v8424_v1, %v8423_v41  ;;  %v1243_v39 = vadd.f32 %v8426_v2, %v8425_v40  ;;  %v8430_v30 = vld [vmem:[#allocation45_spill] sm:$0xff]  ;;  %v8434_v1 = vld [vmem:[#allocation22_spill] sm:$0xff] }
 0x3a9   :  { %5398 = vtanh.f32 %v1209_v25  ;;  %v5377_v33 = vpop.eup %5376  ;;  %v1255_v14 = vmul.f32 3.0, %v1239_v15  ;;  %v1269_v18 = vmul.f32 3.0, %v1253_v13  ;;  %v1266_v7 = vmul.f32 3.0, %v1250_v19  ;;  %v8433_v13 = vld [vmem:[#allocation15_spill] sm:$0xff] }
 0x3aa   :  { %5400 = vtanh.f32 %v1208_v6  ;;  %v1245_v49 = vadd.f32 %v8428_v24, %v8427_v10  ;;  %v1244_v34 = vadd.f32 %v8430_v30, %v8429_v32  ;;  %v1268_v48 = vmul.f32 3.0, %v1252_v20  ;;  %v8432_v6 = vld [vmem:[#allocation21_spill] sm:$0xff]  ;;  %v8435_v20 = vld [vmem:[#allocation20_spill] sm:$0xff]  ;;  %v8437_v10 = vld [vmem:[#allocation19_spill] sm:$0xff] }
 0x3ab   :  { %v5379_v37 = vpop.eup %5378  ;;  %v1263_v43 = vmul.f32 3.0, %v1247_v28  ;;  %v1258_v38 = vmul.f32 3.0, %v1242_v52  ;;  %v1256_v36 = vmul.f32 3.0, %v1240_v3  ;;  %v1265_v17 = vmul.f32 3.0, %v1249_v5  ;;  %v8438_v24 = vld [vmem:[#allocation16_spill] sm:$0xff] }
 0x3ac   :  { %v1262_v16 = vmul.f32 3.0, %v1246_v26  ;;  %v1257_v46 = vmul.f32 3.0, %v1241_v27  ;;  %v1270_v4 = vadd.f32 %v8431_v0, %v1254_v21  ;;  %v1283_v63 = vadd.f32 %v8432_v6, %v1267_v22  ;;  %v8436_v26 = vld [vmem:[#allocation23_spill] sm:$0xff]  ;;  %v8439_v30 = vld [vmem:[#allocation24_spill] sm:$0xff]  ;;  %v8440_v0 = vld [vmem:[#allocation18_spill] sm:$0xff] }
 0x3ad   :  { %v5381_v11 = vpop.eup %5380  ;;  %v1264_v8 = vmul.f32 3.0, %v1248_v35  ;;  %v1259_v15 = vmul.f32 3.0, %v1243_v39  ;;  %v1271_v19 = vadd.f32 %v8433_v13, %v1255_v14  ;;  %v1285_v40 = vadd.f32 %v8434_v1, %v1269_v18  ;;  %v8443_v1 = vld [vmem:[#allocation26_spill] sm:$0xff] }
 0x3ae   :  { %v5383_v12 = vpop.eup %5382  ;;  %v1282_v28 = vadd.f32 %v8435_v20, %v1266_v7  ;;  %v1261_v52 = vmul.f32 3.0, %v1245_v49  ;;  %v1260_v3 = vmul.f32 3.0, %v1244_v34  ;;  %v1284_v27 = vadd.f32 %v8436_v26, %v1268_v48  ;;  %v8441_v34 = vld [vmem:[#allocation25_spill] sm:$0xff]  ;;  %v8444_v20 = vld [vmem:[#allocation27_spill] sm:$0xff] }
 0x3af   :  { %v5385_v45 = vpop.eup %5384  ;;  %v1279_v21 = vadd.f32 %v8437_v10, %v1263_v43  ;;  %v1274_v32 = vadd.f32 %v8438_v24, %v1258_v38  ;;  %v1281_v14 = vadd.f32 %v8439_v30, %v1265_v17  ;;  %v1278_v6 = vadd.f32 %v8440_v0, %v1262_v16 }
 0x3b0   :  { %v5387_v25 = vpop.eup %5386  ;;  %v1298_v39 = vadd.f32 %v5385_v45, %v1282_v28  ;;  %v1280_v13 = vadd.f32 %v8441_v34, %v1264_v8  ;;  %v1276_v28 = vadd.f32 %v8444_v20, %v1260_v3  ;;  %v1286_v3 = vadd.f32 %v6374_v51, %v1270_v4  ;;  %v8451_v4 = vld [vmem:[#allocation9_spill] sm:$0xff]  ;;  %v8457_v34 = vld [vmem:[#allocation12_spill] sm:$0xff] }
 0x3b1   :  { %v5389_v41 = vpop.eup %5388  ;;  %v1300_v7 = vadd.f32 %v5387_v25, %v1284_v27  ;;  %v1295_v49 = vadd.f32 %v5381_v11, %v1279_v21  ;;  %v1297_v43 = vadd.f32 %v5383_v12, %v1281_v14  ;;  %v1294_v38 = vadd.f32 %v5379_v37, %v1278_v6 }
 0x3b2   :  { %v5391_v2 = vpop.eup %5390  ;;  %v1299_v5 = vadd.f32 %v5389_v41, %v1283_v63  ;;  %v8442_v63 = vld [vmem:[#allocation17_spill] sm:$0xff]  ;;  %v1290_v8 = vadd.f32 %v6390_v31, %v1274_v32  ;;  %v1287_v12 = vadd.f32 %v6378_v29, %v1271_v19  ;;  %v5786_v31 = vld [vmem:[%s8104_s3] sm:$0xf]  ;;  %v8447_v51 = vmov 0.0   ;;  %v8448_v29 = vld [vmem:[#allocation8_spill] sm:$0xff] }
 0x3b3   :  { %v5393_v22 = vpop.eup %5392  ;;  %v1301_v35 = vadd.f32 %v5391_v2, %v1285_v40  ;;  %v1275_v41 = vadd.f32 %v8442_v63, %v1259_v15  ;;  %v1277_v40 = vadd.f32 %v8443_v1, %v1261_v52  ;;  %v8445_v15 = vld [vmem:[#allocation28_spill] sm:$0xff]  ;;  %v8446_v52 = vld [vmem:[#allocation29_spill] sm:$0xff]  ;;  %v6481_v20 = vmul.f32 0.25, %v8417_v23 }
 0x3b4   :  { %v5395_v18 = vpop.eup %5394  ;;  %1328 = vmatprep.subr.mxu0 %v1299_v5  ;;  %v1296_v17 = vadd.f32 %v5393_v22, %v1280_v13  ;;  %v1273_v2 = vadd.f32 %v8445_v15, %v1257_v46  ;;  %v1272_v26 = vadd.f32 %v8446_v52, %v1256_v36  ;;  %v8449_v36 = vld [vmem:[#allocation7_spill] sm:$0xff]  ;;  %v8450_v46 = vld [vmem:[#allocation10_spill] sm:$0xff] }
 0x3b5   :  { %v5397_v48 = vpop.eup %5396  ;;  %1399 = vmatprep.subr.mxu1 %v1301_v35  ;;  %1329 = vmatpush1.msra.mxu0 %v1298_v39  ;;  %v1291_v16 = vadd.f32 %v5377_v33, %v1275_v41  ;;  %v1293_v11 = vadd.f32 %v5395_v18, %v1277_v40  ;;  %v8456_v18 = vld [vmem:[#allocation11_spill] sm:$0xff]  ;;  %8461 = vst [vmem:[#allocation37_spill] sm:$0xff] %v6481_v20 }
 0x3b6   :  { %v5399_v45 = vpop.eup %5398  ;;  %1400 = vmatpush1.msra.mxu1 %v1300_v7  ;;  %1330 = vmatprep.subr.mxu0 %v1295_v49  ;;  %v1292_v37 = vadd.f32 %v5397_v48, %v1276_v28  ;;  %v6473_v48 = vmul.f32 0.25, %v8416_v9  ;;  %v8462_v28 = vld [vmem:[#allocation30_spill] sm:$0xff] }
 0x3b7   :  { %v5401_v25 = vpop.eup %5400  ;;  %1401 = vmatprep.subr.mxu1 %v1297_v43  ;;  %1331 = vmatpush1.msra.mxu0 %v1294_v38  ;;  %v1289_v33 = vadd.f32 %v5399_v45, %v1273_v2 }
 0x3b8   :  { %1402 = vmatpush1.msra.mxu1 %v1296_v17  ;;  %1332 = vmatprep.subr.mxu0 %v1291_v16  ;;  %v1288_v27 = vadd.f32 %v5401_v25, %v1272_v26  ;;  %8458 = vst [vmem:[#allocation36_spill] sm:$0xff] %v6473_v48  ;;  %v6484_v25 = vmul.f32 0.25, %v8462_v28 }
 0x3b9   :  { %1403 = vmatprep.subr.mxu1 %v1293_v11  ;;  %1333 = vmatpush1.msra.mxu0 %v1290_v8 }
 0x3ba   :  { %1404 = vmatpush1.msra.mxu1 %v1292_v37  ;;  %1334 = vmatprep.subr.mxu0 %v1287_v12  ;;  %8463 = vst [vmem:[#allocation45_spill] sm:$0xff] %v6484_v25 }
 0x3bb   :  { %1405 = vmatprep.subr.mxu1 %v1289_v33  ;;  %1335 = vmatpush1.msra.mxu0 %v1286_v3 }
 0x3bc   :  { %1406 = vmatpush1.msra.mxu1 %v1288_v27  ;;  %5139 = vmatmul.mubr.msk.f32.vlgmr.msra.gmra.mxu0 %vm479_vm2, %v5786_v31 }
 0x3bd   :  { %5140 = vmatmul.mubr.msk.f32.vlgmr.msra.gmra.mxu1 %vm479_vm2, %v5786_v31  ;;  %1483 = vmatprep.subr.mxu0 %v1299_v5 }
 0x3be   :  { %1572 = vmatprep.subr.mxu1 %v1301_v35  ;;  %1484 = vmatpush1.msra.mxu0 %v1298_v39 }
 0x3bf   :  { %1573 = vmatpush1.msra.mxu1 %v1300_v7  ;;  %1485 = vmatprep.subr.mxu0 %v1295_v49 }
 0x3c0   :  { %1574 = vmatprep.subr.mxu1 %v1297_v43  ;;  %1486 = vmatpush1.msra.mxu0 %v1294_v38  ;;  %v8459_v43 = vld [vmem:[#allocation13_spill] sm:$0xff] }
 0x3c1   :  { %1575 = vmatpush1.msra.mxu1 %v1296_v17  ;;  %1487 = vmatprep.subr.mxu0 %v1291_v16 }
 0x3c2   :  { %1576 = vmatprep.subr.mxu1 %v1293_v11  ;;  %1488 = vmatpush1.msra.mxu0 %v1290_v8  ;;  %v6487_v8 = vmul.f32 0.25, %v8422_v62 }
 0x3c3   :  { %1577 = vmatpush1.msra.mxu1 %v1292_v37  ;;  %1489 = vmatprep.subr.mxu0 %v1287_v12 }
 0x3c4   :  { %1578 = vmatprep.subr.mxu1 %v1289_v33  ;;  %1490 = vmatpush1.msra.mxu0 %v1286_v3  ;;  %8464 = vst [vmem:[#allocation14_spill] sm:$0xff] %v6487_v8 }
 0x3c5   :  { %1523 = vmatprep.mubr.f32.mxu0 %v8447_v51  ;;  %1579 = vmatpush1.msra.mxu1 %v1288_v27 }
 0x3c6   :  { %1612 = vmatprep.mubr.f32.mxu1 %v8447_v51  ;;  %5141 = vmatmul.mubr.msk.f32.vlgmr.msra.gmra.mxu0 %vm479_vm2, %v8448_v29 }
 0x3c7   :  { %5145 = vmatmul.mubr.msk.f32.vlgmr.msra.gmra.mxu1 %vm479_vm2, %v8448_v29  ;;  %1529 = vmatprep.mubr.f32.mxu0 %v8447_v51 }
 0x3c8   :  { %1618 = vmatprep.mubr.f32.mxu1 %v8447_v51 }
 0x3ca   :  { %5142 = vmatmul.mubr.msk.f32.gmra.mxu0 %vm479_vm2, %v8449_v36 }
 0x3cb   :  { %5146 = vmatmul.mubr.msk.f32.gmra.mxu1 %vm479_vm2, %v8449_v36  ;;  %1535 = vmatprep.mubr.f32.mxu0 %v8447_v51 }
 0x3cc   :  { %1624 = vmatprep.mubr.f32.mxu1 %v8447_v51 }
 0x3ce   :  { %5143 = vmatmul.mubr.msk.f32.gmra.mxu0 %vm479_vm2, %v8450_v46 }
 0x3cf   :  { %5147 = vmatmul.mubr.msk.f32.gmra.mxu1 %vm479_vm2, %v8450_v46  ;;  %1541 = vmatprep.mubr.f32.mxu0 %v8447_v51 }
 0x3d0   :  { %1630 = vmatprep.mubr.f32.mxu1 %v8447_v51 }
 0x3d2   :  { %5144 = vmatmul.mubr.msk.f32.gmra.mxu0 %vm479_vm2, %v8451_v4 }
 0x3d3   :  { %5148 = vmatmul.mubr.msk.f32.gmra.mxu1 %vm479_vm2, %v8451_v4  ;;  %1769 = vmatprep.mubr.f32.mxu0 %v8447_v51 }
 0x3d4   :  { %1858 = vmatprep.mubr.f32.mxu1 %v8447_v51 }
 0x47c   :  { %v6462_v19 = vpop.f32.mrf.mxu0 }
 0x47d   :  { %8452 = vst [vmem:[#allocation35_spill] sm:$0xff] %v6462_v19  ;;  %v6464_v5 = vpop.f32.mrf.mxu1 }
 0x47e   :  { %8453 = vst [vmem:[#allocation43_spill] sm:$0xff] %v6464_v5  ;;  %v6466_v10 = vpop.f32.mrf.mxu0 }
 0x47f   :  { %8454 = vst [vmem:[#allocation34_spill] sm:$0xff] %v6466_v10  ;;  %v6468_v21 = vpop.f32.mrf.mxu1 }
 0x480   :  { %8455 = vst [vmem:[#allocation42_spill] sm:$0xff] %v6468_v21 }
 0x486   :  { %v1525_v24 = vpop.f32.mrf.mxu0 }
 0x487   :  { %v1614_v32 = vpop.f32.mrf.mxu1  ;;  %v1637_v22 = vmul.f32 0.03125, %v1525_v24 }
 0x488   :  { %v1527_v35 = vpop.f32.mrf.mxu0  ;;  %v1639_v15 = vmul.f32 0.03125, %v1614_v32 }
 0x489   :  { %v1638_v39 = vmul.f32 0.03125, %v1527_v35  ;;  %v1616_v30 = vpop.f32.mrf.mxu1  ;;  %v1653_v7 = vadd.f32 %v1637_v22, %v8456_v18 }
 0x48a   :  { %v1531_v14 = vpop.f32.mrf.mxu0  ;;  %v1640_v52 = vmul.f32 0.03125, %v1616_v30 }
 0x48b   :  { %v1641_v0 = vmul.f32 0.03125, %v1531_v14  ;;  %v1620_v6 = vpop.f32.mrf.mxu1  ;;  %v1654_v13 = vadd.f32 %v1638_v39, %v8457_v34  ;;  %v6478_v16 = vadd.f32 %v6473_v48, %v1653_v7 }
 0x48c   :  { %v1533_v49 = vpop.f32.mrf.mxu0  ;;  %v1643_v33 = vmul.f32 0.03125, %v1620_v6 }
 0x48d   :  { %v1642_v63 = vmul.f32 0.03125, %v1533_v49  ;;  %v1622_v41 = vpop.f32.mrf.mxu1  ;;  %v1657_v38 = vadd.f32 %v1641_v0, %v8459_v43  ;;  %8460 = vst [vmem:[#allocation44_spill] sm:$0xff] %v6478_v16  ;;  %v6490_v2 = vadd.f32 %v6473_v48, %v1654_v13  ;;  %5402 = vtanh.f32 %v6478_v16 }
 0x48e   :  { %v1537_v1 = vpop.f32.mrf.mxu0 }
 0x48f   :  { %v1658_v40 = vadd.f32 %v1642_v63, %v5952_v42  ;;  %v1645_v45 = vmul.f32 0.03125, %v1537_v1  ;;  %v1626_v17 = vpop.f32.mrf.mxu1  ;;  %8465 = vst [vmem:[#allocation21_spill] sm:$0xff] %v6490_v2  ;;  %v6494_v26 = vadd.f32 %v6481_v20, %v1657_v38  ;;  %5404 = vtanh.f32 %v6490_v2 }
 0x490   :  { %v1539_v11 = vpop.f32.mrf.mxu0  ;;  %v1647_v24 = vmul.f32 0.03125, %v1626_v17  ;;  %v1656_v38 = vadd.f32 %v1640_v52, %v5984_v60 }
 0x491   :  { %v1661_v42 = vadd.f32 %v1645_v45, %v5955_v44  ;;  %v1646_v37 = vmul.f32 0.03125, %v1539_v11  ;;  %v1628_v12 = vpop.f32.mrf.mxu1  ;;  %8466 = vst [vmem:[#allocation15_spill] sm:$0xff] %v6494_v26  ;;  %v6497_v31 = vadd.f32 %v6481_v20, %v1658_v40  ;;  %v1644_v44 = vmul.f32 0.03125, %v1622_v41 }
 0x492   :  { %v1648_v3 = vmul.f32 0.03125, %v1628_v12  ;;  %v1543_v27 = vpop.f32.mrf.mxu0  ;;  %5406 = vtanh.f32 %v6494_v26  ;;  %v1663_v13 = vadd.f32 %v1647_v24, %v5975_v57  ;;  %v6551_v40 = vadd.f32 %v6473_v48, %v1656_v38 }
 0x493   :  { %v1662_v32 = vadd.f32 %v1646_v37, %v5958_v47  ;;  %v1649_v22 = vmul.f32 0.03125, %v1543_v27  ;;  %v1632_v35 = vpop.f32.mrf.mxu1  ;;  %v6502_v39 = vadd.f32 %v6484_v25, %v1661_v42  ;;  %5408 = vtanh.f32 %v6497_v31 }
 0x494   :  { %v1651_v30 = vmul.f32 0.03125, %v1632_v35  ;;  %v1545_v14 = vpop.f32.mrf.mxu0  ;;  %v1664_v47 = vadd.f32 %v1648_v3, %v5972_v56  ;;  %v1659_v56 = vadd.f32 %v1643_v33, %v5981_v59  ;;  %v6539_v59 = vadd.f32 %v6484_v25, %v1663_v13 }
 0x495   :  { %v6506_v0 = vadd.f32 %v6484_v25, %v1662_v32  ;;  %v1665_v6 = vadd.f32 %v1649_v22, %v5962_v50  ;;  %v1650_v18 = vmul.f32 0.03125, %v1545_v14  ;;  %v1634_v7 = vpop.f32.mrf.mxu1  ;;  %v1660_v50 = vadd.f32 %v1644_v44, %v5978_v58 }
 0x496   :  { %v1667_v49 = vadd.f32 %v1651_v30, %v5966_v53  ;;  %v1652_v34 = vmul.f32 0.03125, %v1634_v7  ;;  %5410 = vtanh.f32 %v6502_v39  ;;  %v6547_v60 = vadd.f32 %v6481_v20, %v1659_v56 }
 0x497   :  { %v6515_v63 = vadd.f32 %v6487_v8, %v1665_v6  ;;  %v1666_v41 = vadd.f32 %v1650_v18, %v5968_v54  ;;  %5412 = vtanh.f32 %v6506_v0  ;;  %v6531_v54 = vadd.f32 %v6484_v25, %v1664_v47 }
 0x498   :  { %v1668_v43 = vadd.f32 %v1652_v34, %v5970_v55  ;;  %v6524_v53 = vadd.f32 %v6487_v8, %v1667_v49  ;;  %v1655_v55 = vadd.f32 %v1639_v15, %v5987_v61  ;;  %v6543_v1 = vadd.f32 %v6481_v20, %v1660_v50 }
 0x499   :  { %v6527_v57 = vadd.f32 %v6487_v8, %v1666_v41  ;;  %5414 = vtanh.f32 %v6515_v63 }
 0x49a   :  { %v6535_v58 = vadd.f32 %v6487_v8, %v1668_v43  ;;  %v6555_v61 = vadd.f32 %v6473_v48, %v1655_v55  ;;  %v6559_v45 = vpop.eup %5402 }
 0x49b   :  { %5416 = vtanh.f32 %v6527_v57  ;;  %8467 = vst [vmem:[#allocation22_spill] sm:$0xff] %v6559_v45 }
 0x49c   :  { %5418 = vtanh.f32 %v6535_v58  ;;  %v6562_v17 = vpop.eup %5404 }
 0x49d   :  { %5420 = vtanh.f32 %v6524_v53  ;;  %8468 = vst [vmem:[#allocation20_spill] sm:$0xff] %v6562_v17 }
 0x49e   :  { %5422 = vtanh.f32 %v6531_v54 }
 0x49f   :  { %5424 = vtanh.f32 %v6539_v59  ;;  %v6565_v11 = vpop.eup %5406 }
 0x4a0   :  { %5426 = vtanh.f32 %v6543_v1  ;;  %8469 = vst [vmem:[#allocation23_spill] sm:$0xff] %v6565_v11  ;;  %v6568_v15 = vpop.eup %5408 }
 0x4a1   :  { %5428 = vtanh.f32 %v6547_v60  ;;  %8470 = vst [vmem:[#allocation19_spill] sm:$0xff] %v6568_v15 }
 0x4a2   :  { %5430 = vtanh.f32 %v6551_v40 }
 0x4a3   :  { %5432 = vtanh.f32 %v6555_v61  ;;  %v6570_v42 = vpop.eup %5410 }
 0x4a4   :  { %8471 = vst [vmem:[#allocation16_spill] sm:$0xff] %v6570_v42  ;;  %v6572_v37 = vpop.eup %5412 }
 0x4a5   :  { %8472 = vst [vmem:[#allocation24_spill] sm:$0xff] %v6572_v37 }
 0x4a6   :  { %v6574_v12 = vpop.eup %5414 }
 0x4a7   :  { %8473 = vst [vmem:[#allocation18_spill] sm:$0xff] %v6574_v12 }
 0x4a8   :  { %v6576_v52 = vpop.eup %5416 }
 0x4a9   :  { %8474 = vst [vmem:[#allocation25_spill] sm:$0xff] %v6576_v52  ;;  %v6578_v33 = vpop.eup %5418  ;;  %1729 = vmatprep.subr.mxu0 %v6576_v52 }
 0x4aa   :  { %8475 = vst [vmem:[#allocation17_spill] sm:$0xff] %v6578_v33  ;;  %v6581_v3 = vpop.eup %5420  ;;  %1818 = vmatprep.subr.mxu1 %v6578_v33  ;;  %1730 = vmatpush1.msra.mxu0 %v6574_v12 }
 0x4ab   :  { %8476 = vst [vmem:[#allocation26_spill] sm:$0xff] %v6581_v3  ;;  %v6585_v27 = vpop.eup %5422  ;;  %1819 = vmatpush1.msra.mxu1 %v6581_v3  ;;  %1731 = vmatprep.subr.mxu0 %v6572_v37 }
 0x4ac   :  { %8477 = vst [vmem:[#allocation27_spill] sm:$0xff] %v6585_v27  ;;  %v6589_v24 = vpop.eup %5424  ;;  %1820 = vmatprep.subr.mxu1 %v6585_v27  ;;  %1732 = vmatpush1.msra.mxu0 %v6570_v42 }
 0x4ad   :  { %8478 = vst [vmem:[#allocation28_spill] sm:$0xff] %v6589_v24  ;;  %v6593_v32 = vpop.eup %5426  ;;  %1821 = vmatpush1.msra.mxu1 %v6589_v24  ;;  %1733 = vmatprep.subr.mxu0 %v6568_v15 }
 0x4ae   :  { %8479 = vst [vmem:[#allocation29_spill] sm:$0xff] %v6593_v32  ;;  %v6597_v22 = vpop.eup %5428  ;;  %1822 = vmatprep.subr.mxu1 %v6593_v32  ;;  %1734 = vmatpush1.msra.mxu0 %v6565_v11 }
 0x4af   :  { %8480 = vst [vmem:[#allocation11_spill] sm:$0xff] %v6597_v22  ;;  %v6601_v35 = vpop.eup %5430  ;;  %1823 = vmatpush1.msra.mxu1 %v6597_v22  ;;  %1735 = vmatprep.subr.mxu0 %v6562_v17 }
 0x4b0   :  { %8481 = vst [vmem:[#allocation12_spill] sm:$0xff] %v6601_v35  ;;  %v6605_v44 = vpop.eup %5432  ;;  %1824 = vmatprep.subr.mxu1 %v6601_v35  ;;  %1736 = vmatpush1.msra.mxu0 %v6559_v45 }
 0x4b1   :  { %8482 = vst [vmem:[#allocation13_spill] sm:$0xff] %v6605_v44  ;;  %1825 = vmatpush1.msra.mxu1 %v6605_v44  ;;  %5149 = vmatmul.mubr.msk.f32.vlgmr.msra.gmra.mxu0 %vm479_vm2, %v8448_v29 }
 0x4b2   :  { %5153 = vmatmul.mubr.msk.f32.vlgmr.msra.gmra.mxu1 %vm479_vm2, %v8448_v29  ;;  %1775 = vmatprep.mubr.f32.mxu0 %v8447_v51 }
 0x4b3   :  { %1864 = vmatprep.mubr.f32.mxu1 %v8447_v51 }
 0x4b5   :  { %5150 = vmatmul.mubr.msk.f32.gmra.mxu0 %vm479_vm2, %v8449_v36 }
 0x4b6   :  { %5154 = vmatmul.mubr.msk.f32.gmra.mxu1 %vm479_vm2, %v8449_v36  ;;  %1781 = vmatprep.mubr.f32.mxu0 %v8447_v51 }
 0x4b7   :  { %1870 = vmatprep.mubr.f32.mxu1 %v8447_v51 }
 0x4b9   :  { %5151 = vmatmul.mubr.msk.f32.gmra.mxu0 %vm479_vm2, %v8450_v46 }
 0x4ba   :  { %5155 = vmatmul.mubr.msk.f32.gmra.mxu1 %vm479_vm2, %v8450_v46  ;;  %1787 = vmatprep.mubr.f32.mxu0 %v8447_v51 }
 0x4bb   :  { %1876 = vmatprep.mubr.f32.mxu1 %v8447_v51 }
 0x4bd   :  { %5152 = vmatmul.mubr.msk.f32.gmra.mxu0 %vm479_vm2, %v8451_v4 }
 0x4be   :  { %5156 = vmatmul.mubr.msk.f32.gmra.mxu1 %vm479_vm2, %v8451_v4  ;;  %2027 = vmatprep.mubr.f32.mxu0 %v8447_v51 }
 0x4bf   :  { %2116 = vmatprep.mubr.f32.mxu1 %v8447_v51 }
 0x571   :  { %v1771_v30 = vpop.f32.mrf.mxu0 }
 0x572   :  { %v1772_v14 = vadd.f32 %v1771_v30, %v8416_v9  ;;  %v1860_v6 = vpop.f32.mrf.mxu1 }
 0x573   :  { %v1773_v18 = vpop.f32.mrf.mxu0 }
 0x574   :  { %v1883_v7 = vmul.f32 0.083333336, %v1772_v14  ;;  %v1774_v47 = vadd.f32 %v1773_v18, %v8416_v9  ;;  %v1862_v49 = vpop.f32.mrf.mxu1 }
 0x575   :  { %v1777_v34 = vpop.f32.mrf.mxu0 }
 0x576   :  { %v1884_v13 = vmul.f32 0.083333336, %v1774_v47  ;;  %v1778_v41 = vadd.f32 %v1777_v34, %v8417_v23  ;;  %v1866_v50 = vpop.f32.mrf.mxu1  ;;  %v1899_v56 = vadd.f32 %v1883_v7, %v6478_v16  ;;  %v1861_v47 = vadd.f32 %v1860_v6, %v8416_v9 }
 0x577   :  { %v1779_v43 = vpop.f32.mrf.mxu0 }
 0x578   :  { %v1887_v38 = vmul.f32 0.083333336, %v1778_v41  ;;  %v1780_v55 = vadd.f32 %v1779_v43, %v8417_v23  ;;  %v1868_v8 = vpop.f32.mrf.mxu1  ;;  %v1900_v30 = vadd.f32 %v1884_v13, %v6490_v2  ;;  %5434 = vtanh.f32 %v1899_v56 }
 0x579   :  { %v1783_v25 = vpop.f32.mrf.mxu0  ;;  %v1869_v14 = vadd.f32 %v1868_v8, %v8417_v23  ;;  %v1863_v8 = vadd.f32 %v1862_v49, %v8416_v9 }
 0x57a   :  { %v1888_v20 = vmul.f32 0.083333336, %v1780_v55  ;;  %v1784_v18 = vadd.f32 %v1783_v25, %v8462_v28  ;;  %v1872_v48 = vpop.f32.mrf.mxu1  ;;  %v1903_v34 = vadd.f32 %v1887_v38, %v6494_v26  ;;  %5436 = vtanh.f32 %v1900_v30 }
 0x57b   :  { %v1873_v21 = vadd.f32 %v1872_v48, %v8462_v28  ;;  %v1785_v7 = vpop.f32.mrf.mxu0  ;;  %v1867_v25 = vadd.f32 %v1866_v50, %v8417_v23  ;;  %v1890_v5 = vmul.f32 0.083333336, %v1869_v14  ;;  %v1936_v23 = vmul.f32 0.33333334, %v6568_v15 }
 0x57c   :  { %v1904_v41 = vadd.f32 %v1888_v20, %v6497_v31  ;;  %v1891_v43 = vmul.f32 0.083333336, %v1784_v18  ;;  %v1786_v13 = vadd.f32 %v1785_v7, %v8462_v28  ;;  %v1874_v10 = vpop.f32.mrf.mxu1  ;;  %5438 = vtanh.f32 %v1903_v34 }
 0x57d   :  { %v1875_v55 = vadd.f32 %v1874_v10, %v8462_v28  ;;  %v1789_v6 = vpop.f32.mrf.mxu0  ;;  %v1893_v20 = vmul.f32 0.083333336, %v1873_v21  ;;  %v1937_v15 = vmul.f32 0.33333334, %v6597_v22 }
 0x57e   :  { %v1907_v38 = vadd.f32 %v1891_v43, %v6502_v39  ;;  %v1892_v48 = vmul.f32 0.083333336, %v1786_v13  ;;  %v1790_v56 = vadd.f32 %v1789_v6, %v8422_v62  ;;  %v1878_v19 = vpop.f32.mrf.mxu1  ;;  %5440 = vtanh.f32 %v1904_v41 }
 0x57f   :  { %v1894_v18 = vmul.f32 0.083333336, %v1875_v55  ;;  %v1879_v7 = vadd.f32 %v1878_v19, %v8422_v62  ;;  %v1791_v30 = vpop.f32.mrf.mxu0  ;;  %v1889_v6 = vmul.f32 0.083333336, %v1867_v25  ;;  %v1886_v19 = vmul.f32 0.083333336, %v1863_v8 }
 0x580   :  { %v1908_v49 = vadd.f32 %v1892_v48, %v6506_v0  ;;  %v1895_v50 = vmul.f32 0.083333336, %v1790_v56  ;;  %v1792_v10 = vadd.f32 %v1791_v30, %v8422_v62  ;;  %v1880_v28 = vpop.f32.mrf.mxu1  ;;  %5442 = vtanh.f32 %v1907_v38 }
 0x581   :  { %v1910_v14 = vadd.f32 %v1894_v18, %v6531_v54  ;;  %v1897_v43 = vmul.f32 0.083333336, %v1879_v7  ;;  %v1881_v13 = vadd.f32 %v1880_v28, %v8422_v62  ;;  %v1885_v48 = vmul.f32 0.083333336, %v1861_v47 }
 0x582   :  { %5444 = vtanh.f32 %v1908_v49  ;;  %v1911_v21 = vadd.f32 %v1895_v50, %v6515_v63  ;;  %v1896_v34 = vmul.f32 0.083333336, %v1792_v10  ;;  %v1909_v56 = vadd.f32 %v1893_v20, %v6539_v59 }
 0x583   :  { %5446 = vtanh.f32 %v1910_v14  ;;  %v1913_v41 = vadd.f32 %v1897_v43, %v6524_v53  ;;  %v1898_v55 = vmul.f32 0.083333336, %v1881_v13  ;;  %v1906_v18 = vadd.f32 %v1890_v5, %v6543_v1 }
 0x584   :  { %5448 = vtanh.f32 %v1911_v21  ;;  %v1912_v38 = vadd.f32 %v1896_v34, %v6527_v57  ;;  %v1905_v25 = vadd.f32 %v1889_v6, %v6547_v60  ;;  %v1902_v8 = vadd.f32 %v1886_v19, %v6551_v40 }
 0x585   :  { %5450 = vtanh.f32 %v1913_v41  ;;  %v1914_v28 = vadd.f32 %v1898_v55, %v6535_v58  ;;  %v1901_v7 = vadd.f32 %v1885_v48, %v6555_v61  ;;  %v6666_v47 = vpop.eup %5434  ;;  %v1944_v13 = vmul.f32 0.33333334, %v6576_v52 }
 0x586   :  { %5452 = vtanh.f32 %v1912_v38  ;;  %v1946_v21 = vmul.f32 0.33333334, %v6578_v33  ;;  %v1943_v34 = vmul.f32 0.33333334, %v6574_v12  ;;  %v1945_v55 = vmul.f32 0.33333334, %v6581_v3 }
 0x587   :  { %5454 = vtanh.f32 %v1914_v28  ;;  %v6668_v20 = vpop.eup %5436  ;;  %v1940_v48 = vmul.f32 0.33333334, %v6572_v37  ;;  %v1942_v28 = vmul.f32 0.33333334, %v6585_v27  ;;  %v1941_v62 = vmul.f32 0.33333334, %v6589_v24 }
 0x588   :  { %5456 = vtanh.f32 %v1909_v56 }
 0x589   :  { %5458 = vtanh.f32 %v1906_v18  ;;  %v6670_v5 = vpop.eup %5438 }
 0x58a   :  { %5460 = vtanh.f32 %v1905_v25  ;;  %v1939_v25 = vmul.f32 0.33333334, %v6570_v42  ;;  %v1938_v42 = vmul.f32 0.33333334, %v6593_v32  ;;  %v1934_v32 = vmul.f32 0.33333334, %v6601_v35 }
 0x58b   :  { %5462 = vtanh.f32 %v1902_v8  ;;  %v6672_v30 = vpop.eup %5440 }
 0x58c   :  { %5464 = vtanh.f32 %v1901_v7  ;;  %8483 = vst [vmem:[#allocation46_spill] sm:$0xff] %v6672_v30 }
 0x58d   :  { %v6674_v49 = vpop.eup %5442 }
 0x58f   :  { %v6676_v50 = vpop.eup %5444 }
 0x590   :  { %v6678_v10 = vpop.eup %5446 }
 0x591   :  { %v6680_v14 = vpop.eup %5448 }
 0x592   :  { %v6682_v43 = vpop.eup %5450  ;;  %v1959_v18 = vsub.f32 %v6680_v14, %v1943_v34  ;;  %v1955_v34 = vsub.f32 %v6674_v49, %v1939_v25 }
 0x593   :  { %v6685_v6 = vpop.eup %5452  ;;  %v1961_v7 = vsub.f32 %v6682_v43, %v1945_v55 }
 0x594   :  { %v6689_v19 = vpop.eup %5454  ;;  %v1960_v41 = vsub.f32 %v6685_v6, %v1944_v13  ;;  %v1956_v13 = vsub.f32 %v6676_v50, %v1940_v48  ;;  %v1952_v48 = vsub.f32 %v6672_v30, %v1936_v23 }
 0x595   :  { %v6694_v56 = vpop.eup %5456  ;;  %v1962_v38 = vsub.f32 %v6689_v19, %v1946_v21  ;;  %v1958_v21 = vsub.f32 %v6678_v10, %v1942_v28 }
 0x596   :  { %8484 = vst [vmem:[#allocation47_spill] sm:$0xff] %v6694_v56  ;;  %v6700_v8 = vpop.eup %5458  ;;  %1987 = vmatprep.subr.mxu0 %v1960_v41  ;;  %v1935_v41 = vmul.f32 0.33333334, %v6565_v11  ;;  %v1957_v55 = vsub.f32 %v6694_v56, %v1941_v62 }
 0x597   :  { %8485 = vst [vmem:[#allocation48_spill] sm:$0xff] %v6700_v8  ;;  %v6706_v9 = vpop.eup %5460  ;;  %2076 = vmatprep.subr.mxu1 %v1962_v38  ;;  %1988 = vmatpush1.msra.mxu0 %v1959_v18  ;;  %v1932_v38 = vmul.f32 0.33333334, %v6562_v17  ;;  %v1954_v28 = vsub.f32 %v6700_v8, %v1938_v42 }
 0x598   :  { %8486 = vst [vmem:[#allocation49_spill] sm:$0xff] %v6706_v9  ;;  %v6712_v27 = vpop.eup %5462  ;;  %2077 = vmatpush1.msra.mxu1 %v1961_v7  ;;  %1989 = vmatprep.subr.mxu0 %v1956_v13  ;;  %v1951_v25 = vsub.f32 %v6670_v5, %v1935_v41  ;;  %v1931_v7 = vmul.f32 0.33333334, %v6559_v45  ;;  %v1953_v23 = vsub.f32 %v6706_v9, %v1937_v15  ;;  %v1933_v13 = vmul.f32 0.33333334, %v6605_v44 }
 0x599   :  { %8487 = vst [vmem:[#allocation50_spill] sm:$0xff] %v6712_v27  ;;  %v6718_v18 = vpop.eup %5464  ;;  %2078 = vmatprep.subr.mxu1 %v1958_v21  ;;  %1990 = vmatpush1.msra.mxu0 %v1955_v34  ;;  %v1948_v62 = vsub.f32 %v6668_v20, %v1932_v38  ;;  %v1950_v21 = vsub.f32 %v6712_v27, %v1934_v32  ;;  %v8489_v32 = vld [vmem:[#allocation38_spill] sm:$0xff] }
 0x59a   :  { %8488 = vst [vmem:[#allocation51_spill] sm:$0xff] %v6718_v18  ;;  %2079 = vmatpush1.msra.mxu1 %v1957_v55  ;;  %1991 = vmatprep.subr.mxu0 %v1952_v48  ;;  %v1947_v42 = vsub.f32 %v6666_v47, %v1931_v7  ;;  %v1949_v34 = vsub.f32 %v6718_v18, %v1933_v13 }
 0x59b   :  { %2080 = vmatprep.subr.mxu1 %v1954_v28  ;;  %1992 = vmatpush1.msra.mxu0 %v1951_v25 }
 0x59c   :  { %2081 = vmatpush1.msra.mxu1 %v1953_v23  ;;  %1993 = vmatprep.subr.mxu0 %v1948_v62  ;;  %v8490_v62 = vld [vmem:[#allocation39_spill] sm:$0xff] }
 0x59d   :  { %2082 = vmatprep.subr.mxu1 %v1950_v21  ;;  %1994 = vmatpush1.msra.mxu0 %v1947_v42 }
 0x59e   :  { %2083 = vmatpush1.msra.mxu1 %v1949_v34  ;;  %5157 = vmatmul.mubr.msk.f32.vlgmr.msra.gmra.mxu0 %vm479_vm2, %v8448_v29 }
 0x59f   :  { %5161 = vmatmul.mubr.msk.f32.vlgmr.msra.gmra.mxu1 %vm479_vm2, %v8448_v29  ;;  %2033 = vmatprep.mubr.f32.mxu0 %v8447_v51 }
 0x5a0   :  { %2122 = vmatprep.mubr.f32.mxu1 %v8447_v51 }
 0x5a2   :  { %5158 = vmatmul.mubr.msk.f32.gmra.mxu0 %vm479_vm2, %v8449_v36 }
 0x5a3   :  { %5162 = vmatmul.mubr.msk.f32.gmra.mxu1 %vm479_vm2, %v8449_v36  ;;  %2039 = vmatprep.mubr.f32.mxu0 %v8447_v51 }
 0x5a4   :  { %2128 = vmatprep.mubr.f32.mxu1 %v8447_v51 }
 0x5a6   :  { %5159 = vmatmul.mubr.msk.f32.gmra.mxu0 %vm479_vm2, %v8450_v46 }
 0x5a7   :  { %5163 = vmatmul.mubr.msk.f32.gmra.mxu1 %vm479_vm2, %v8450_v46  ;;  %2045 = vmatprep.mubr.f32.mxu0 %v8447_v51 }
 0x5a8   :  { %2134 = vmatprep.mubr.f32.mxu1 %v8447_v51 }
 0x5aa   :  { %5160 = vmatmul.mubr.msk.f32.gmra.mxu0 %vm479_vm2, %v8451_v4 }
 0x5ab   :  { %5164 = vmatmul.mubr.msk.f32.gmra.mxu1 %vm479_vm2, %v8451_v4  ;;  %2285 = vmatprep.mubr.f32.mxu0 %v8447_v51 }
 0x5ac   :  { %2374 = vmatprep.mubr.f32.mxu1 %v8447_v51 }
 0x65e   :  { %v2029_v15 = vpop.f32.mrf.mxu0 }
 0x65f   :  { %v2030_v41 = vadd.f32 %v2029_v15, %v8489_v32  ;;  %v2118_v55 = vpop.f32.mrf.mxu1 }
 0x660   :  { %v2031_v48 = vpop.f32.mrf.mxu0 }
 0x661   :  { %v2141_v38 = vmul.f32 0.25, %v2030_v41  ;;  %v2032_v28 = vadd.f32 %v2031_v48, %v8489_v32  ;;  %v2120_v25 = vpop.f32.mrf.mxu1  ;;  %v8491_v48 = vld [vmem:[#allocation40_spill] sm:$0xff] }
 0x662   :  { %v2035_v7 = vpop.f32.mrf.mxu0 }
 0x663   :  { %v2142_v23 = vmul.f32 0.25, %v2032_v28  ;;  %v2036_v13 = vadd.f32 %v2035_v7, %v8490_v62  ;;  %v2124_v21 = vpop.f32.mrf.mxu1  ;;  %v2157_v34 = vadd.f32 %v2141_v38, %v6478_v16  ;;  %v2119_v28 = vadd.f32 %v2118_v55, %v8489_v32 }
 0x664   :  { %v2037_v42 = vpop.f32.mrf.mxu0 }
 0x665   :  { %v2145_v4 = vmul.f32 0.25, %v2036_v13  ;;  %v2038_v46 = vadd.f32 %v2037_v42, %v8490_v62  ;;  %v2126_v36 = vpop.f32.mrf.mxu1  ;;  %v2158_v15 = vadd.f32 %v2142_v23, %v6490_v2  ;;  %5466 = vtanh.f32 %v2157_v34 }
 0x666   :  { %v2041_v51 = vpop.f32.mrf.mxu0  ;;  %v2127_v41 = vadd.f32 %v2126_v36, %v8490_v62  ;;  %v2121_v36 = vadd.f32 %v2120_v25, %v8489_v32 }
 0x667   :  { %v2146_v29 = vmul.f32 0.25, %v2038_v46  ;;  %v2042_v44 = vadd.f32 %v2041_v51, %v8491_v48  ;;  %v2130_v18 = vpop.f32.mrf.mxu1  ;;  %v2161_v7 = vadd.f32 %v2145_v4, %v6494_v26  ;;  %5468 = vtanh.f32 %v2158_v15  ;;  %v8492_v26 = vld [vmem:[#allocation41_spill] sm:$0xff] }
 0x668   :  { %v2131_v35 = vadd.f32 %v2130_v18, %v8491_v48  ;;  %v2043_v38 = vpop.f32.mrf.mxu0  ;;  %v2125_v51 = vadd.f32 %v2124_v21, %v8490_v62  ;;  %v2148_v16 = vmul.f32 0.25, %v2127_v41 }
 0x669   :  { %v2162_v13 = vadd.f32 %v2146_v29, %v6497_v31  ;;  %v2149_v42 = vmul.f32 0.25, %v2042_v44  ;;  %v2044_v23 = vadd.f32 %v2043_v38, %v8491_v48  ;;  %v2132_v2 = vpop.f32.mrf.mxu1  ;;  %5470 = vtanh.f32 %v2161_v7 }
 0x66a   :  { %v2133_v46 = vadd.f32 %v2132_v2, %v8491_v48  ;;  %v2047_v55 = vpop.f32.mrf.mxu0  ;;  %v2151_v29 = vmul.f32 0.25, %v2131_v35 }
 0x66b   :  { %v2165_v4 = vadd.f32 %v2149_v42, %v6502_v39  ;;  %v2150_v18 = vmul.f32 0.25, %v2044_v23  ;;  %v2048_v34 = vadd.f32 %v2047_v55, %v8492_v26  ;;  %v2136_v27 = vpop.f32.mrf.mxu1  ;;  %5472 = vtanh.f32 %v2162_v13 }
 0x66c   :  { %v2152_v44 = vmul.f32 0.25, %v2133_v46  ;;  %v2137_v38 = vadd.f32 %v2136_v27, %v8492_v26  ;;  %v2049_v15 = vpop.f32.mrf.mxu0  ;;  %v2147_v55 = vmul.f32 0.25, %v2125_v51  ;;  %v2144_v27 = vmul.f32 0.25, %v2121_v36 }
 0x66d   :  { %v2166_v25 = vadd.f32 %v2150_v18, %v6506_v0  ;;  %v2153_v21 = vmul.f32 0.25, %v2048_v34  ;;  %v2050_v2 = vadd.f32 %v2049_v15, %v8492_v26  ;;  %v2138_v48 = vpop.f32.mrf.mxu1  ;;  %5474 = vtanh.f32 %v2165_v4 }
 0x66e   :  { %v2168_v41 = vadd.f32 %v2152_v44, %v6531_v54  ;;  %v2155_v42 = vmul.f32 0.25, %v2137_v38  ;;  %v2139_v23 = vadd.f32 %v2138_v48, %v8492_v26  ;;  %v2143_v18 = vmul.f32 0.25, %v2119_v28 }
 0x66f   :  { %5476 = vtanh.f32 %v2166_v25  ;;  %v2169_v35 = vadd.f32 %v2153_v21, %v6515_v63  ;;  %v2154_v7 = vmul.f32 0.25, %v2050_v2  ;;  %v2167_v34 = vadd.f32 %v2151_v29, %v6539_v59 }
 0x670   :  { %5478 = vtanh.f32 %v2168_v41  ;;  %v2171_v13 = vadd.f32 %v2155_v42, %v6524_v53  ;;  %v2156_v46 = vmul.f32 0.25, %v2139_v23  ;;  %v2164_v44 = vadd.f32 %v2148_v16, %v6543_v1 }
 0x671   :  { %5480 = vtanh.f32 %v2169_v35  ;;  %v2170_v4 = vadd.f32 %v2154_v7, %v6527_v57  ;;  %v2163_v51 = vadd.f32 %v2147_v55, %v6547_v60  ;;  %v2160_v36 = vadd.f32 %v2144_v27, %v6551_v40 }
 0x672   :  { %5482 = vtanh.f32 %v2171_v13  ;;  %v2172_v48 = vadd.f32 %v2156_v46, %v6535_v58  ;;  %v2159_v38 = vadd.f32 %v2143_v18, %v6555_v61  ;;  %v6786_v28 = vpop.eup %5466  ;;  %v2202_v23 = vsub.f32 %v6576_v52, %v6685_v6 }
 0x673   :  { %5484 = vtanh.f32 %v2170_v4  ;;  %v2204_v35 = vsub.f32 %v6578_v33, %v6689_v19  ;;  %v2201_v7 = vsub.f32 %v6574_v12, %v6680_v14  ;;  %v2190_v27 = vsub.f32 %v6562_v17, %v6668_v20 }
 0x674   :  { %5486 = vtanh.f32 %v2172_v48  ;;  %v6788_v29 = vpop.eup %5468  ;;  %v2189_v13 = vsub.f32 %v6559_v45, %v6666_v47  ;;  %v2198_v4 = vsub.f32 %v6572_v37, %v6676_v50 }
 0x675   :  { %5488 = vtanh.f32 %v2167_v34  ;;  %v2203_v34 = vsub.f32 %v6581_v3, %v6682_v43 }
 0x676   :  { %5490 = vtanh.f32 %v2164_v44  ;;  %v6790_v16 = vpop.eup %5470  ;;  %v2193_v44 = vsub.f32 %v6565_v11, %v6670_v5  ;;  %v2199_v11 = vsub.f32 %v6589_v24, %v6694_v56 }
 0x677   :  { %5492 = vtanh.f32 %v2163_v51 }
 0x678   :  { %5494 = vtanh.f32 %v2160_v36  ;;  %v6792_v15 = vpop.eup %5472 }
 0x679   :  { %5496 = vtanh.f32 %v2159_v38  ;;  %8493 = vst [vmem:[#allocation52_spill] sm:$0xff] %v6792_v15  ;;  %v8495_v38 = vld [vmem:[#allocation27_spill] sm:$0xff] }
 0x67a   :  { %v6794_v25 = vpop.eup %5474  ;;  %v2200_v26 = vsub.f32 %v8495_v38, %v6678_v10 }
 0x67c   :  { %v6796_v21 = vpop.eup %5476 }
 0x67d   :  { %v6798_v2 = vpop.eup %5478  ;;  %v2214_v3 = vadd.f32 %v6796_v21, %v2198_v4 }
 0x67e   :  { %v6800_v41 = vpop.eup %5480  ;;  %v2216_v38 = vadd.f32 %v6798_v2, %v2200_v26 }
 0x67f   :  { %v6802_v42 = vpop.eup %5482  ;;  %v2217_v36 = vadd.f32 %v6800_v41, %v2201_v7 }
 0x680   :  { %v6806_v55 = vpop.eup %5484  ;;  %v2219_v37 = vadd.f32 %v6802_v42, %v2203_v34 }
 0x681   :  { %v6816_v46 = vpop.eup %5486  ;;  %v2218_v18 = vadd.f32 %v6806_v55, %v2202_v23  ;;  %v8496_v23 = vld [vmem:[#allocation16_spill] sm:$0xff] }
 0x682   :  { %v6825_v48 = vpop.eup %5488  ;;  %v2220_v51 = vadd.f32 %v6816_v46, %v2204_v35  ;;  %v2197_v62 = vsub.f32 %v8496_v23, %v6674_v49  ;;  %v8498_v35 = vld [vmem:[#allocation19_spill] sm:$0xff] }
 0x683   :  { %8494 = vst [vmem:[#allocation53_spill] sm:$0xff] %v6825_v48  ;;  %v6833_v32 = vpop.eup %5490  ;;  %2245 = vmatprep.subr.mxu0 %v2218_v18  ;;  %v2194_v12 = vsub.f32 %v8498_v35, %v6672_v30  ;;  %v8500_v18 = vld [vmem:[#allocation29_spill] sm:$0xff]  ;;  %v2215_v4 = vadd.f32 %v6825_v48, %v2199_v11  ;;  %v2195_v35 = vsub.f32 %v6597_v22, %v6706_v9 }
 0x684   :  { %8497 = vst [vmem:[#allocation54_spill] sm:$0xff] %v6833_v32  ;;  %v6841_v7 = vpop.eup %5492  ;;  %2334 = vmatprep.subr.mxu1 %v2220_v51  ;;  %2246 = vmatpush1.msra.mxu0 %v2217_v36  ;;  %v2213_v23 = vadd.f32 %v6794_v25, %v2197_v62  ;;  %v2196_v33 = vsub.f32 %v8500_v18, %v6700_v8  ;;  %v8501_v36 = vld [vmem:[#allocation50_spill] sm:$0xff]  ;;  %v8502_v18 = vld [vmem:[#allocation12_spill] sm:$0xff] }
 0x685   :  { %8499 = vst [vmem:[#allocation55_spill] sm:$0xff] %v6841_v7  ;;  %v6847_v34 = vpop.eup %5494  ;;  %2335 = vmatpush1.msra.mxu1 %v2219_v37  ;;  %2247 = vmatprep.subr.mxu0 %v2214_v3  ;;  %v2210_v24 = vadd.f32 %v6792_v15, %v2194_v12  ;;  %v2209_v62 = vadd.f32 %v6790_v16, %v2193_v44  ;;  %v8503_v12 = vld [vmem:[#allocation51_spill] sm:$0xff]  ;;  %v8504_v3 = vld [vmem:[#allocation13_spill] sm:$0xff] }
 0x686   :  { %v6853_v51 = vpop.eup %5496  ;;  %2336 = vmatprep.subr.mxu1 %v2216_v38  ;;  %2248 = vmatpush1.msra.mxu0 %v2213_v23  ;;  %v2212_v26 = vadd.f32 %v6833_v32, %v2196_v33  ;;  %v2192_v17 = vsub.f32 %v8502_v18, %v8501_v36  ;;  %v2211_v11 = vadd.f32 %v6841_v7, %v2195_v35  ;;  %v8510_v35 = vld [vmem:[#allocation32_spill] sm:$0xff]  ;;  %v8513_v7 = vld [vmem:[#allocation21_spill] sm:$0xff] }
 0x687   :  { %2337 = vmatpush1.msra.mxu1 %v2215_v4  ;;  %2249 = vmatprep.subr.mxu0 %v2210_v24  ;;  %v2206_v37 = vadd.f32 %v6788_v29, %v2190_v27  ;;  %v2191_v22 = vsub.f32 %v8504_v3, %v8503_v12  ;;  %v2205_v33 = vadd.f32 %v6786_v28, %v2189_v13  ;;  %v8505_v24 = vld [vmem:[#allocation8_spill] sm:$0xff]  ;;  %v8506_v27 = vmov 0.0   ;;  %v8509_v13 = vld [vmem:[#allocation9_spill] sm:$0xff] }
 0x688   :  { %2338 = vmatprep.subr.mxu1 %v2212_v26  ;;  %2250 = vmatpush1.msra.mxu0 %v2209_v62  ;;  %v2208_v38 = vadd.f32 %v6847_v34, %v2192_v17  ;;  %v8507_v17 = vld [vmem:[#allocation7_spill] sm:$0xff] }
 0x689   :  { %2339 = vmatpush1.msra.mxu1 %v2211_v11  ;;  %2251 = vmatprep.subr.mxu0 %v2206_v37  ;;  %v2207_v44 = vadd.f32 %v6853_v51, %v2191_v22  ;;  %v8508_v22 = vld [vmem:[#allocation10_spill] sm:$0xff] }
 0x68a   :  { %2340 = vmatprep.subr.mxu1 %v2208_v38  ;;  %2252 = vmatpush1.msra.mxu0 %v2205_v33 }
 0x68b   :  { %2341 = vmatpush1.msra.mxu1 %v2207_v44  ;;  %5165 = vmatmul.mubr.msk.f32.vlgmr.msra.gmra.mxu0 %vm479_vm2, %v8505_v24 }
 0x68c   :  { %5169 = vmatmul.mubr.msk.f32.vlgmr.msra.gmra.mxu1 %vm479_vm2, %v8505_v24  ;;  %2291 = vmatprep.mubr.f32.mxu0 %v8506_v27 }
 0x68d   :  { %2380 = vmatprep.mubr.f32.mxu1 %v8506_v27 }
 0x68f   :  { %5166 = vmatmul.mubr.msk.f32.gmra.mxu0 %vm479_vm2, %v8507_v17 }
 0x690   :  { %5170 = vmatmul.mubr.msk.f32.gmra.mxu1 %vm479_vm2, %v8507_v17  ;;  %2297 = vmatprep.mubr.f32.mxu0 %v8506_v27 }
 0x691   :  { %2386 = vmatprep.mubr.f32.mxu1 %v8506_v27 }
 0x693   :  { %5167 = vmatmul.mubr.msk.f32.gmra.mxu0 %vm479_vm2, %v8508_v22 }
 0x694   :  { %5171 = vmatmul.mubr.msk.f32.gmra.mxu1 %vm479_vm2, %v8508_v22  ;;  %2303 = vmatprep.mubr.f32.mxu0 %v8506_v27  ;;  %v8511_v22 = vld [vmem:[#allocation33_spill] sm:$0xff] }
 0x695   :  { %2392 = vmatprep.mubr.f32.mxu1 %v8506_v27 }
 0x697   :  { %5168 = vmatmul.mubr.msk.f32.gmra.mxu0 %vm479_vm2, %v8509_v13 }
 0x698   :  { %5172 = vmatmul.mubr.msk.f32.gmra.mxu1 %vm479_vm2, %v8509_v13  ;;  %2575 = vmatprep.mubr.f32.mxu0 %v8506_v27  ;;  %v8512_v13 = vld [vmem:[#allocation44_spill] sm:$0xff] }
 0x699   :  { %2646 = vmatprep.mubr.f32.mxu1 %v8506_v27 }
 0x74b   :  { %v2287_v23 = vpop.f32.mrf.mxu0 }
 0x74c   :  { %v2288_v4 = vadd.f32 %v2287_v23, %v8510_v35  ;;  %v2376_v26 = vpop.f32.mrf.mxu1 }
 0x74d   :  { %v2289_v62 = vpop.f32.mrf.mxu0 }
 0x74e   :  { %v2399_v11 = vmul.f32 0.25, %v2288_v4  ;;  %v2290_v37 = vadd.f32 %v2289_v62, %v8510_v35  ;;  %v2378_v38 = vpop.f32.mrf.mxu1  ;;  %v8514_v62 = vld [vmem:[#allocation30_spill] sm:$0xff] }
 0x74f   :  { %v2293_v33 = vpop.f32.mrf.mxu0 }
 0x750   :  { %v2400_v44 = vmul.f32 0.25, %v2290_v37  ;;  %v2294_v17 = vadd.f32 %v2293_v33, %v8511_v22  ;;  %v2382_v24 = vpop.f32.mrf.mxu1  ;;  %v2415_v18 = vadd.f32 %v2399_v11, %v8512_v13  ;;  %v2377_v37 = vadd.f32 %v2376_v26, %v8510_v35  ;;  %v8515_v33 = vld [vmem:[#allocation15_spill] sm:$0xff] }
 0x751   :  { %v2295_v3 = vpop.f32.mrf.mxu0 }
 0x752   :  { %v2403_v52 = vmul.f32 0.25, %v2294_v17  ;;  %v2296_v27 = vadd.f32 %v2295_v3, %v8511_v22  ;;  %v2384_v45 = vpop.f32.mrf.mxu1  ;;  %v2416_v23 = vadd.f32 %v2400_v44, %v8513_v7  ;;  %5498 = vtanh.f32 %v2415_v18 }
 0x753   :  { %v2299_v9 = vpop.f32.mrf.mxu0  ;;  %v2385_v4 = vadd.f32 %v2384_v45, %v8511_v22  ;;  %v2379_v45 = vadd.f32 %v2378_v38, %v8510_v35 }
 0x754   :  { %v2404_v32 = vmul.f32 0.25, %v2296_v27  ;;  %v2300_v8 = vadd.f32 %v2299_v9, %v8514_v62  ;;  %v2388_v15 = vpop.f32.mrf.mxu1  ;;  %v2419_v30 = vadd.f32 %v2403_v52, %v8515_v33  ;;  %5500 = vtanh.f32 %v2416_v23  ;;  %v8516_v33 = vld [vmem:[#allocation31_spill] sm:$0xff] }
 0x755   :  { %v2389_v48 = vadd.f32 %v2388_v15, %v8514_v62  ;;  %v2301_v11 = vpop.f32.mrf.mxu0  ;;  %v2383_v9 = vadd.f32 %v2382_v24, %v8511_v22  ;;  %v2406_v13 = vmul.f32 0.25, %v2385_v4 }
 0x756   :  { %v2420_v3 = vadd.f32 %v2404_v32, %v6497_v31  ;;  %v2407_v17 = vmul.f32 0.25, %v2300_v8  ;;  %v2302_v44 = vadd.f32 %v2301_v11, %v8514_v62  ;;  %v2390_v7 = vpop.f32.mrf.mxu1  ;;  %5502 = vtanh.f32 %v2419_v30 }
 0x757   :  { %v2391_v27 = vadd.f32 %v2390_v7, %v8514_v62  ;;  %v2305_v26 = vpop.f32.mrf.mxu0  ;;  %v2409_v8 = vmul.f32 0.25, %v2389_v48 }
 0x758   :  { %v2423_v52 = vadd.f32 %v2407_v17, %v6502_v39  ;;  %v2408_v15 = vmul.f32 0.25, %v2302_v44  ;;  %v2306_v18 = vadd.f32 %v2305_v26, %v8516_v33  ;;  %v2394_v56 = vpop.f32.mrf.mxu1  ;;  %5504 = vtanh.f32 %v2420_v3 }
 0x759   :  { %v2410_v32 = vmul.f32 0.25, %v2391_v27  ;;  %v2395_v11 = vadd.f32 %v2394_v56, %v8516_v33  ;;  %v2307_v23 = vpop.f32.mrf.mxu0  ;;  %v2405_v26 = vmul.f32 0.25, %v2383_v9  ;;  %v2402_v56 = vmul.f32 0.25, %v2379_v45 }
 0x75a   :  { %v2424_v38 = vadd.f32 %v2408_v15, %v6506_v0  ;;  %v2411_v24 = vmul.f32 0.25, %v2306_v18  ;;  %v2308_v7 = vadd.f32 %v2307_v23, %v8516_v33  ;;  %v2396_v62 = vpop.f32.mrf.mxu1  ;;  %5506 = vtanh.f32 %v2423_v52 }
 0x75b   :  { %v2426_v4 = vadd.f32 %v2410_v32, %v6531_v54  ;;  %v2413_v17 = vmul.f32 0.25, %v2395_v11  ;;  %v2397_v44 = vadd.f32 %v2396_v62, %v8516_v33  ;;  %v2401_v15 = vmul.f32 0.25, %v2377_v37 }
 0x75c   :  { %5508 = vtanh.f32 %v2424_v38  ;;  %v2427_v30 = vadd.f32 %v2411_v24, %v6515_v63  ;;  %v2412_v48 = vmul.f32 0.25, %v2308_v7  ;;  %v2425_v18 = vadd.f32 %v2409_v8, %v6539_v59 }
 0x75d   :  { %5510 = vtanh.f32 %v2426_v4  ;;  %v2429_v3 = vadd.f32 %v2413_v17, %v6524_v53  ;;  %v2414_v27 = vmul.f32 0.25, %v2397_v44  ;;  %v2422_v32 = vadd.f32 %v2406_v13, %v6543_v1 }
 0x75e   :  { %5512 = vtanh.f32 %v2427_v30  ;;  %v2428_v52 = vadd.f32 %v2412_v48, %v6527_v57  ;;  %v2421_v9 = vadd.f32 %v2405_v26, %v6547_v60  ;;  %v2418_v45 = vadd.f32 %v2402_v56, %v6551_v40 }
 0x75f   :  { %5514 = vtanh.f32 %v2429_v3  ;;  %v2430_v62 = vadd.f32 %v2414_v27, %v6535_v58  ;;  %v2417_v11 = vadd.f32 %v2401_v15, %v6555_v61  ;;  %v6922_v37 = vpop.eup %5498  ;;  %v2447_v8 = vadd.f32 %v6786_v28, %v6666_v47 }
 0x760   :  { %5516 = vtanh.f32 %v2428_v52  ;;  %v2460_v13 = vadd.f32 %v6806_v55, %v6685_v6  ;;  %v2448_v38 = vadd.f32 %v6788_v29, %v6668_v20  ;;  %v2462_v24 = vadd.f32 %v6816_v46, %v6689_v19 }
 0x761   :  { %5518 = vtanh.f32 %v2430_v62  ;;  %v6926_v23 = vpop.eup %5500  ;;  %v2459_v7 = vadd.f32 %v6800_v41, %v6680_v14  ;;  %v2449_v4 = vadd.f32 %v6853_v51, %v8503_v12  ;;  %v2461_v28 = vadd.f32 %v6802_v42, %v6682_v43  ;;  %v8517_v43 = vld [vmem:[#allocation47_spill] sm:$0xff]  ;;  %v8518_v42 = vld [vmem:[#allocation53_spill] sm:$0xff]  ;;  %v8525_v62 = vld [vmem:[#allocation22_spill] sm:$0xff] }
 0x762   :  { %5520 = vtanh.f32 %v2425_v18  ;;  %v2456_v6 = vadd.f32 %v6796_v21, %v6676_v50  ;;  %v2451_v20 = vadd.f32 %v6790_v16, %v6670_v5  ;;  %v2458_v19 = vadd.f32 %v6798_v2, %v6678_v10  ;;  %v8519_v50 = vld [vmem:[#allocation46_spill] sm:$0xff]  ;;  %v8520_v21 = vld [vmem:[#allocation52_spill] sm:$0xff] }
 0x763   :  { %5522 = vtanh.f32 %v2422_v32  ;;  %v6938_v47 = vpop.eup %5502  ;;  %v2455_v14 = vadd.f32 %v6794_v25, %v6674_v49  ;;  %v2450_v41 = vadd.f32 %v6847_v34, %v8501_v36  ;;  %v2463_v55 = vmul.f32 3.0, %v2447_v8  ;;  %v8521_v10 = vld [vmem:[#allocation48_spill] sm:$0xff]  ;;  %v8522_v2 = vld [vmem:[#allocation54_spill] sm:$0xff]  ;;  %v8523_v49 = vld [vmem:[#allocation49_spill] sm:$0xff] }
 0x764   :  { %5524 = vtanh.f32 %v2421_v9  ;;  %v2476_v51 = vmul.f32 3.0, %v2460_v13  ;;  %v2457_v12 = vadd.f32 %v8518_v42, %v8517_v43  ;;  %v2452_v17 = vadd.f32 %v8520_v21, %v8519_v50  ;;  %v8524_v25 = vld [vmem:[#allocation55_spill] sm:$0xff]  ;;  %v8528_v42 = vld [vmem:[#allocation17_spill] sm:$0xff] }
 0x765   :  { %5526 = vtanh.f32 %v2418_v45  ;;  %v5505_v29 = vpop.eup %5504  ;;  %v2464_v5 = vmul.f32 3.0, %v2448_v38  ;;  %v2478_v44 = vmul.f32 3.0, %v2462_v24  ;;  %v2475_v26 = vmul.f32 3.0, %v2459_v7  ;;  %v8527_v24 = vld [vmem:[#allocation20_spill] sm:$0xff] }
 0x766   :  { %5528 = vtanh.f32 %v2417_v11  ;;  %v2454_v30 = vadd.f32 %v8522_v2, %v8521_v10  ;;  %v2453_v48 = vadd.f32 %v8524_v25, %v8523_v49  ;;  %v2477_v36 = vmul.f32 3.0, %v2461_v28  ;;  %v8526_v11 = vld [vmem:[#allocation25_spill] sm:$0xff]  ;;  %v8529_v28 = vld [vmem:[#allocation18_spill] sm:$0xff]  ;;  %v8531_v10 = vld [vmem:[#allocation24_spill] sm:$0xff] }
 0x767   :  { %v5507_v46 = vpop.eup %5506  ;;  %v2472_v56 = vmul.f32 3.0, %v2456_v6  ;;  %v2467_v3 = vmul.f32 3.0, %v2451_v20  ;;  %v2465_v27 = vmul.f32 3.0, %v2449_v4  ;;  %v2474_v18 = vmul.f32 3.0, %v2458_v19  ;;  %v8532_v2 = vld [vmem:[#allocation23_spill] sm:$0xff] }
 0x768   :  { %v2471_v52 = vmul.f32 3.0, %v2455_v14  ;;  %v2466_v32 = vmul.f32 3.0, %v2450_v41  ;;  %v2479_v9 = vadd.f32 %v8525_v62, %v2463_v55  ;;  %v2492_v8 = vadd.f32 %v8526_v11, %v2476_v51  ;;  %v8530_v14 = vld [vmem:[#allocation26_spill] sm:$0xff]  ;;  %v8533_v25 = vld [vmem:[#allocation27_spill] sm:$0xff]  ;;  %v8534_v62 = vld [vmem:[#allocation16_spill] sm:$0xff] }
 0x769   :  { %v5509_v16 = vpop.eup %5508  ;;  %v2473_v13 = vmul.f32 3.0, %v2457_v12  ;;  %v2468_v38 = vmul.f32 3.0, %v2452_v17  ;;  %v2480_v7 = vadd.f32 %v8527_v24, %v2464_v5  ;;  %v2494_v50 = vadd.f32 %v8528_v42, %v2478_v44  ;;  %v8537_v42 = vld [vmem:[#allocation29_spill] sm:$0xff] }
 0x76a   :  { %v5511_v34 = vpop.eup %5510  ;;  %v2491_v6 = vadd.f32 %v8529_v28, %v2475_v26  ;;  %v2470_v20 = vmul.f32 3.0, %v2454_v30  ;;  %v2469_v4 = vmul.f32 3.0, %v2453_v48  ;;  %v2493_v41 = vadd.f32 %v8530_v14, %v2477_v36  ;;  %v8535_v48 = vld [vmem:[#allocation28_spill] sm:$0xff]  ;;  %v8538_v28 = vld [vmem:[#allocation11_spill] sm:$0xff] }
 0x76b   :  { %v5513_v15 = vpop.eup %5512  ;;  %v2488_v55 = vadd.f32 %v8531_v10, %v2472_v56  ;;  %v2483_v49 = vadd.f32 %v8532_v2, %v2467_v3  ;;  %v2490_v5 = vadd.f32 %v8533_v25, %v2474_v18  ;;  %v2487_v11 = vadd.f32 %v8534_v62, %v2471_v52  ;;  %v8547_v10 = vld [vmem:[#allocation43_spill] sm:$0xff]  ;;  %v8548_v2 = vld [vmem:[#allocation34_spill] sm:$0xff] }
 0x76c   :  { %v5515_v45 = vpop.eup %5514  ;;  %v2507_v17 = vadd.f32 %v5513_v15, %v2491_v6  ;;  %v2489_v24 = vadd.f32 %v8535_v48, %v2473_v13  ;;  %v2485_v6 = vadd.f32 %v8538_v28, %v2469_v4  ;;  %v2495_v4 = vadd.f32 %v6922_v37, %v2479_v9  ;;  %v8545_v9 = vld [vmem:[#allocation9_spill] sm:$0xff]  ;;  %v5788_v25 = vld [vmem:[%s8101_s0] sm:$0xf]  ;;  %v8550_v62 = vld [vmem:[#allocation6_spill] sm:$0xff] }
 0x76d   :  { %v5517_v43 = vpop.eup %5516  ;;  %v2509_v26 = vadd.f32 %v5515_v45, %v2493_v41  ;;  %v2504_v30 = vadd.f32 %v5509_v16, %v2488_v55  ;;  %v2506_v56 = vadd.f32 %v5511_v34, %v2490_v5  ;;  %v2503_v3 = vadd.f32 %v5507_v46, %v2487_v11 }
 0x76e   :  { %v5519_v21 = vpop.eup %5518  ;;  %v2508_v19 = vadd.f32 %v5517_v43, %v2492_v8  ;;  %v8536_v8 = vld [vmem:[#allocation19_spill] sm:$0xff]  ;;  %v2499_v13 = vadd.f32 %v6938_v47, %v2483_v49  ;;  %v2496_v34 = vadd.f32 %v6926_v23, %v2480_v7  ;;  %v8541_v37 = vmov 0.0   ;;  %v8542_v23 = vld [vmem:[#allocation8_spill] sm:$0xff] }
 0x76f   :  { %v5521_v51 = vpop.eup %5520  ;;  %v2510_v12 = vadd.f32 %v5519_v21, %v2494_v50  ;;  %v2484_v43 = vadd.f32 %v8536_v8, %v2468_v38  ;;  %v2486_v50 = vadd.f32 %v8537_v42, %v2470_v20  ;;  %v8539_v38 = vld [vmem:[#allocation12_spill] sm:$0xff]  ;;  %v8540_v20 = vld [vmem:[#allocation13_spill] sm:$0xff]  ;;  %v5787_v47 = vld [vmem:[%s8104_s3] sm:$0xf]  ;;  %v1448_v55 = vmul.f32 0.03125, %v8547_v10 }
 0x770   :  { %v5523_v44 = vpop.eup %5522  ;;  %2535 = vmatprep.subr.mxu0 %v2508_v19  ;;  %v2505_v18 = vadd.f32 %v5521_v51, %v2489_v24  ;;  %v2482_v21 = vadd.f32 %v8539_v38, %v2466_v32  ;;  %v2481_v14 = vadd.f32 %v8540_v20, %v2465_v27  ;;  %v8543_v27 = vld [vmem:[#allocation7_spill] sm:$0xff]  ;;  %v8544_v32 = vld [vmem:[#allocation10_spill] sm:$0xff]  ;;  %v1447_v49 = vmul.f32 0.03125, %v8548_v2  ;;  %v273_v51 = vpop.permute.xlu0 %272  ;;  %v8553_v24 = vld [vmem:[#allocation5_spill] sm:$0xff] }
 0x771   :  { %v5525_v36 = vpop.eup %5524  ;;  %2606 = vmatprep.subr.mxu1 %v2510_v12  ;;  %2536 = vmatpush1.msra.mxu0 %v2507_v17  ;;  %v2500_v52 = vadd.f32 %v5505_v29, %v2484_v43  ;;  %v2502_v16 = vadd.f32 %v5523_v44, %v2486_v50  ;;  %v8546_v7 = vld [vmem:[#allocation35_spill] sm:$0xff]  ;;  %v8551_v11 = vrot.slane %v8550_v62, 4  ;;  %v8554_v8 = vrot.slane %v8553_v24, 4  ;;  %v8559_v10 = vld [vmem:[#allocation44_spill] sm:$0xff] }
 0x772   :  { %v5527_v15 = vpop.eup %5526  ;;  %2607 = vmatpush1.msra.mxu1 %v2509_v26  ;;  %2537 = vmatprep.subr.mxu0 %v2504_v30  ;;  %v2501_v46 = vadd.f32 %v5525_v36, %v2485_v6 }
 0x773   :  { %v5529_v45 = vpop.eup %5528  ;;  %2608 = vmatprep.subr.mxu1 %v2506_v56  ;;  %2538 = vmatpush1.msra.mxu0 %v2503_v3  ;;  %v2498_v29 = vadd.f32 %v5527_v15, %v2482_v21  ;;  %v1452_v44 = vadd.f32 %v1448_v55, %v8551_v11 }
 0x774   :  { %2609 = vmatpush1.msra.mxu1 %v2505_v18  ;;  %2539 = vmatprep.subr.mxu0 %v2500_v52  ;;  %v2497_v41 = vadd.f32 %v5529_v45, %v2481_v14 }
 0x775   :  { %2610 = vmatprep.subr.mxu1 %v2502_v16  ;;  %2540 = vmatpush1.msra.mxu0 %v2499_v13 }
 0x776   :  { %2611 = vmatpush1.msra.mxu1 %v2501_v46  ;;  %2541 = vmatprep.subr.mxu0 %v2496_v34 }
 0x777   :  { %2612 = vmatprep.subr.mxu1 %v2498_v29  ;;  %2542 = vmatpush1.msra.mxu0 %v2495_v4 }
 0x778   :  { %2613 = vmatpush1.msra.mxu1 %v2497_v41  ;;  %5173 = vmatmul.mubr.msk.f32.vlgmr.msra.gmra.mxu0 %vm479_vm2, %v5787_v47 }
 0x779   :  { %5174 = vmatmul.mubr.msk.f32.vlgmr.msra.gmra.mxu1 %vm479_vm2, %v5787_v47  ;;  %2689 = vmatprep.subr.mxu0 %v2508_v19  ;;  %v1446_v19 = vmul.f32 0.03125, %v8546_v7 }
 0x77a   :  { %2778 = vmatprep.subr.mxu1 %v2510_v12  ;;  %2690 = vmatpush1.msra.mxu0 %v2507_v17  ;;  %v8549_v12 = vld [vmem:[#allocation42_spill] sm:$0xff] }
 0x77b   :  { %2779 = vmatpush1.msra.mxu1 %v2509_v26  ;;  %2691 = vmatprep.subr.mxu0 %v2504_v30  ;;  %v1449_v17 = vmul.f32 0.03125, %v8549_v12  ;;  %v1450_v5 = vadd.f32 %v5788_v25, %v1446_v19  ;;  %v7019_v26 = vmul.f32 0.25, %v273_v51  ;;  %v5789_v30 = vld [vmem:[%s8101_s0 + $0x8] sm:$0xf]  ;;  %v8561_v25 = vld [vmem:[#allocation15_spill] sm:$0xff] }
 0x77c   :  { %2780 = vmatprep.subr.mxu1 %v2506_v56  ;;  %2692 = vmatpush1.msra.mxu0 %v2503_v3  ;;  %v1451_v48 = vadd.f32 %v5789_v30, %v1447_v49  ;;  %v8560_v49 = vld [vmem:[#allocation21_spill] sm:$0xff] }
 0x77d   :  { %2781 = vmatpush1.msra.mxu1 %v2505_v18  ;;  %2693 = vmatprep.subr.mxu0 %v2500_v52  ;;  %8552 = vst [vmem:[#allocation50_spill] sm:$0xff] %v7019_v26  ;;  %v1453_v43 = vadd.f32 %v1449_v17, %v8554_v8  ;;  %v1455_v56 = vadd.f32 %v7019_v26, %v1450_v5 }
 0x77e   :  { %2782 = vmatprep.subr.mxu1 %v2502_v16  ;;  %2694 = vmatpush1.msra.mxu0 %v2499_v13  ;;  %v1457_v50 = vadd.f32 %v7019_v26, %v1452_v44  ;;  %v1456_v28 = vadd.f32 %v7019_v26, %v1451_v48  ;;  %v8562_v48 = vld [vmem:[#allocation36_spill] sm:$0xff] }
 0x77f   :  { %2783 = vmatpush1.msra.mxu1 %v2501_v46  ;;  %2695 = vmatprep.subr.mxu0 %v2496_v34  ;;  %v1458_v13 = vadd.f32 %v7019_v26, %v1453_v43 }
 0x780   :  { %2784 = vmatprep.subr.mxu1 %v2498_v29  ;;  %2696 = vmatpush1.msra.mxu0 %v2495_v4 }
 0x781   :  { %2729 = vmatprep.mubr.f32.mxu0 %v8541_v37  ;;  %2785 = vmatpush1.msra.mxu1 %v2497_v41 }
 0x782   :  { %2818 = vmatprep.mubr.f32.mxu1 %v8541_v37  ;;  %5175 = vmatmul.mubr.msk.f32.vlgmr.msra.gmra.mxu0 %vm479_vm2, %v8542_v23 }
 0x783   :  { %5179 = vmatmul.mubr.msk.f32.vlgmr.msra.gmra.mxu1 %vm479_vm2, %v8542_v23  ;;  %2735 = vmatprep.mubr.f32.mxu0 %v8541_v37 }
 0x784   :  { %2824 = vmatprep.mubr.f32.mxu1 %v8541_v37 }
 0x786   :  { %5176 = vmatmul.mubr.msk.f32.gmra.mxu0 %vm479_vm2, %v8543_v27 }
 0x787   :  { %5180 = vmatmul.mubr.msk.f32.gmra.mxu1 %vm479_vm2, %v8543_v27  ;;  %2741 = vmatprep.mubr.f32.mxu0 %v8541_v37 }
 0x788   :  { %2830 = vmatprep.mubr.f32.mxu1 %v8541_v37 }
 0x78a   :  { %5177 = vmatmul.mubr.msk.f32.gmra.mxu0 %vm479_vm2, %v8544_v32 }
 0x78b   :  { %5181 = vmatmul.mubr.msk.f32.gmra.mxu1 %vm479_vm2, %v8544_v32  ;;  %2747 = vmatprep.mubr.f32.mxu0 %v8541_v37 }
 0x78c   :  { %2836 = vmatprep.mubr.f32.mxu1 %v8541_v37 }
 0x78e   :  { %5178 = vmatmul.mubr.msk.f32.gmra.mxu0 %vm479_vm2, %v8545_v9 }
 0x78f   :  { %5182 = vmatmul.mubr.msk.f32.gmra.mxu1 %vm479_vm2, %v8545_v9  ;;  %2971 = vmatprep.mubr.f32.mxu0 %v8541_v37 }
 0x790   :  { %3060 = vmatprep.mubr.f32.mxu1 %v8541_v37 }
 0x838   :  { %v2577_v36 = vpop.f32.mrf.mxu0 }
 0x839   :  { %v2653_v3 = vmul.f32 0.03125, %v2577_v36  ;;  %v2648_v42 = vpop.f32.mrf.mxu1 }
 0x83a   :  { %v2655_v15 = vmul.f32 0.03125, %v2648_v42  ;;  %v2579_v18 = vpop.f32.mrf.mxu0 }
 0x83b   :  { %v7028_v52 = vadd.f32 %v2653_v3, %v1455_v56  ;;  %v2654_v6 = vmul.f32 0.03125, %v2579_v18  ;;  %v2650_v45 = vpop.f32.mrf.mxu1 }
 0x83c   :  { %v7031_v16 = vadd.f32 %v2655_v15, %v1457_v50  ;;  %v2656_v38 = vmul.f32 0.03125, %v2650_v45  ;;  %v8565_v15 = vld [vmem:[#allocation37_spill] sm:$0xff] }
 0x83d   :  { %8555 = vst [vmem:[#allocation51_spill] sm:$0xff] %v7028_v52  ;;  %v7034_v21 = vadd.f32 %v2654_v6, %v1456_v28 }
 0x83e   :  { %8556 = vst [vmem:[#allocation47_spill] sm:$0xff] %v7031_v16  ;;  %v7036_v46 = vadd.f32 %v2656_v38, %v1458_v13 }
 0x83f   :  { %8557 = vst [vmem:[#allocation53_spill] sm:$0xff] %v7034_v21 }
 0x840   :  { %8558 = vst [vmem:[#allocation46_spill] sm:$0xff] %v7036_v46 }
 0x842   :  { %v2731_v34 = vpop.f32.mrf.mxu0 }
 0x843   :  { %v2820_v20 = vpop.f32.mrf.mxu1  ;;  %v2843_v14 = vmul.f32 0.03125, %v2731_v34 }
 0x844   :  { %v2733_v29 = vpop.f32.mrf.mxu0  ;;  %v2845_v43 = vmul.f32 0.03125, %v2820_v20 }
 0x845   :  { %v2844_v4 = vmul.f32 0.03125, %v2733_v29  ;;  %v2822_v41 = vpop.f32.mrf.mxu1  ;;  %v2859_v55 = vadd.f32 %v2843_v14, %v8559_v10  ;;  %v8567_v14 = vld [vmem:[#allocation45_spill] sm:$0xff] }
 0x846   :  { %v2737_v47 = vpop.f32.mrf.mxu0  ;;  %v2846_v50 = vmul.f32 0.03125, %v2822_v41 }
 0x847   :  { %v2847_v7 = vmul.f32 0.03125, %v2737_v47  ;;  %v2826_v19 = vpop.f32.mrf.mxu1  ;;  %v2860_v51 = vadd.f32 %v2844_v4, %v8560_v49  ;;  %v7043_v24 = vadd.f32 %v2859_v55, %v8562_v48 }
 0x848   :  { %v2739_v2 = vpop.f32.mrf.mxu0  ;;  %v2849_v28 = vmul.f32 0.03125, %v2826_v19 }
 0x849   :  { %v2848_v12 = vmul.f32 0.03125, %v2739_v2  ;;  %v2828_v17 = vpop.f32.mrf.mxu1  ;;  %v2863_v5 = vadd.f32 %v2847_v7, %v8561_v25  ;;  %8563 = vst [vmem:[#allocation52_spill] sm:$0xff] %v7043_v24  ;;  %v7046_v36 = vadd.f32 %v2860_v51, %v8562_v48  ;;  %5530 = vtanh.f32 %v7043_v24  ;;  %v8568_v51 = vld [vmem:[#allocation14_spill] sm:$0xff] }
 0x84a   :  { %v2743_v62 = vpop.f32.mrf.mxu0 }
 0x84b   :  { %v2864_v11 = vadd.f32 %v2848_v12, %v6497_v31  ;;  %v2851_v44 = vmul.f32 0.03125, %v2743_v62  ;;  %v2832_v30 = vpop.f32.mrf.mxu1  ;;  %8564 = vst [vmem:[#allocation48_spill] sm:$0xff] %v7046_v36  ;;  %v7050_v18 = vadd.f32 %v2863_v5, %v8565_v15  ;;  %5532 = vtanh.f32 %v7046_v36 }
 0x84c   :  { %v2745_v8 = vpop.f32.mrf.mxu0  ;;  %v2853_v13 = vmul.f32 0.03125, %v2832_v30  ;;  %v2862_v5 = vadd.f32 %v2846_v50, %v6551_v40 }
 0x84d   :  { %v2867_v56 = vadd.f32 %v2851_v44, %v6502_v39  ;;  %v2852_v3 = vmul.f32 0.03125, %v2745_v8  ;;  %v2834_v42 = vpop.f32.mrf.mxu1  ;;  %8566 = vst [vmem:[#allocation54_spill] sm:$0xff] %v7050_v18  ;;  %v7053_v45 = vadd.f32 %v2864_v11, %v8565_v15  ;;  %v2850_v39 = vmul.f32 0.03125, %v2828_v17 }
 0x84e   :  { %v2854_v31 = vmul.f32 0.03125, %v2834_v42  ;;  %v2749_v6 = vpop.f32.mrf.mxu0  ;;  %5534 = vtanh.f32 %v7050_v18  ;;  %v2869_v49 = vadd.f32 %v2853_v13, %v6539_v59  ;;  %v7107_v11 = vadd.f32 %v2862_v5, %v8562_v48 }
 0x84f   :  { %v2868_v38 = vadd.f32 %v2852_v3, %v6506_v0  ;;  %v2855_v34 = vmul.f32 0.03125, %v2749_v6  ;;  %v2838_v20 = vpop.f32.mrf.mxu1  ;;  %v7058_v29 = vadd.f32 %v2867_v56, %v8567_v14  ;;  %5536 = vtanh.f32 %v7053_v45 }
 0x850   :  { %v2857_v4 = vmul.f32 0.03125, %v2838_v20  ;;  %v2751_v41 = vpop.f32.mrf.mxu0  ;;  %v2870_v0 = vadd.f32 %v2854_v31, %v6531_v54  ;;  %v2865_v54 = vadd.f32 %v2849_v28, %v6547_v60  ;;  %v7095_v60 = vadd.f32 %v2869_v49, %v8567_v14 }
 0x851   :  { %v7062_v47 = vadd.f32 %v2868_v38, %v8567_v14  ;;  %v2871_v7 = vadd.f32 %v2855_v34, %v6515_v63  ;;  %v2856_v19 = vmul.f32 0.03125, %v2751_v41  ;;  %v2840_v10 = vpop.f32.mrf.mxu1  ;;  %v2866_v63 = vadd.f32 %v2850_v39, %v6543_v1 }
 0x852   :  { %v2873_v55 = vadd.f32 %v2857_v4, %v6524_v53  ;;  %v2858_v2 = vmul.f32 0.03125, %v2840_v10  ;;  %5538 = vtanh.f32 %v7058_v29  ;;  %v7103_v40 = vadd.f32 %v2865_v54, %v8565_v15 }
 0x853   :  { %v7071_v12 = vadd.f32 %v2871_v7, %v8568_v51  ;;  %v2872_v17 = vadd.f32 %v2856_v19, %v6527_v57  ;;  %5540 = vtanh.f32 %v7062_v47  ;;  %v7087_v57 = vadd.f32 %v2870_v0, %v8567_v14 }
 0x854   :  { %v2874_v25 = vadd.f32 %v2858_v2, %v6535_v58  ;;  %v7080_v53 = vadd.f32 %v2873_v55, %v8568_v51  ;;  %v2861_v58 = vadd.f32 %v2845_v43, %v6555_v61  ;;  %v7099_v62 = vadd.f32 %v2866_v63, %v8565_v15 }
 0x855   :  { %v7083_v59 = vadd.f32 %v2872_v17, %v8568_v51  ;;  %5542 = vtanh.f32 %v7071_v12 }
 0x856   :  { %v7091_v1 = vadd.f32 %v2874_v25, %v8568_v51  ;;  %v7111_v61 = vadd.f32 %v2861_v58, %v8562_v48  ;;  %v7115_v44 = vpop.eup %5530 }
 0x857   :  { %5544 = vtanh.f32 %v7083_v59  ;;  %8569 = vst [vmem:[#allocation49_spill] sm:$0xff] %v7115_v44 }
 0x858   :  { %5546 = vtanh.f32 %v7091_v1  ;;  %v7118_v30 = vpop.eup %5532 }
 0x859   :  { %5548 = vtanh.f32 %v7080_v53  ;;  %8570 = vst [vmem:[#allocation55_spill] sm:$0xff] %v7118_v30 }
 0x85a   :  { %5550 = vtanh.f32 %v7087_v57 }
 0x85b   :  { %5552 = vtanh.f32 %v7095_v60  ;;  %v7121_v8 = vpop.eup %5534 }
 0x85c   :  { %5554 = vtanh.f32 %v7099_v62  ;;  %8571 = vst [vmem:[#allocation22_spill] sm:$0xff] %v7121_v8  ;;  %v7124_v43 = vpop.eup %5536 }
 0x85d   :  { %5556 = vtanh.f32 %v7103_v40  ;;  %8572 = vst [vmem:[#allocation25_spill] sm:$0xff] %v7124_v43 }
 0x85e   :  { %5558 = vtanh.f32 %v7107_v11 }
 0x85f   :  { %5560 = vtanh.f32 %v7111_v61  ;;  %v7126_v56 = vpop.eup %5538 }
 0x860   :  { %8573 = vst [vmem:[#allocation20_spill] sm:$0xff] %v7126_v56  ;;  %v7128_v3 = vpop.eup %5540 }
 0x861   :  { %8574 = vst [vmem:[#allocation17_spill] sm:$0xff] %v7128_v3 }
 0x862   :  { %v7130_v42 = vpop.eup %5542 }
 0x863   :  { %8575 = vst [vmem:[#allocation18_spill] sm:$0xff] %v7130_v42 }
 0x864   :  { %v7132_v50 = vpop.eup %5544 }
 0x865   :  { %8576 = vst [vmem:[#allocation26_spill] sm:$0xff] %v7132_v50  ;;  %v7134_v28 = vpop.eup %5546  ;;  %2931 = vmatprep.subr.mxu0 %v7132_v50 }
 0x866   :  { %8577 = vst [vmem:[#allocation24_spill] sm:$0xff] %v7134_v28  ;;  %v7137_v31 = vpop.eup %5548  ;;  %3020 = vmatprep.subr.mxu1 %v7134_v28  ;;  %2932 = vmatpush1.msra.mxu0 %v7130_v42 }
 0x867   :  { %8578 = vst [vmem:[#allocation23_spill] sm:$0xff] %v7137_v31  ;;  %v7141_v6 = vpop.eup %5550  ;;  %3021 = vmatpush1.msra.mxu1 %v7137_v31  ;;  %2933 = vmatprep.subr.mxu0 %v7128_v3 }
 0x868   :  { %8579 = vst [vmem:[#allocation27_spill] sm:$0xff] %v7141_v6  ;;  %v7145_v13 = vpop.eup %5552  ;;  %3022 = vmatprep.subr.mxu1 %v7141_v6  ;;  %2934 = vmatpush1.msra.mxu0 %v7126_v56 }
 0x869   :  { %8580 = vst [vmem:[#allocation16_spill] sm:$0xff] %v7145_v13  ;;  %v7149_v38 = vpop.eup %5554  ;;  %3023 = vmatpush1.msra.mxu1 %v7145_v13  ;;  %2935 = vmatprep.subr.mxu0 %v7124_v43 }
 0x86a   :  { %8581 = vst [vmem:[#allocation28_spill] sm:$0xff] %v7149_v38  ;;  %v7153_v34 = vpop.eup %5556  ;;  %3024 = vmatprep.subr.mxu1 %v7149_v38  ;;  %2936 = vmatpush1.msra.mxu0 %v7121_v8 }
 0x86b   :  { %8582 = vst [vmem:[#allocation19_spill] sm:$0xff] %v7153_v34  ;;  %v7157_v20 = vpop.eup %5558  ;;  %3025 = vmatpush1.msra.mxu1 %v7153_v34  ;;  %2937 = vmatprep.subr.mxu0 %v7118_v30 }
 0x86c   :  { %8583 = vst [vmem:[#allocation29_spill] sm:$0xff] %v7157_v20  ;;  %v7161_v39 = vpop.eup %5560  ;;  %3026 = vmatprep.subr.mxu1 %v7157_v20  ;;  %2938 = vmatpush1.msra.mxu0 %v7115_v44 }
 0x86d   :  { %8584 = vst [vmem:[#allocation11_spill] sm:$0xff] %v7161_v39  ;;  %3027 = vmatpush1.msra.mxu1 %v7161_v39  ;;  %5183 = vmatmul.mubr.msk.f32.vlgmr.msra.gmra.mxu0 %vm479_vm2, %v8542_v23 }
 0x86e   :  { %5187 = vmatmul.mubr.msk.f32.vlgmr.msra.gmra.mxu1 %vm479_vm2, %v8542_v23  ;;  %2977 = vmatprep.mubr.f32.mxu0 %v8541_v37 }
 0x86f   :  { %3066 = vmatprep.mubr.f32.mxu1 %v8541_v37 }
 0x871   :  { %5184 = vmatmul.mubr.msk.f32.gmra.mxu0 %vm479_vm2, %v8543_v27 }
 0x872   :  { %5188 = vmatmul.mubr.msk.f32.gmra.mxu1 %vm479_vm2, %v8543_v27  ;;  %2983 = vmatprep.mubr.f32.mxu0 %v8541_v37 }
 0x873   :  { %3072 = vmatprep.mubr.f32.mxu1 %v8541_v37 }
 0x875   :  { %5185 = vmatmul.mubr.msk.f32.gmra.mxu0 %vm479_vm2, %v8544_v32 }
 0x876   :  { %5189 = vmatmul.mubr.msk.f32.gmra.mxu1 %vm479_vm2, %v8544_v32  ;;  %2989 = vmatprep.mubr.f32.mxu0 %v8541_v37 }
 0x877   :  { %3078 = vmatprep.mubr.f32.mxu1 %v8541_v37 }
 0x879   :  { %5186 = vmatmul.mubr.msk.f32.gmra.mxu0 %vm479_vm2, %v8545_v9 }
 0x87a   :  { %5190 = vmatmul.mubr.msk.f32.gmra.mxu1 %vm479_vm2, %v8545_v9  ;;  %3229 = vmatprep.mubr.f32.mxu0 %v8541_v37 }
 0x87b   :  { %3318 = vmatprep.mubr.f32.mxu1 %v8541_v37 }
 0x92d   :  { %v2973_v4 = vpop.f32.mrf.mxu0 }
 0x92e   :  { %v2974_v41 = vadd.f32 %v2973_v4, %v8510_v35  ;;  %v3062_v7 = vpop.f32.mrf.mxu1 }
 0x92f   :  { %v2975_v19 = vpop.f32.mrf.mxu0 }
 0x930   :  { %v3085_v10 = vmul.f32 0.083333336, %v2974_v41  ;;  %v2976_v0 = vadd.f32 %v2975_v19, %v8510_v35  ;;  %v3064_v55 = vpop.f32.mrf.mxu1  ;;  %v8585_v19 = vld [vmem:[#allocation30_spill] sm:$0xff] }
 0x931   :  { %v2979_v2 = vpop.f32.mrf.mxu0 }
 0x932   :  { %v3086_v49 = vmul.f32 0.083333336, %v2976_v0  ;;  %v2980_v17 = vadd.f32 %v2979_v2, %v8511_v22  ;;  %v3068_v63 = vpop.f32.mrf.mxu1  ;;  %v3101_v54 = vadd.f32 %v3085_v10, %v7043_v24  ;;  %v3063_v0 = vadd.f32 %v3062_v7, %v8510_v35 }
 0x933   :  { %v2981_v25 = vpop.f32.mrf.mxu0 }
 0x934   :  { %v3089_v5 = vmul.f32 0.083333336, %v2980_v17  ;;  %v2982_v58 = vadd.f32 %v2981_v25, %v8511_v22  ;;  %v3070_v51 = vpop.f32.mrf.mxu1  ;;  %v3102_v4 = vadd.f32 %v3086_v49, %v7046_v36  ;;  %5562 = vtanh.f32 %v3101_v54 }
 0x935   :  { %v2985_v14 = vpop.f32.mrf.mxu0  ;;  %v3071_v41 = vadd.f32 %v3070_v51, %v8511_v22  ;;  %v3065_v51 = vadd.f32 %v3064_v55, %v8510_v35 }
 0x936   :  { %v3090_v15 = vmul.f32 0.083333336, %v2982_v58  ;;  %v2986_v48 = vadd.f32 %v2985_v14, %v8585_v19  ;;  %v3074_v46 = vpop.f32.mrf.mxu1  ;;  %v3105_v2 = vadd.f32 %v3089_v5, %v7050_v18  ;;  %5564 = vtanh.f32 %v3102_v4 }
 0x937   :  { %v3075_v21 = vadd.f32 %v3074_v46, %v8585_v19  ;;  %v2987_v10 = vpop.f32.mrf.mxu0  ;;  %v3069_v14 = vadd.f32 %v3068_v63, %v8511_v22  ;;  %v3092_v52 = vmul.f32 0.083333336, %v3071_v41  ;;  %v3138_v22 = vmul.f32 0.33333334, %v7124_v43 }
 0x938   :  { %v3106_v17 = vadd.f32 %v3090_v15, %v7053_v45  ;;  %v3093_v25 = vmul.f32 0.083333336, %v2986_v48  ;;  %v2988_v49 = vadd.f32 %v2987_v10, %v8585_v19  ;;  %v3076_v16 = vpop.f32.mrf.mxu1  ;;  %5566 = vtanh.f32 %v3105_v2 }
 0x939   :  { %v3077_v58 = vadd.f32 %v3076_v16, %v8585_v19  ;;  %v2991_v7 = vpop.f32.mrf.mxu0  ;;  %v3095_v48 = vmul.f32 0.083333336, %v3075_v21  ;;  %v3139_v43 = vmul.f32 0.33333334, %v7153_v34 }
 0x93a   :  { %v3109_v5 = vadd.f32 %v3093_v25, %v7058_v29  ;;  %v3094_v46 = vmul.f32 0.083333336, %v2988_v49  ;;  %v2992_v54 = vadd.f32 %v2991_v7, %v8516_v33  ;;  %v3080_v26 = vpop.f32.mrf.mxu1  ;;  %5568 = vtanh.f32 %v3106_v17 }
 0x93b   :  { %v3096_v15 = vmul.f32 0.083333336, %v3077_v58  ;;  %v3081_v10 = vadd.f32 %v3080_v26, %v8516_v33  ;;  %v2993_v4 = vpop.f32.mrf.mxu0  ;;  %v3091_v7 = vmul.f32 0.083333336, %v3069_v14  ;;  %v3088_v26 = vmul.f32 0.083333336, %v3065_v51 }
 0x93c   :  { %v3110_v55 = vadd.f32 %v3094_v46, %v7062_v47  ;;  %v3097_v63 = vmul.f32 0.083333336, %v2992_v54  ;;  %v2994_v16 = vadd.f32 %v2993_v4, %v8516_v33  ;;  %v3082_v19 = vpop.f32.mrf.mxu1  ;;  %5570 = vtanh.f32 %v3109_v5 }
 0x93d   :  { %v3112_v41 = vadd.f32 %v3096_v15, %v7087_v57  ;;  %v3099_v25 = vmul.f32 0.083333336, %v3081_v10  ;;  %v3083_v49 = vadd.f32 %v3082_v19, %v8516_v33  ;;  %v3087_v46 = vmul.f32 0.083333336, %v3063_v0 }
 0x93e   :  { %5572 = vtanh.f32 %v3110_v55  ;;  %v3113_v21 = vadd.f32 %v3097_v63, %v7071_v12  ;;  %v3098_v2 = vmul.f32 0.083333336, %v2994_v16  ;;  %v3111_v54 = vadd.f32 %v3095_v48, %v7095_v60 }
 0x93f   :  { %5574 = vtanh.f32 %v3112_v41  ;;  %v3115_v17 = vadd.f32 %v3099_v25, %v7080_v53  ;;  %v3100_v58 = vmul.f32 0.083333336, %v3083_v49  ;;  %v3108_v15 = vadd.f32 %v3092_v52, %v7099_v62 }
 0x940   :  { %5576 = vtanh.f32 %v3113_v21  ;;  %v3114_v5 = vadd.f32 %v3098_v2, %v7083_v59  ;;  %v3107_v14 = vadd.f32 %v3091_v7, %v7103_v40  ;;  %v3104_v51 = vadd.f32 %v3088_v26, %v7107_v11 }
 0x941   :  { %5578 = vtanh.f32 %v3115_v17  ;;  %v3116_v19 = vadd.f32 %v3100_v58, %v7091_v1  ;;  %v3103_v10 = vadd.f32 %v3087_v46, %v7111_v61  ;;  %v7222_v0 = vpop.eup %5562  ;;  %v3146_v49 = vmul.f32 0.33333334, %v7132_v50 }
 0x942   :  { %5580 = vtanh.f32 %v3114_v5  ;;  %v3148_v21 = vmul.f32 0.33333334, %v7134_v28  ;;  %v3145_v2 = vmul.f32 0.33333334, %v7130_v42  ;;  %v3147_v58 = vmul.f32 0.33333334, %v7137_v31 }
 0x943   :  { %5582 = vtanh.f32 %v3116_v19  ;;  %v7224_v48 = vpop.eup %5564  ;;  %v3142_v46 = vmul.f32 0.33333334, %v7128_v3  ;;  %v3144_v19 = vmul.f32 0.33333334, %v7141_v6  ;;  %v3143_v33 = vmul.f32 0.33333334, %v7145_v13 }
 0x944   :  { %5584 = vtanh.f32 %v3111_v54 }
 0x945   :  { %5586 = vtanh.f32 %v3108_v15  ;;  %v7226_v52 = vpop.eup %5566 }
 0x946   :  { %5588 = vtanh.f32 %v3107_v14  ;;  %v3141_v14 = vmul.f32 0.33333334, %v7126_v56  ;;  %v3140_v56 = vmul.f32 0.33333334, %v7149_v38  ;;  %v3136_v38 = vmul.f32 0.33333334, %v7157_v20 }
 0x947   :  { %5590 = vtanh.f32 %v3104_v51  ;;  %v7228_v4 = vpop.eup %5568 }
 0x948   :  { %5592 = vtanh.f32 %v3103_v10  ;;  %8586 = vst [vmem:[#allocation12_spill] sm:$0xff] %v7228_v4 }
 0x949   :  { %v7230_v55 = vpop.eup %5570 }
 0x94b   :  { %v7232_v63 = vpop.eup %5572 }
 0x94c   :  { %v7234_v16 = vpop.eup %5574 }
 0x94d   :  { %v7236_v41 = vpop.eup %5576 }
 0x94e   :  { %v7238_v25 = vpop.eup %5578  ;;  %v3161_v15 = vsub.f32 %v7236_v41, %v3145_v2  ;;  %v3157_v2 = vsub.f32 %v7230_v55, %v3141_v14 }
 0x94f   :  { %v7241_v7 = vpop.eup %5580  ;;  %v3163_v10 = vsub.f32 %v7238_v25, %v3147_v58 }
 0x950   :  { %v7245_v26 = vpop.eup %5582  ;;  %v3162_v17 = vsub.f32 %v7241_v7, %v3146_v49  ;;  %v3158_v49 = vsub.f32 %v7232_v63, %v3142_v46  ;;  %v3154_v46 = vsub.f32 %v7228_v4, %v3138_v22 }
 0x951   :  { %v7250_v54 = vpop.eup %5584  ;;  %v3164_v5 = vsub.f32 %v7245_v26, %v3148_v21  ;;  %v3160_v21 = vsub.f32 %v7234_v16, %v3144_v19 }
 0x952   :  { %8587 = vst [vmem:[#allocation13_spill] sm:$0xff] %v7250_v54  ;;  %v7256_v51 = vpop.eup %5586  ;;  %3189 = vmatprep.subr.mxu0 %v3162_v17  ;;  %v3137_v17 = vmul.f32 0.33333334, %v7121_v8  ;;  %v3159_v58 = vsub.f32 %v7250_v54, %v3143_v33 }
 0x953   :  { %8588 = vst [vmem:[#allocation35_spill] sm:$0xff] %v7256_v51  ;;  %v7262_v35 = vpop.eup %5588  ;;  %3278 = vmatprep.subr.mxu1 %v3164_v5  ;;  %3190 = vmatpush1.msra.mxu0 %v3161_v15  ;;  %v3134_v5 = vmul.f32 0.33333334, %v7118_v30  ;;  %v3156_v19 = vsub.f32 %v7256_v51, %v3140_v56 }
 0x954   :  { %8589 = vst [vmem:[#allocation43_spill] sm:$0xff] %v7262_v35  ;;  %v7268_v6 = vpop.eup %5590  ;;  %3279 = vmatpush1.msra.mxu1 %v3163_v10  ;;  %3191 = vmatprep.subr.mxu0 %v3158_v49  ;;  %v3153_v14 = vsub.f32 %v7226_v52, %v3137_v17  ;;  %v3133_v10 = vmul.f32 0.33333334, %v7115_v44  ;;  %v3155_v22 = vsub.f32 %v7262_v35, %v3139_v43  ;;  %v3135_v49 = vmul.f32 0.33333334, %v7161_v39 }
 0x955   :  { %8590 = vst [vmem:[#allocation34_spill] sm:$0xff] %v7268_v6  ;;  %v7274_v15 = vpop.eup %5592  ;;  %3280 = vmatprep.subr.mxu1 %v3160_v21  ;;  %3192 = vmatpush1.msra.mxu0 %v3157_v2  ;;  %v3150_v33 = vsub.f32 %v7224_v48, %v3134_v5  ;;  %v3152_v21 = vsub.f32 %v7268_v6, %v3136_v38  ;;  %v8592_v38 = vld [vmem:[#allocation38_spill] sm:$0xff] }
 0x956   :  { %8591 = vst [vmem:[#allocation42_spill] sm:$0xff] %v7274_v15  ;;  %3281 = vmatpush1.msra.mxu1 %v3159_v58  ;;  %3193 = vmatprep.subr.mxu0 %v3154_v46  ;;  %v3149_v56 = vsub.f32 %v7222_v0, %v3133_v10  ;;  %v3151_v2 = vsub.f32 %v7274_v15, %v3135_v49 }
 0x957   :  { %3282 = vmatprep.subr.mxu1 %v3156_v19  ;;  %3194 = vmatpush1.msra.mxu0 %v3153_v14 }
 0x958   :  { %3283 = vmatpush1.msra.mxu1 %v3155_v22  ;;  %3195 = vmatprep.subr.mxu0 %v3150_v33  ;;  %v8593_v33 = vld [vmem:[#allocation39_spill] sm:$0xff] }
 0x959   :  { %3284 = vmatprep.subr.mxu1 %v3152_v21  ;;  %3196 = vmatpush1.msra.mxu0 %v3149_v56 }
 0x95a   :  { %3285 = vmatpush1.msra.mxu1 %v3151_v2  ;;  %5191 = vmatmul.mubr.msk.f32.vlgmr.msra.gmra.mxu0 %vm479_vm2, %v8542_v23 }
 0x95b   :  { %5195 = vmatmul.mubr.msk.f32.vlgmr.msra.gmra.mxu1 %vm479_vm2, %v8542_v23  ;;  %3235 = vmatprep.mubr.f32.mxu0 %v8541_v37 }
 0x95c   :  { %3324 = vmatprep.mubr.f32.mxu1 %v8541_v37 }
 0x95e   :  { %5192 = vmatmul.mubr.msk.f32.gmra.mxu0 %vm479_vm2, %v8543_v27 }
 0x95f   :  { %5196 = vmatmul.mubr.msk.f32.gmra.mxu1 %vm479_vm2, %v8543_v27  ;;  %3241 = vmatprep.mubr.f32.mxu0 %v8541_v37 }
 0x960   :  { %3330 = vmatprep.mubr.f32.mxu1 %v8541_v37 }
 0x962   :  { %5193 = vmatmul.mubr.msk.f32.gmra.mxu0 %vm479_vm2, %v8544_v32 }
 0x963   :  { %5197 = vmatmul.mubr.msk.f32.gmra.mxu1 %vm479_vm2, %v8544_v32  ;;  %3247 = vmatprep.mubr.f32.mxu0 %v8541_v37 }
 0x964   :  { %3336 = vmatprep.mubr.f32.mxu1 %v8541_v37 }
 0x966   :  { %5194 = vmatmul.mubr.msk.f32.gmra.mxu0 %vm479_vm2, %v8545_v9 }
 0x967   :  { %5198 = vmatmul.mubr.msk.f32.gmra.mxu1 %vm479_vm2, %v8545_v9  ;;  %3487 = vmatprep.mubr.f32.mxu0 %v8541_v37 }
 0x968   :  { %3576 = vmatprep.mubr.f32.mxu1 %v8541_v37 }
 0xa1a   :  { %v3231_v43 = vpop.f32.mrf.mxu0 }
 0xa1b   :  { %v3232_v17 = vadd.f32 %v3231_v43, %v8592_v38  ;;  %v3320_v58 = vpop.f32.mrf.mxu1 }
 0xa1c   :  { %v3233_v46 = vpop.f32.mrf.mxu0 }
 0xa1d   :  { %v3343_v5 = vmul.f32 0.25, %v3232_v17  ;;  %v3234_v19 = vadd.f32 %v3233_v46, %v8592_v38  ;;  %v3322_v14 = vpop.f32.mrf.mxu1  ;;  %v8594_v46 = vld [vmem:[#allocation40_spill] sm:$0xff] }
 0xa1e   :  { %v3237_v10 = vpop.f32.mrf.mxu0 }
 0xa1f   :  { %v3344_v22 = vmul.f32 0.25, %v3234_v19  ;;  %v3238_v49 = vadd.f32 %v3237_v10, %v8593_v33  ;;  %v3326_v21 = vpop.f32.mrf.mxu1  ;;  %v3359_v2 = vadd.f32 %v3343_v5, %v7043_v24  ;;  %v3321_v19 = vadd.f32 %v3320_v58, %v8592_v38 }
 0xa20   :  { %v3239_v56 = vpop.f32.mrf.mxu0 }
 0xa21   :  { %v3347_v9 = vmul.f32 0.25, %v3238_v49  ;;  %v3240_v32 = vadd.f32 %v3239_v56, %v8593_v33  ;;  %v3328_v27 = vpop.f32.mrf.mxu1  ;;  %v3360_v43 = vadd.f32 %v3344_v22, %v7046_v36  ;;  %5594 = vtanh.f32 %v3359_v2 }
 0xa22   :  { %v3243_v37 = vpop.f32.mrf.mxu0  ;;  %v3329_v17 = vadd.f32 %v3328_v27, %v8593_v33  ;;  %v3323_v27 = vadd.f32 %v3322_v14, %v8592_v38 }
 0xa23   :  { %v3348_v23 = vmul.f32 0.25, %v3240_v32  ;;  %v3244_v39 = vadd.f32 %v3243_v37, %v8594_v46  ;;  %v3332_v15 = vpop.f32.mrf.mxu1  ;;  %v3363_v10 = vadd.f32 %v3347_v9, %v7050_v18  ;;  %5596 = vtanh.f32 %v3360_v43  ;;  %v8595_v18 = vld [vmem:[#allocation41_spill] sm:$0xff] }
 0xa24   :  { %v3333_v20 = vadd.f32 %v3332_v15, %v8594_v46  ;;  %v3245_v5 = vpop.f32.mrf.mxu0  ;;  %v3327_v37 = vadd.f32 %v3326_v21, %v8593_v33  ;;  %v3350_v24 = vmul.f32 0.25, %v3329_v17 }
 0xa25   :  { %v3364_v49 = vadd.f32 %v3348_v23, %v7053_v45  ;;  %v3351_v56 = vmul.f32 0.25, %v3244_v39  ;;  %v3246_v22 = vadd.f32 %v3245_v5, %v8594_v46  ;;  %v3334_v36 = vpop.f32.mrf.mxu1  ;;  %5598 = vtanh.f32 %v3363_v10 }
 0xa26   :  { %v3335_v32 = vadd.f32 %v3334_v36, %v8594_v46  ;;  %v3249_v58 = vpop.f32.mrf.mxu0  ;;  %v3353_v23 = vmul.f32 0.25, %v3333_v20 }
 0xa27   :  { %v3367_v9 = vadd.f32 %v3351_v56, %v7058_v29  ;;  %v3352_v15 = vmul.f32 0.25, %v3246_v22  ;;  %v3250_v2 = vadd.f32 %v3249_v58, %v8595_v18  ;;  %v3338_v6 = vpop.f32.mrf.mxu1  ;;  %5600 = vtanh.f32 %v3364_v49 }
 0xa28   :  { %v3354_v39 = vmul.f32 0.25, %v3335_v32  ;;  %v3339_v5 = vadd.f32 %v3338_v6, %v8595_v18  ;;  %v3251_v43 = vpop.f32.mrf.mxu0  ;;  %v3349_v58 = vmul.f32 0.25, %v3327_v37  ;;  %v3346_v6 = vmul.f32 0.25, %v3323_v27 }
 0xa29   :  { %v3368_v14 = vadd.f32 %v3352_v15, %v7062_v47  ;;  %v3355_v21 = vmul.f32 0.25, %v3250_v2  ;;  %v3252_v36 = vadd.f32 %v3251_v43, %v8595_v18  ;;  %v3340_v46 = vpop.f32.mrf.mxu1  ;;  %5602 = vtanh.f32 %v3367_v9 }
 0xa2a   :  { %v3370_v17 = vadd.f32 %v3354_v39, %v7087_v57  ;;  %v3357_v56 = vmul.f32 0.25, %v3339_v5  ;;  %v3341_v22 = vadd.f32 %v3340_v46, %v8595_v18  ;;  %v3345_v15 = vmul.f32 0.25, %v3321_v19 }
 0xa2b   :  { %5604 = vtanh.f32 %v3368_v14  ;;  %v3371_v20 = vadd.f32 %v3355_v21, %v7071_v12  ;;  %v3356_v10 = vmul.f32 0.25, %v3252_v36  ;;  %v3369_v2 = vadd.f32 %v3353_v23, %v7095_v60 }
 0xa2c   :  { %5606 = vtanh.f32 %v3370_v17  ;;  %v3373_v49 = vadd.f32 %v3357_v56, %v7080_v53  ;;  %v3358_v32 = vmul.f32 0.25, %v3341_v22  ;;  %v3366_v39 = vadd.f32 %v3350_v24, %v7099_v62 }
 0xa2d   :  { %5608 = vtanh.f32 %v3371_v20  ;;  %v3372_v9 = vadd.f32 %v3356_v10, %v7083_v59  ;;  %v3365_v37 = vadd.f32 %v3349_v58, %v7103_v40  ;;  %v3362_v27 = vadd.f32 %v3346_v6, %v7107_v11 }
 0xa2e   :  { %5610 = vtanh.f32 %v3373_v49  ;;  %v3374_v46 = vadd.f32 %v3358_v32, %v7091_v1  ;;  %v3361_v5 = vadd.f32 %v3345_v15, %v7111_v61  ;;  %v7342_v19 = vpop.eup %5594  ;;  %v3404_v22 = vsub.f32 %v7132_v50, %v7241_v7 }
 0xa2f   :  { %5612 = vtanh.f32 %v3372_v9  ;;  %v3406_v20 = vsub.f32 %v7134_v28, %v7245_v26  ;;  %v3403_v10 = vsub.f32 %v7130_v42, %v7236_v41  ;;  %v3392_v6 = vsub.f32 %v7118_v30, %v7224_v48 }
 0xa30   :  { %5614 = vtanh.f32 %v3374_v46  ;;  %v7344_v23 = vpop.eup %5596  ;;  %v3391_v49 = vsub.f32 %v7115_v44, %v7222_v0  ;;  %v3400_v9 = vsub.f32 %v7128_v3, %v7232_v63 }
 0xa31   :  { %5616 = vtanh.f32 %v3369_v2  ;;  %v3405_v2 = vsub.f32 %v7137_v31, %v7238_v25 }
 0xa32   :  { %5618 = vtanh.f32 %v3366_v39  ;;  %v7346_v24 = vpop.eup %5598  ;;  %v3395_v39 = vsub.f32 %v7121_v8, %v7226_v52  ;;  %v3401_v8 = vsub.f32 %v7145_v13, %v7250_v54 }
 0xa33   :  { %5620 = vtanh.f32 %v3365_v37 }
 0xa34   :  { %5622 = vtanh.f32 %v3362_v27  ;;  %v7348_v43 = vpop.eup %5600 }
 0xa35   :  { %5624 = vtanh.f32 %v3361_v5  ;;  %8596 = vst [vmem:[#allocation6_spill] sm:$0xff] %v7348_v43  ;;  %v8598_v5 = vld [vmem:[#allocation27_spill] sm:$0xff] }
 0xa36   :  { %v7350_v14 = vpop.eup %5602  ;;  %v3402_v18 = vsub.f32 %v8598_v5, %v7234_v16 }
 0xa38   :  { %v7352_v21 = vpop.eup %5604 }
 0xa39   :  { %v7354_v36 = vpop.eup %5606  ;;  %v3416_v31 = vadd.f32 %v7352_v21, %v3400_v9 }
 0xa3a   :  { %v7356_v17 = vpop.eup %5608  ;;  %v3418_v5 = vadd.f32 %v7354_v36, %v3402_v18 }
 0xa3b   :  { %v7358_v56 = vpop.eup %5610  ;;  %v3419_v27 = vadd.f32 %v7356_v17, %v3403_v10 }
 0xa3c   :  { %v7362_v58 = vpop.eup %5612  ;;  %v3421_v3 = vadd.f32 %v7358_v56, %v3405_v2 }
 0xa3d   :  { %v7372_v32 = vpop.eup %5614  ;;  %v3420_v15 = vadd.f32 %v7362_v58, %v3404_v22  ;;  %v8599_v22 = vld [vmem:[#allocation20_spill] sm:$0xff] }
 0xa3e   :  { %v7381_v46 = vpop.eup %5616  ;;  %v3422_v37 = vadd.f32 %v7372_v32, %v3406_v20  ;;  %v3399_v33 = vsub.f32 %v8599_v22, %v7230_v55  ;;  %v8601_v20 = vld [vmem:[#allocation25_spill] sm:$0xff] }
 0xa3f   :  { %8597 = vst [vmem:[#allocation5_spill] sm:$0xff] %v7381_v46  ;;  %v7389_v38 = vpop.eup %5618  ;;  %3447 = vmatprep.subr.mxu0 %v3420_v15  ;;  %v3396_v42 = vsub.f32 %v8601_v20, %v7228_v4  ;;  %v8603_v15 = vld [vmem:[#allocation28_spill] sm:$0xff]  ;;  %v3417_v9 = vadd.f32 %v7381_v46, %v3401_v8  ;;  %v3397_v20 = vsub.f32 %v7153_v34, %v7262_v35 }
 0xa40   :  { %8600 = vst [vmem:[#allocation44_spill] sm:$0xff] %v7389_v38  ;;  %v7397_v10 = vpop.eup %5620  ;;  %3536 = vmatprep.subr.mxu1 %v3422_v37  ;;  %3448 = vmatpush1.msra.mxu0 %v3419_v27  ;;  %v3415_v22 = vadd.f32 %v7350_v14, %v3399_v33  ;;  %v3398_v28 = vsub.f32 %v8603_v15, %v7256_v51  ;;  %v8604_v27 = vld [vmem:[#allocation34_spill] sm:$0xff]  ;;  %v8605_v15 = vld [vmem:[#allocation29_spill] sm:$0xff] }
 0xa41   :  { %8602 = vst [vmem:[#allocation21_spill] sm:$0xff] %v7397_v10  ;;  %v7403_v2 = vpop.eup %5622  ;;  %3537 = vmatpush1.msra.mxu1 %v3421_v3  ;;  %3449 = vmatprep.subr.mxu0 %v3416_v31  ;;  %v3412_v13 = vadd.f32 %v7348_v43, %v3396_v42  ;;  %v3411_v33 = vadd.f32 %v7346_v24, %v3395_v39  ;;  %v8606_v42 = vld [vmem:[#allocation42_spill] sm:$0xff]  ;;  %v8607_v31 = vld [vmem:[#allocation11_spill] sm:$0xff] }
 0xa42   :  { %v7409_v37 = vpop.eup %5624  ;;  %3538 = vmatprep.subr.mxu1 %v3418_v5  ;;  %3450 = vmatpush1.msra.mxu0 %v3415_v22  ;;  %v3414_v18 = vadd.f32 %v7389_v38, %v3398_v28  ;;  %v3394_v30 = vsub.f32 %v8605_v15, %v8604_v27  ;;  %v3413_v8 = vadd.f32 %v7397_v10, %v3397_v20  ;;  %v8613_v20 = vld [vmem:[#allocation32_spill] sm:$0xff] }
 0xa43   :  { %3539 = vmatpush1.msra.mxu1 %v3417_v9  ;;  %3451 = vmatprep.subr.mxu0 %v3412_v13  ;;  %v3408_v3 = vadd.f32 %v7344_v23, %v3392_v6  ;;  %v3393_v34 = vsub.f32 %v8607_v31, %v8606_v42  ;;  %v3407_v28 = vadd.f32 %v7342_v19, %v3391_v49  ;;  %v8608_v13 = vld [vmem:[#allocation8_spill] sm:$0xff]  ;;  %v8609_v6 = vmov 0.0   ;;  %v8612_v49 = vld [vmem:[#allocation9_spill] sm:$0xff] }
 0xa44   :  { %3540 = vmatprep.subr.mxu1 %v3414_v18  ;;  %3452 = vmatpush1.msra.mxu0 %v3411_v33  ;;  %v3410_v5 = vadd.f32 %v7403_v2, %v3394_v30  ;;  %v8610_v30 = vld [vmem:[#allocation7_spill] sm:$0xff]  ;;  %v8616_v10 = vld [vmem:[#allocation48_spill] sm:$0xff] }
 0xa45   :  { %3541 = vmatpush1.msra.mxu1 %v3413_v8  ;;  %3453 = vmatprep.subr.mxu0 %v3408_v3  ;;  %v3409_v39 = vadd.f32 %v7409_v37, %v3393_v34  ;;  %v8611_v34 = vld [vmem:[#allocation10_spill] sm:$0xff] }
 0xa46   :  { %3542 = vmatprep.subr.mxu1 %v3410_v5  ;;  %3454 = vmatpush1.msra.mxu0 %v3407_v28 }
 0xa47   :  { %3543 = vmatpush1.msra.mxu1 %v3409_v39  ;;  %5199 = vmatmul.mubr.msk.f32.vlgmr.msra.gmra.mxu0 %vm479_vm2, %v8608_v13 }
 0xa48   :  { %5203 = vmatmul.mubr.msk.f32.vlgmr.msra.gmra.mxu1 %vm479_vm2, %v8608_v13  ;;  %3493 = vmatprep.mubr.f32.mxu0 %v8609_v6 }
 0xa49   :  { %3582 = vmatprep.mubr.f32.mxu1 %v8609_v6 }
 0xa4b   :  { %5200 = vmatmul.mubr.msk.f32.gmra.mxu0 %vm479_vm2, %v8610_v30 }
 0xa4c   :  { %5204 = vmatmul.mubr.msk.f32.gmra.mxu1 %vm479_vm2, %v8610_v30  ;;  %3499 = vmatprep.mubr.f32.mxu0 %v8609_v6 }
 0xa4d   :  { %3588 = vmatprep.mubr.f32.mxu1 %v8609_v6 }
 0xa4f   :  { %5201 = vmatmul.mubr.msk.f32.gmra.mxu0 %vm479_vm2, %v8611_v34 }
 0xa50   :  { %5205 = vmatmul.mubr.msk.f32.gmra.mxu1 %vm479_vm2, %v8611_v34  ;;  %3505 = vmatprep.mubr.f32.mxu0 %v8609_v6  ;;  %v8614_v34 = vld [vmem:[#allocation33_spill] sm:$0xff] }
 0xa51   :  { %3594 = vmatprep.mubr.f32.mxu1 %v8609_v6 }
 0xa53   :  { %5202 = vmatmul.mubr.msk.f32.gmra.mxu0 %vm479_vm2, %v8612_v49 }
 0xa54   :  { %5206 = vmatmul.mubr.msk.f32.gmra.mxu1 %vm479_vm2, %v8612_v49  ;;  %3777 = vmatprep.mubr.f32.mxu0 %v8609_v6  ;;  %v8615_v49 = vld [vmem:[#allocation52_spill] sm:$0xff] }
 0xa55   :  { %3848 = vmatprep.mubr.f32.mxu1 %v8609_v6 }
 0xb07   :  { %v3489_v22 = vpop.f32.mrf.mxu0 }
 0xb08   :  { %v3490_v9 = vadd.f32 %v3489_v22, %v8613_v20  ;;  %v3578_v18 = vpop.f32.mrf.mxu1 }
 0xb09   :  { %v3491_v33 = vpop.f32.mrf.mxu0 }
 0xb0a   :  { %v3601_v8 = vmul.f32 0.25, %v3490_v9  ;;  %v3492_v3 = vadd.f32 %v3491_v33, %v8613_v20  ;;  %v3580_v5 = vpop.f32.mrf.mxu1  ;;  %v8617_v33 = vld [vmem:[#allocation30_spill] sm:$0xff] }
 0xb0b   :  { %v3495_v28 = vpop.f32.mrf.mxu0 }
 0xb0c   :  { %v3602_v39 = vmul.f32 0.25, %v3492_v3  ;;  %v3496_v30 = vadd.f32 %v3495_v28, %v8614_v34  ;;  %v3584_v13 = vpop.f32.mrf.mxu1  ;;  %v3617_v15 = vadd.f32 %v3601_v8, %v8615_v49  ;;  %v3579_v3 = vadd.f32 %v3578_v18, %v8613_v20  ;;  %v8618_v28 = vld [vmem:[#allocation54_spill] sm:$0xff] }
 0xb0d   :  { %v3497_v31 = vpop.f32.mrf.mxu0 }
 0xb0e   :  { %v3605_v50 = vmul.f32 0.25, %v3496_v30  ;;  %v3498_v6 = vadd.f32 %v3497_v31, %v8614_v34  ;;  %v3586_v44 = vpop.f32.mrf.mxu1  ;;  %v3618_v22 = vadd.f32 %v3602_v39, %v8616_v10  ;;  %5626 = vtanh.f32 %v3617_v15 }
 0xb0f   :  { %v3501_v35 = vpop.f32.mrf.mxu0  ;;  %v3587_v9 = vadd.f32 %v3586_v44, %v8614_v34  ;;  %v3581_v44 = vadd.f32 %v3580_v5, %v8613_v20 }
 0xb10   :  { %v3606_v38 = vmul.f32 0.25, %v3498_v6  ;;  %v3502_v51 = vadd.f32 %v3501_v35, %v8617_v33  ;;  %v3590_v43 = vpop.f32.mrf.mxu1  ;;  %v3621_v4 = vadd.f32 %v3605_v50, %v8618_v28  ;;  %5628 = vtanh.f32 %v3618_v22  ;;  %v8619_v28 = vld [vmem:[#allocation31_spill] sm:$0xff] }
 0xb11   :  { %v3591_v46 = vadd.f32 %v3590_v43, %v8617_v33  ;;  %v3503_v8 = vpop.f32.mrf.mxu0  ;;  %v3585_v35 = vadd.f32 %v3584_v13, %v8614_v34  ;;  %v3608_v49 = vmul.f32 0.25, %v3587_v9 }
 0xb12   :  { %v3622_v31 = vadd.f32 %v3606_v38, %v7053_v45  ;;  %v3609_v30 = vmul.f32 0.25, %v3502_v51  ;;  %v3504_v39 = vadd.f32 %v3503_v8, %v8617_v33  ;;  %v3592_v10 = vpop.f32.mrf.mxu1  ;;  %5630 = vtanh.f32 %v3621_v4 }
 0xb13   :  { %v3593_v6 = vadd.f32 %v3592_v10, %v8617_v33  ;;  %v3507_v18 = vpop.f32.mrf.mxu0  ;;  %v3611_v51 = vmul.f32 0.25, %v3591_v46 }
 0xb14   :  { %v3625_v50 = vadd.f32 %v3609_v30, %v7058_v29  ;;  %v3610_v43 = vmul.f32 0.25, %v3504_v39  ;;  %v3508_v15 = vadd.f32 %v3507_v18, %v8619_v28  ;;  %v3596_v54 = vpop.f32.mrf.mxu1  ;;  %5632 = vtanh.f32 %v3622_v31 }
 0xb15   :  { %v3612_v38 = vmul.f32 0.25, %v3593_v6  ;;  %v3597_v8 = vadd.f32 %v3596_v54, %v8619_v28  ;;  %v3509_v22 = vpop.f32.mrf.mxu0  ;;  %v3607_v18 = vmul.f32 0.25, %v3585_v35  ;;  %v3604_v54 = vmul.f32 0.25, %v3581_v44 }
 0xb16   :  { %v3626_v5 = vadd.f32 %v3610_v43, %v7062_v47  ;;  %v3613_v13 = vmul.f32 0.25, %v3508_v15  ;;  %v3510_v10 = vadd.f32 %v3509_v22, %v8619_v28  ;;  %v3598_v33 = vpop.f32.mrf.mxu1  ;;  %5634 = vtanh.f32 %v3625_v50 }
 0xb17   :  { %v3628_v9 = vadd.f32 %v3612_v38, %v7087_v57  ;;  %v3615_v30 = vmul.f32 0.25, %v3597_v8  ;;  %v3599_v39 = vadd.f32 %v3598_v33, %v8619_v28  ;;  %v3603_v43 = vmul.f32 0.25, %v3579_v3 }
 0xb18   :  { %5636 = vtanh.f32 %v3626_v5  ;;  %v3629_v4 = vadd.f32 %v3613_v13, %v7071_v12  ;;  %v3614_v46 = vmul.f32 0.25, %v3510_v10  ;;  %v3627_v15 = vadd.f32 %v3611_v51, %v7095_v60 }
 0xb19   :  { %5638 = vtanh.f32 %v3628_v9  ;;  %v3631_v31 = vadd.f32 %v3615_v30, %v7080_v53  ;;  %v3616_v6 = vmul.f32 0.25, %v3599_v39  ;;  %v3624_v38 = vadd.f32 %v3608_v49, %v7099_v62 }
 0xb1a   :  { %5640 = vtanh.f32 %v3629_v4  ;;  %v3630_v50 = vadd.f32 %v3614_v46, %v7083_v59  ;;  %v3623_v35 = vadd.f32 %v3607_v18, %v7103_v40  ;;  %v3620_v44 = vadd.f32 %v3604_v54, %v7107_v11 }
 0xb1b   :  { %5642 = vtanh.f32 %v3631_v31  ;;  %v3632_v33 = vadd.f32 %v3616_v6, %v7091_v1  ;;  %v3619_v8 = vadd.f32 %v3603_v43, %v7111_v61  ;;  %v7478_v3 = vpop.eup %5626  ;;  %v3649_v51 = vadd.f32 %v7342_v19, %v7222_v0 }
 0xb1c   :  { %5644 = vtanh.f32 %v3630_v50  ;;  %v3662_v49 = vadd.f32 %v7362_v58, %v7241_v7  ;;  %v3650_v5 = vadd.f32 %v7344_v23, %v7224_v48  ;;  %v3664_v13 = vadd.f32 %v7372_v32, %v7245_v26 }
 0xb1d   :  { %5646 = vtanh.f32 %v3632_v33  ;;  %v7482_v22 = vpop.eup %5628  ;;  %v3661_v10 = vadd.f32 %v7356_v17, %v7236_v41  ;;  %v3651_v9 = vadd.f32 %v7409_v37, %v8606_v42  ;;  %v3663_v19 = vadd.f32 %v7358_v56, %v7238_v25  ;;  %v8620_v25 = vld [vmem:[#allocation13_spill] sm:$0xff] }
 0xb1e   :  { %5648 = vtanh.f32 %v3627_v15  ;;  %v3658_v7 = vadd.f32 %v7352_v21, %v7232_v63  ;;  %v3653_v48 = vadd.f32 %v7346_v24, %v7226_v52  ;;  %v3660_v26 = vadd.f32 %v7354_v36, %v7234_v16  ;;  %v8621_v56 = vld [vmem:[#allocation5_spill] sm:$0xff]  ;;  %v8622_v63 = vld [vmem:[#allocation12_spill] sm:$0xff]  ;;  %v8623_v21 = vld [vmem:[#allocation6_spill] sm:$0xff] }
 0xb1f   :  { %5650 = vtanh.f32 %v3624_v38  ;;  %v7494_v0 = vpop.eup %5630  ;;  %v3657_v41 = vadd.f32 %v7350_v14, %v7230_v55  ;;  %v3652_v17 = vadd.f32 %v7403_v2, %v8604_v27  ;;  %v3665_v58 = vmul.f32 3.0, %v3649_v51  ;;  %v8624_v16 = vld [vmem:[#allocation35_spill] sm:$0xff]  ;;  %v8625_v36 = vld [vmem:[#allocation44_spill] sm:$0xff]  ;;  %v8627_v14 = vld [vmem:[#allocation21_spill] sm:$0xff] }
 0xb20   :  { %5652 = vtanh.f32 %v3623_v35  ;;  %v3678_v37 = vmul.f32 3.0, %v3662_v49  ;;  %v3659_v42 = vadd.f32 %v8621_v56, %v8620_v25  ;;  %v3654_v30 = vadd.f32 %v8623_v21, %v8622_v63  ;;  %v8626_v55 = vld [vmem:[#allocation43_spill] sm:$0xff]  ;;  %v8628_v33 = vld [vmem:[#allocation49_spill] sm:$0xff]  ;;  %v8631_v56 = vld [vmem:[#allocation24_spill] sm:$0xff] }
 0xb21   :  { %5654 = vtanh.f32 %v3620_v44  ;;  %v5633_v23 = vpop.eup %5632  ;;  %v3666_v52 = vmul.f32 3.0, %v3650_v5  ;;  %v3680_v39 = vmul.f32 3.0, %v3664_v13  ;;  %v3677_v18 = vmul.f32 3.0, %v3661_v10  ;;  %v8630_v13 = vld [vmem:[#allocation55_spill] sm:$0xff] }
 0xb22   :  { %5656 = vtanh.f32 %v3619_v8  ;;  %v3656_v4 = vadd.f32 %v8625_v36, %v8624_v16  ;;  %v3655_v46 = vadd.f32 %v8627_v14, %v8626_v55  ;;  %v3679_v27 = vmul.f32 3.0, %v3663_v19  ;;  %v8629_v8 = vld [vmem:[#allocation26_spill] sm:$0xff]  ;;  %v8634_v16 = vld [vmem:[#allocation17_spill] sm:$0xff]  ;;  %v8636_v14 = vld [vmem:[#allocation27_spill] sm:$0xff] }
 0xb23   :  { %v5635_v32 = vpop.eup %5634  ;;  %v3674_v54 = vmul.f32 3.0, %v3658_v7  ;;  %v3669_v31 = vmul.f32 3.0, %v3653_v48  ;;  %v3667_v6 = vmul.f32 3.0, %v3651_v9  ;;  %v3676_v15 = vmul.f32 3.0, %v3660_v26  ;;  %v8632_v19 = vld [vmem:[#allocation18_spill] sm:$0xff] }
 0xb24   :  { %v3673_v50 = vmul.f32 3.0, %v3657_v41  ;;  %v3668_v38 = vmul.f32 3.0, %v3652_v17  ;;  %v3681_v35 = vadd.f32 %v8628_v33, %v3665_v58  ;;  %v3694_v51 = vadd.f32 %v8629_v8, %v3678_v37  ;;  %v8633_v41 = vld [vmem:[#allocation23_spill] sm:$0xff]  ;;  %v8635_v36 = vld [vmem:[#allocation22_spill] sm:$0xff]  ;;  %v8637_v33 = vld [vmem:[#allocation20_spill] sm:$0xff] }
 0xb25   :  { %v5637_v24 = vpop.eup %5636  ;;  %v3675_v49 = vmul.f32 3.0, %v3659_v42  ;;  %v3670_v5 = vmul.f32 3.0, %v3654_v30  ;;  %v3682_v10 = vadd.f32 %v8630_v13, %v3666_v52  ;;  %v3696_v63 = vadd.f32 %v8631_v56, %v3680_v39  ;;  %v8640_v56 = vld [vmem:[#allocation28_spill] sm:$0xff] }
 0xb26   :  { %v5639_v2 = vpop.eup %5638  ;;  %v3693_v7 = vadd.f32 %v8632_v19, %v3677_v18  ;;  %v3672_v48 = vmul.f32 3.0, %v3656_v4  ;;  %v3671_v9 = vmul.f32 3.0, %v3655_v46  ;;  %v3695_v17 = vadd.f32 %v8633_v41, %v3679_v27  ;;  %v8638_v46 = vld [vmem:[#allocation16_spill] sm:$0xff]  ;;  %v8641_v19 = vld [vmem:[#allocation19_spill] sm:$0xff] }
 0xb27   :  { %v5641_v43 = vpop.eup %5640  ;;  %v3690_v58 = vadd.f32 %v8634_v16, %v3674_v54  ;;  %v3685_v55 = vadd.f32 %v8635_v36, %v3669_v31  ;;  %v3692_v52 = vadd.f32 %v8636_v14, %v3676_v15  ;;  %v3689_v8 = vadd.f32 %v8637_v33, %v3673_v50  ;;  %v8650_v16 = vld [vmem:[#allocation51_spill] sm:$0xff]  ;;  %v8653_v33 = vld [vmem:[#allocation53_spill] sm:$0xff] }
 0xb28   :  { %v5643_v44 = vpop.eup %5642  ;;  %v3709_v30 = vadd.f32 %v5641_v43, %v3693_v7  ;;  %v3691_v13 = vadd.f32 %v8638_v46, %v3675_v49  ;;  %v3687_v7 = vadd.f32 %v8641_v19, %v3671_v9  ;;  %v3697_v9 = vadd.f32 %v7478_v3, %v3681_v35  ;;  %v8648_v35 = vld [vmem:[#allocation9_spill] sm:$0xff]  ;;  %v8655_v46 = vld [vmem:[#allocation46_spill] sm:$0xff] }
 0xb29   :  { %v5645_v25 = vpop.eup %5644  ;;  %v3711_v18 = vadd.f32 %v5643_v44, %v3695_v17  ;;  %v3706_v4 = vadd.f32 %v5637_v24, %v3690_v58  ;;  %v3708_v54 = vadd.f32 %v5639_v2, %v3692_v52  ;;  %v3705_v31 = vadd.f32 %v5635_v32, %v3689_v8 }
 0xb2a   :  { %v5647_v21 = vpop.eup %5646  ;;  %v3710_v26 = vadd.f32 %v5645_v25, %v3694_v51  ;;  %v8639_v51 = vld [vmem:[#allocation25_spill] sm:$0xff]  ;;  %v3701_v49 = vadd.f32 %v7494_v0, %v3685_v55  ;;  %v3698_v2 = vadd.f32 %v7482_v22, %v3682_v10  ;;  %v5790_v0 = vld [vmem:[%s8104_s3] sm:$0xf]  ;;  %v8644_v3 = vmov 0.0   ;;  %v8645_v22 = vld [vmem:[#allocation8_spill] sm:$0xff] }
 0xb2b   :  { %v5649_v37 = vpop.eup %5648  ;;  %v3712_v42 = vadd.f32 %v5647_v21, %v3696_v63  ;;  %v3686_v25 = vadd.f32 %v8639_v51, %v3670_v5  ;;  %v3688_v63 = vadd.f32 %v8640_v56, %v3672_v48  ;;  %v8642_v5 = vld [vmem:[#allocation29_spill] sm:$0xff]  ;;  %v8643_v48 = vld [vmem:[#allocation11_spill] sm:$0xff] }
 0xb2c   :  { %v5651_v39 = vpop.eup %5650  ;;  %3737 = vmatprep.subr.mxu0 %v3710_v26  ;;  %v3707_v15 = vadd.f32 %v5649_v37, %v3691_v13  ;;  %v3684_v21 = vadd.f32 %v8642_v5, %v3668_v38  ;;  %v3683_v41 = vadd.f32 %v8643_v48, %v3667_v6  ;;  %v8646_v6 = vld [vmem:[#allocation7_spill] sm:$0xff]  ;;  %v8647_v38 = vld [vmem:[#allocation10_spill] sm:$0xff]  ;;  %v8659_v5 = vld [vmem:[#allocation48_spill] sm:$0xff] }
 0xb2d   :  { %v5653_v27 = vpop.eup %5652  ;;  %3808 = vmatprep.subr.mxu1 %v3712_v42  ;;  %3738 = vmatpush1.msra.mxu0 %v3709_v30  ;;  %v3702_v50 = vadd.f32 %v5633_v23, %v3686_v25  ;;  %v3704_v24 = vadd.f32 %v5651_v39, %v3688_v63  ;;  %v8651_v37 = vld [vmem:[#allocation47_spill] sm:$0xff]  ;;  %v8660_v48 = vld [vmem:[#allocation54_spill] sm:$0xff] }
 0xb2e   :  { %v5655_v43 = vpop.eup %5654  ;;  %3809 = vmatpush1.msra.mxu1 %v3711_v18  ;;  %3739 = vmatprep.subr.mxu0 %v3706_v4  ;;  %v3703_v32 = vadd.f32 %v5653_v27, %v3687_v7 }
 0xb2f   :  { %v5657_v44 = vpop.eup %5656  ;;  %3810 = vmatprep.subr.mxu1 %v3708_v54  ;;  %3740 = vmatpush1.msra.mxu0 %v3705_v31  ;;  %v3700_v23 = vadd.f32 %v5655_v43, %v3684_v21 }
 0xb30   :  { %3811 = vmatpush1.msra.mxu1 %v3707_v15  ;;  %3741 = vmatprep.subr.mxu0 %v3702_v50  ;;  %v3699_v17 = vadd.f32 %v5657_v44, %v3683_v41  ;;  %v8658_v44 = vld [vmem:[#allocation52_spill] sm:$0xff] }
 0xb31   :  { %3812 = vmatprep.subr.mxu1 %v3704_v24  ;;  %3742 = vmatpush1.msra.mxu0 %v3701_v49 }
 0xb32   :  { %3813 = vmatpush1.msra.mxu1 %v3703_v32  ;;  %3743 = vmatprep.subr.mxu0 %v3698_v2 }
 0xb33   :  { %3814 = vmatprep.subr.mxu1 %v3700_v23  ;;  %3744 = vmatpush1.msra.mxu0 %v3697_v9 }
 0xb34   :  { %3815 = vmatpush1.msra.mxu1 %v3699_v17  ;;  %5207 = vmatmul.mubr.msk.f32.vlgmr.msra.gmra.mxu0 %vm479_vm2, %v5790_v0 }
 0xb35   :  { %5208 = vmatmul.mubr.msk.f32.vlgmr.msra.gmra.mxu1 %vm479_vm2, %v5790_v0  ;;  %3891 = vmatprep.subr.mxu0 %v3710_v26  ;;  %v8649_v26 = vld [vmem:[#allocation50_spill] sm:$0xff] }
 0xb36   :  { %3980 = vmatprep.subr.mxu1 %v3712_v42  ;;  %3892 = vmatpush1.msra.mxu0 %v3709_v30  ;;  %v2661_v58 = vadd.f32 %v8650_v16, %v8649_v26  ;;  %v2663_v42 = vadd.f32 %v8651_v37, %v8649_v26  ;;  %v2662_v8 = vadd.f32 %v8653_v33, %v8649_v26  ;;  %v8664_v33 = vld [vmem:[#allocation37_spill] sm:$0xff] }
 0xb37   :  { %3981 = vmatpush1.msra.mxu1 %v3711_v18  ;;  %3893 = vmatprep.subr.mxu0 %v3706_v4  ;;  %v2664_v13 = vadd.f32 %v8655_v46, %v8649_v26 }
 0xb38   :  { %3982 = vmatprep.subr.mxu1 %v3708_v54  ;;  %3894 = vmatpush1.msra.mxu0 %v3705_v31 }
 0xb39   :  { %3983 = vmatpush1.msra.mxu1 %v3707_v15  ;;  %3895 = vmatprep.subr.mxu0 %v3702_v50 }
 0xb3a   :  { %3984 = vmatprep.subr.mxu1 %v3704_v24  ;;  %3896 = vmatpush1.msra.mxu0 %v3701_v49 }
 0xb3b   :  { %3985 = vmatpush1.msra.mxu1 %v3703_v32  ;;  %3897 = vmatprep.subr.mxu0 %v3698_v2 }
 0xb3c   :  { %3986 = vmatprep.subr.mxu1 %v3700_v23  ;;  %3898 = vmatpush1.msra.mxu0 %v3697_v9 }
 0xb3d   :  { %3931 = vmatprep.mubr.f32.mxu0 %v8644_v3  ;;  %3987 = vmatpush1.msra.mxu1 %v3699_v17 }
 0xb3e   :  { %4020 = vmatprep.mubr.f32.mxu1 %v8644_v3  ;;  %5209 = vmatmul.mubr.msk.f32.vlgmr.msra.gmra.mxu0 %vm479_vm2, %v8645_v22 }
 0xb3f   :  { %5213 = vmatmul.mubr.msk.f32.vlgmr.msra.gmra.mxu1 %vm479_vm2, %v8645_v22  ;;  %3937 = vmatprep.mubr.f32.mxu0 %v8644_v3 }
 0xb40   :  { %4026 = vmatprep.mubr.f32.mxu1 %v8644_v3 }
 0xb42   :  { %5210 = vmatmul.mubr.msk.f32.gmra.mxu0 %vm479_vm2, %v8646_v6 }
 0xb43   :  { %5214 = vmatmul.mubr.msk.f32.gmra.mxu1 %vm479_vm2, %v8646_v6  ;;  %3943 = vmatprep.mubr.f32.mxu0 %v8644_v3 }
 0xb44   :  { %4032 = vmatprep.mubr.f32.mxu1 %v8644_v3 }
 0xb46   :  { %5211 = vmatmul.mubr.msk.f32.gmra.mxu0 %vm479_vm2, %v8647_v38 }
 0xb47   :  { %5215 = vmatmul.mubr.msk.f32.gmra.mxu1 %vm479_vm2, %v8647_v38  ;;  %3949 = vmatprep.mubr.f32.mxu0 %v8644_v3 }
 0xb48   :  { %4038 = vmatprep.mubr.f32.mxu1 %v8644_v3 }
 0xb4a   :  { %5212 = vmatmul.mubr.msk.f32.gmra.mxu0 %vm479_vm2, %v8648_v35 }
 0xb4b   :  { %5216 = vmatmul.mubr.msk.f32.gmra.mxu1 %vm479_vm2, %v8648_v35  ;;  %4173 = vmatprep.mubr.f32.mxu0 %v8644_v3 }
 0xb4c   :  { %4262 = vmatprep.mubr.f32.mxu1 %v8644_v3 }
 0xbf4   :  { %v3779_v10 = vpop.f32.mrf.mxu0 }
 0xbf5   :  { %v3855_v36 = vmul.f32 0.03125, %v3779_v10  ;;  %v3850_v55 = vpop.f32.mrf.mxu1  ;;  %v8661_v10 = vld [vmem:[#allocation36_spill] sm:$0xff] }
 0xbf6   :  { %v3857_v30 = vmul.f32 0.03125, %v3850_v55  ;;  %v3781_v14 = vpop.f32.mrf.mxu0 }
 0xbf7   :  { %v7570_v52 = vadd.f32 %v3855_v36, %v2661_v58  ;;  %v3856_v39 = vmul.f32 0.03125, %v3781_v14  ;;  %v3852_v18 = vpop.f32.mrf.mxu1 }
 0xbf8   :  { %v7574_v4 = vadd.f32 %v3857_v30, %v2663_v42  ;;  %v3858_v51 = vmul.f32 0.03125, %v3852_v18 }
 0xbf9   :  { %8652 = vst [vmem:[#allocation15_spill] sm:$0xff] %v7570_v52  ;;  %v7578_v25 = vadd.f32 %v3856_v39, %v2662_v8 }
 0xbfa   :  { %8654 = vst [vmem:[#allocation34_spill] sm:$0xff] %v7574_v4  ;;  %v7580_v27 = vadd.f32 %v3858_v51, %v2664_v13 }
 0xbfb   :  { %8656 = vst [vmem:[#allocation42_spill] sm:$0xff] %v7578_v25 }
 0xbfc   :  { %8657 = vst [vmem:[#allocation13_spill] sm:$0xff] %v7580_v27 }
 0xbfe   :  { %v3933_v54 = vpop.f32.mrf.mxu0 }
 0xbff   :  { %v4022_v31 = vpop.f32.mrf.mxu1  ;;  %v4045_v56 = vmul.f32 0.03125, %v3933_v54 }
 0xc00   :  { %v3935_v63 = vpop.f32.mrf.mxu0  ;;  %v4047_v36 = vmul.f32 0.03125, %v4022_v31 }
 0xc01   :  { %v4046_v43 = vmul.f32 0.03125, %v3935_v63  ;;  %v4024_v15 = vpop.f32.mrf.mxu1  ;;  %v4061_v24 = vadd.f32 %v4045_v56, %v8658_v44  ;;  %v8666_v56 = vld [vmem:[#allocation45_spill] sm:$0xff] }
 0xc02   :  { %v3939_v50 = vpop.f32.mrf.mxu0  ;;  %v4048_v14 = vmul.f32 0.03125, %v4024_v15 }
 0xc03   :  { %v4049_v19 = vmul.f32 0.03125, %v3939_v50  ;;  %v4028_v7 = vpop.f32.mrf.mxu1  ;;  %v4062_v21 = vadd.f32 %v4046_v43, %v8659_v5  ;;  %v7587_v16 = vadd.f32 %v4061_v24, %v8661_v10 }
 0xc04   :  { %v3941_v49 = vpop.f32.mrf.mxu0  ;;  %v4051_v39 = vmul.f32 0.03125, %v4028_v7 }
 0xc05   :  { %v4050_v32 = vmul.f32 0.03125, %v3941_v49  ;;  %v4030_v2 = vpop.f32.mrf.mxu1  ;;  %v4065_v41 = vadd.f32 %v4049_v19, %v8660_v48  ;;  %8662 = vst [vmem:[#allocation5_spill] sm:$0xff] %v7587_v16  ;;  %v7590_v55 = vadd.f32 %v4062_v21, %v8661_v10  ;;  %5658 = vtanh.f32 %v7587_v16  ;;  %v8667_v21 = vld [vmem:[#allocation14_spill] sm:$0xff] }
 0xc06   :  { %v3945_v23 = vpop.f32.mrf.mxu0 }
 0xc07   :  { %v4066_v9 = vadd.f32 %v4050_v32, %v7053_v45  ;;  %v4053_v17 = vmul.f32 0.03125, %v3945_v23  ;;  %v4034_v0 = vpop.f32.mrf.mxu1  ;;  %8663 = vst [vmem:[#allocation12_spill] sm:$0xff] %v7590_v55  ;;  %v7594_v8 = vadd.f32 %v4065_v41, %v8664_v33  ;;  %5660 = vtanh.f32 %v7590_v55 }
 0xc08   :  { %v3947_v58 = vpop.f32.mrf.mxu0  ;;  %v4055_v13 = vmul.f32 0.03125, %v4034_v0  ;;  %v4064_v41 = vadd.f32 %v4048_v14, %v7107_v11 }
 0xc09   :  { %v4069_v37 = vadd.f32 %v4053_v17, %v7058_v29  ;;  %v4054_v42 = vmul.f32 0.03125, %v3947_v58  ;;  %v4036_v30 = vpop.f32.mrf.mxu1  ;;  %8665 = vst [vmem:[#allocation6_spill] sm:$0xff] %v7594_v8  ;;  %v7597_v46 = vadd.f32 %v4066_v9, %v8664_v33  ;;  %v4052_v29 = vmul.f32 0.03125, %v4030_v2 }
 0xc0a   :  { %v4056_v45 = vmul.f32 0.03125, %v4036_v30  ;;  %v3951_v18 = vpop.f32.mrf.mxu0  ;;  %5662 = vtanh.f32 %v7594_v8  ;;  %v4071_v5 = vadd.f32 %v4055_v13, %v7095_v60  ;;  %v7651_v9 = vadd.f32 %v4064_v41, %v8661_v10 }
 0xc0b   :  { %v4070_v51 = vadd.f32 %v4054_v42, %v7062_v47  ;;  %v4057_v54 = vmul.f32 0.03125, %v3951_v18  ;;  %v4040_v31 = vpop.f32.mrf.mxu1  ;;  %v7602_v63 = vadd.f32 %v4069_v37, %v8666_v56  ;;  %5664 = vtanh.f32 %v7597_v46 }
 0xc0c   :  { %v4059_v43 = vmul.f32 0.03125, %v4040_v31  ;;  %v3953_v15 = vpop.f32.mrf.mxu0  ;;  %v4072_v47 = vadd.f32 %v4056_v45, %v7087_v57  ;;  %v4067_v57 = vadd.f32 %v4051_v39, %v7103_v40  ;;  %v7639_v40 = vadd.f32 %v4071_v5, %v8666_v56 }
 0xc0d   :  { %v7606_v50 = vadd.f32 %v4070_v51, %v8666_v56  ;;  %v4073_v19 = vadd.f32 %v4057_v54, %v7071_v12  ;;  %v4058_v7 = vmul.f32 0.03125, %v3953_v15  ;;  %v4042_v44 = vpop.f32.mrf.mxu1  ;;  %v4068_v12 = vadd.f32 %v4052_v29, %v7099_v62 }
 0xc0e   :  { %v4075_v24 = vadd.f32 %v4059_v43, %v7080_v53  ;;  %v4060_v49 = vmul.f32 0.03125, %v4042_v44  ;;  %5666 = vtanh.f32 %v7602_v63  ;;  %v7647_v11 = vadd.f32 %v4067_v57, %v8664_v33 }
 0xc0f   :  { %v7615_v32 = vadd.f32 %v4073_v19, %v8667_v21  ;;  %v4074_v2 = vadd.f32 %v4058_v7, %v7083_v59  ;;  %5668 = vtanh.f32 %v7606_v50  ;;  %v7631_v59 = vadd.f32 %v4072_v47, %v8666_v56 }
 0xc10   :  { %v4076_v48 = vadd.f32 %v4060_v49, %v7091_v1  ;;  %v7624_v53 = vadd.f32 %v4075_v24, %v8667_v21  ;;  %v4063_v1 = vadd.f32 %v4047_v36, %v7111_v61  ;;  %v7643_v23 = vadd.f32 %v4068_v12, %v8664_v33 }
 0xc11   :  { %v7627_v60 = vadd.f32 %v4074_v2, %v8667_v21  ;;  %5670 = vtanh.f32 %v7615_v32 }
 0xc12   :  { %v7635_v62 = vadd.f32 %v4076_v48, %v8667_v21  ;;  %v7655_v61 = vadd.f32 %v4063_v1, %v8661_v10  ;;  %v7659_v17 = vpop.eup %5658 }
 0xc13   :  { %5672 = vtanh.f32 %v7627_v60  ;;  %8668 = vst [vmem:[#allocation35_spill] sm:$0xff] %v7659_v17 }
 0xc14   :  { %5674 = vtanh.f32 %v7635_v62  ;;  %v7662_v0 = vpop.eup %5660 }
 0xc15   :  { %5676 = vtanh.f32 %v7624_v53  ;;  %8669 = vst [vmem:[#allocation44_spill] sm:$0xff] %v7662_v0 }
 0xc16   :  { %5678 = vtanh.f32 %v7631_v59 }
 0xc17   :  { %5680 = vtanh.f32 %v7639_v40  ;;  %v7665_v58 = vpop.eup %5662 }
 0xc18   :  { %5682 = vtanh.f32 %v7643_v23  ;;  %8670 = vst [vmem:[#allocation43_spill] sm:$0xff] %v7665_v58  ;;  %v7668_v36 = vpop.eup %5664 }
 0xc19   :  { %5684 = vtanh.f32 %v7647_v11  ;;  %8671 = vst [vmem:[#allocation21_spill] sm:$0xff] %v7668_v36 }
 0xc1a   :  { %5686 = vtanh.f32 %v7651_v9 }
 0xc1b   :  { %5688 = vtanh.f32 %v7655_v61  ;;  %v7670_v10 = vpop.eup %5666 }
 0xc1c   :  { %8672 = vst [vmem:[#allocation49_spill] sm:$0xff] %v7670_v10  ;;  %v7672_v37 = vpop.eup %5668 }
 0xc1d   :  { %8673 = vst [vmem:[#allocation26_spill] sm:$0xff] %v7672_v37 }
 0xc1e   :  { %v7674_v42 = vpop.eup %5670 }
 0xc1f   :  { %8674 = vst [vmem:[#allocation55_spill] sm:$0xff] %v7674_v42 }
 0xc20   :  { %v7676_v30 = vpop.eup %5672 }
 0xc21   :  { %8675 = vst [vmem:[#allocation24_spill] sm:$0xff] %v7676_v30  ;;  %v7678_v14 = vpop.eup %5674  ;;  %4133 = vmatprep.subr.mxu0 %v7676_v30 }
 0xc22   :  { %8676 = vst [vmem:[#allocation18_spill] sm:$0xff] %v7678_v14  ;;  %v7681_v33 = vpop.eup %5676  ;;  %4222 = vmatprep.subr.mxu1 %v7678_v14  ;;  %4134 = vmatpush1.msra.mxu0 %v7674_v42 }
 0xc23   :  { %8677 = vst [vmem:[#allocation23_spill] sm:$0xff] %v7681_v33  ;;  %v7685_v39 = vpop.eup %5678  ;;  %4223 = vmatpush1.msra.mxu1 %v7681_v33  ;;  %4135 = vmatprep.subr.mxu0 %v7672_v37 }
 0xc24   :  { %8678 = vst [vmem:[#allocation17_spill] sm:$0xff] %v7685_v39  ;;  %v7689_v45 = vpop.eup %5680  ;;  %4224 = vmatprep.subr.mxu1 %v7685_v39  ;;  %4136 = vmatpush1.msra.mxu0 %v7670_v10 }
 0xc25   :  { %8679 = vst [vmem:[#allocation22_spill] sm:$0xff] %v7689_v45  ;;  %v7693_v18 = vpop.eup %5682  ;;  %4225 = vmatpush1.msra.mxu1 %v7689_v45  ;;  %4137 = vmatprep.subr.mxu0 %v7668_v36 }
 0xc26   :  { %8680 = vst [vmem:[#allocation27_spill] sm:$0xff] %v7693_v18  ;;  %v7697_v13 = vpop.eup %5684  ;;  %4226 = vmatprep.subr.mxu1 %v7693_v18  ;;  %4138 = vmatpush1.msra.mxu0 %v7665_v58 }
 0xc27   :  { %8681 = vst [vmem:[#allocation20_spill] sm:$0xff] %v7697_v13  ;;  %v7701_v51 = vpop.eup %5686  ;;  %4227 = vmatpush1.msra.mxu1 %v7697_v13  ;;  %4139 = vmatprep.subr.mxu0 %v7662_v0 }
 0xc28   :  { %8682 = vst [vmem:[#allocation16_spill] sm:$0xff] %v7701_v51  ;;  %v7705_v54 = vpop.eup %5688  ;;  %4228 = vmatprep.subr.mxu1 %v7701_v51  ;;  %4140 = vmatpush1.msra.mxu0 %v7659_v17 }
 0xc29   :  { %8683 = vst [vmem:[#allocation25_spill] sm:$0xff] %v7705_v54  ;;  %4229 = vmatpush1.msra.mxu1 %v7705_v54  ;;  %5217 = vmatmul.mubr.msk.f32.vlgmr.msra.gmra.mxu0 %vm479_vm2, %v8645_v22 }
 0xc2a   :  { %5221 = vmatmul.mubr.msk.f32.vlgmr.msra.gmra.mxu1 %vm479_vm2, %v8645_v22  ;;  %4179 = vmatprep.mubr.f32.mxu0 %v8644_v3 }
 0xc2b   :  { %4268 = vmatprep.mubr.f32.mxu1 %v8644_v3 }
 0xc2d   :  { %5218 = vmatmul.mubr.msk.f32.gmra.mxu0 %vm479_vm2, %v8646_v6 }
 0xc2e   :  { %5222 = vmatmul.mubr.msk.f32.gmra.mxu1 %vm479_vm2, %v8646_v6  ;;  %4185 = vmatprep.mubr.f32.mxu0 %v8644_v3 }
 0xc2f   :  { %4274 = vmatprep.mubr.f32.mxu1 %v8644_v3 }
 0xc31   :  { %5219 = vmatmul.mubr.msk.f32.gmra.mxu0 %vm479_vm2, %v8647_v38 }
 0xc32   :  { %5223 = vmatmul.mubr.msk.f32.gmra.mxu1 %vm479_vm2, %v8647_v38  ;;  %4191 = vmatprep.mubr.f32.mxu0 %v8644_v3 }
 0xc33   :  { %4280 = vmatprep.mubr.f32.mxu1 %v8644_v3 }
 0xc35   :  { %5220 = vmatmul.mubr.msk.f32.gmra.mxu0 %vm479_vm2, %v8648_v35 }
 0xc36   :  { %5224 = vmatmul.mubr.msk.f32.gmra.mxu1 %vm479_vm2, %v8648_v35  ;;  %4431 = vmatprep.mubr.f32.mxu0 %v8644_v3 }
 0xc37   :  { %4520 = vmatprep.mubr.f32.mxu1 %v8644_v3 }
 0xce9   :  { %v4175_v31 = vpop.f32.mrf.mxu0 }
 0xcea   :  { %v4176_v29 = vadd.f32 %v4175_v31, %v8613_v20  ;;  %v4264_v56 = vpop.f32.mrf.mxu1 }
 0xceb   :  { %v4177_v43 = vpop.f32.mrf.mxu0 }
 0xcec   :  { %v4287_v15 = vmul.f32 0.083333336, %v4176_v29  ;;  %v4178_v19 = vadd.f32 %v4177_v43, %v8613_v20  ;;  %v4266_v7 = vpop.f32.mrf.mxu1  ;;  %v8684_v29 = vld [vmem:[#allocation30_spill] sm:$0xff] }
 0xced   :  { %v4181_v44 = vpop.f32.mrf.mxu0 }
 0xcee   :  { %v4288_v47 = vmul.f32 0.083333336, %v4178_v19  ;;  %v4182_v24 = vadd.f32 %v4181_v44, %v8614_v34  ;;  %v4270_v49 = vpop.f32.mrf.mxu1  ;;  %v4303_v21 = vadd.f32 %v4287_v15, %v7587_v16  ;;  %v4265_v19 = vadd.f32 %v4264_v56, %v8613_v20 }
 0xcef   :  { %v4183_v5 = vpop.f32.mrf.mxu0 }
 0xcf0   :  { %v4291_v2 = vmul.f32 0.083333336, %v4182_v24  ;;  %v4184_v12 = vadd.f32 %v4183_v5, %v8614_v34  ;;  %v4272_v48 = vpop.f32.mrf.mxu1  ;;  %v4304_v57 = vadd.f32 %v4288_v47, %v7590_v55  ;;  %5690 = vtanh.f32 %v4303_v21 }
 0xcf1   :  { %v4187_v41 = vpop.f32.mrf.mxu0  ;;  %v4273_v31 = vadd.f32 %v4272_v48, %v8614_v34  ;;  %v4271_v48 = vadd.f32 %v4270_v49, %v8614_v34  ;;  %v4340_v34 = vmul.f32 0.33333334, %v7668_v36  ;;  %v4341_v36 = vmul.f32 0.33333334, %v7697_v13 }
 0xcf2   :  { %v4292_v1 = vmul.f32 0.083333336, %v4184_v12  ;;  %v4188_v43 = vadd.f32 %v4187_v41, %v8684_v29  ;;  %v4276_v27 = vpop.f32.mrf.mxu1  ;;  %v4307_v44 = vadd.f32 %v4291_v2, %v7594_v8  ;;  %5692 = vtanh.f32 %v4304_v57 }
 0xcf3   :  { %v4277_v25 = vadd.f32 %v4276_v27, %v8684_v29  ;;  %v4189_v15 = vpop.f32.mrf.mxu0  ;;  %v4267_v12 = vadd.f32 %v4266_v7, %v8613_v20  ;;  %v4294_v52 = vmul.f32 0.083333336, %v4273_v31 }
 0xcf4   :  { %v4308_v24 = vadd.f32 %v4292_v1, %v7597_v46  ;;  %v4295_v5 = vmul.f32 0.083333336, %v4188_v43  ;;  %v4190_v47 = vadd.f32 %v4189_v15, %v8684_v29  ;;  %v4278_v4 = vpop.f32.mrf.mxu1  ;;  %5694 = vtanh.f32 %v4307_v44 }
 0xcf5   :  { %v4279_v41 = vadd.f32 %v4278_v4, %v8684_v29  ;;  %v4193_v56 = vpop.f32.mrf.mxu0  ;;  %v4297_v1 = vmul.f32 0.083333336, %v4277_v25 }
 0xcf6   :  { %v4311_v2 = vadd.f32 %v4295_v5, %v7602_v63  ;;  %v4296_v27 = vmul.f32 0.083333336, %v4190_v47  ;;  %v4194_v21 = vadd.f32 %v4193_v56, %v8619_v28  ;;  %v4282_v26 = vpop.f32.mrf.mxu1  ;;  %5696 = vtanh.f32 %v4308_v24 }
 0xcf7   :  { %v4298_v43 = vmul.f32 0.083333336, %v4279_v41  ;;  %v4283_v15 = vadd.f32 %v4282_v26, %v8619_v28  ;;  %v4195_v57 = vpop.f32.mrf.mxu0  ;;  %v4293_v56 = vmul.f32 0.083333336, %v4271_v48  ;;  %v4290_v26 = vmul.f32 0.083333336, %v4267_v12 }
 0xcf8   :  { %v4312_v7 = vadd.f32 %v4296_v27, %v7606_v50  ;;  %v4299_v49 = vmul.f32 0.083333336, %v4194_v21  ;;  %v4196_v4 = vadd.f32 %v4195_v57, %v8619_v28  ;;  %v4284_v29 = vpop.f32.mrf.mxu1  ;;  %5698 = vtanh.f32 %v4311_v2 }
 0xcf9   :  { %v4314_v31 = vadd.f32 %v4298_v43, %v7631_v59  ;;  %v4301_v5 = vmul.f32 0.083333336, %v4283_v15  ;;  %v4285_v47 = vadd.f32 %v4284_v29, %v8619_v28  ;;  %v4289_v27 = vmul.f32 0.083333336, %v4265_v19 }
 0xcfa   :  { %5700 = vtanh.f32 %v4312_v7  ;;  %v4315_v25 = vadd.f32 %v4299_v49, %v7615_v32  ;;  %v4300_v44 = vmul.f32 0.083333336, %v4196_v4  ;;  %v4313_v21 = vadd.f32 %v4297_v1, %v7639_v40 }
 0xcfb   :  { %5702 = vtanh.f32 %v4314_v31  ;;  %v4317_v24 = vadd.f32 %v4301_v5, %v7624_v53  ;;  %v4302_v41 = vmul.f32 0.083333336, %v4285_v47  ;;  %v4310_v43 = vadd.f32 %v4294_v52, %v7643_v23 }
 0xcfc   :  { %5704 = vtanh.f32 %v4315_v25  ;;  %v4316_v2 = vadd.f32 %v4300_v44, %v7627_v60  ;;  %v4309_v48 = vadd.f32 %v4293_v56, %v7647_v11  ;;  %v4306_v12 = vadd.f32 %v4290_v26, %v7651_v9 }
 0xcfd   :  { %5706 = vtanh.f32 %v4317_v24  ;;  %v4318_v29 = vadd.f32 %v4302_v41, %v7635_v62  ;;  %v4305_v15 = vadd.f32 %v4289_v27, %v7655_v61  ;;  %v7766_v19 = vpop.eup %5690  ;;  %v4348_v47 = vmul.f32 0.33333334, %v7676_v30 }
 0xcfe   :  { %5708 = vtanh.f32 %v4316_v2  ;;  %v4350_v25 = vmul.f32 0.33333334, %v7678_v14  ;;  %v4347_v44 = vmul.f32 0.33333334, %v7674_v42  ;;  %v4349_v41 = vmul.f32 0.33333334, %v7681_v33 }
 0xcff   :  { %5710 = vtanh.f32 %v4318_v29  ;;  %v7768_v1 = vpop.eup %5692  ;;  %v4344_v27 = vmul.f32 0.33333334, %v7672_v37  ;;  %v4346_v29 = vmul.f32 0.33333334, %v7685_v39  ;;  %v4345_v28 = vmul.f32 0.33333334, %v7689_v45 }
 0xd00   :  { %5712 = vtanh.f32 %v4313_v21 }
 0xd01   :  { %5714 = vtanh.f32 %v4310_v43  ;;  %v7770_v52 = vpop.eup %5694 }
 0xd02   :  { %5716 = vtanh.f32 %v4309_v48  ;;  %v4343_v48 = vmul.f32 0.33333334, %v7670_v10  ;;  %v4342_v10 = vmul.f32 0.33333334, %v7693_v18  ;;  %v4338_v18 = vmul.f32 0.33333334, %v7701_v51 }
 0xd03   :  { %5718 = vtanh.f32 %v4306_v12  ;;  %v7772_v57 = vpop.eup %5696 }
 0xd04   :  { %5720 = vtanh.f32 %v4305_v15  ;;  %8685 = vst [vmem:[#allocation28_spill] sm:$0xff] %v7772_v57 }
 0xd05   :  { %v7774_v7 = vpop.eup %5698 }
 0xd07   :  { %v7776_v49 = vpop.eup %5700 }
 0xd08   :  { %v7778_v4 = vpop.eup %5702 }
 0xd09   :  { %v7780_v31 = vpop.eup %5704 }
 0xd0a   :  { %v7782_v5 = vpop.eup %5706  ;;  %v4363_v43 = vsub.f32 %v7780_v31, %v4347_v44  ;;  %v4359_v44 = vsub.f32 %v7774_v7, %v4343_v48 }
 0xd0b   :  { %v7785_v56 = vpop.eup %5708  ;;  %v4365_v15 = vsub.f32 %v7782_v5, %v4349_v41 }
 0xd0c   :  { %v7789_v26 = vpop.eup %5710  ;;  %v4364_v24 = vsub.f32 %v7785_v56, %v4348_v47  ;;  %v4360_v47 = vsub.f32 %v7776_v49, %v4344_v27  ;;  %v4356_v27 = vsub.f32 %v7772_v57, %v4340_v34 }
 0xd0d   :  { %v7794_v21 = vpop.eup %5712  ;;  %v4366_v2 = vsub.f32 %v7789_v26, %v4350_v25  ;;  %v4362_v25 = vsub.f32 %v7778_v4, %v4346_v29 }
 0xd0e   :  { %8686 = vst [vmem:[#allocation19_spill] sm:$0xff] %v7794_v21  ;;  %v7800_v12 = vpop.eup %5714  ;;  %4391 = vmatprep.subr.mxu0 %v4364_v24  ;;  %v4339_v24 = vmul.f32 0.33333334, %v7665_v58  ;;  %v4361_v41 = vsub.f32 %v7794_v21, %v4345_v28 }
 0xd0f   :  { %8687 = vst [vmem:[#allocation29_spill] sm:$0xff] %v7800_v12  ;;  %v7806_v20 = vpop.eup %5716  ;;  %4480 = vmatprep.subr.mxu1 %v4366_v2  ;;  %4392 = vmatpush1.msra.mxu0 %v4363_v43  ;;  %v4336_v2 = vmul.f32 0.33333334, %v7662_v0  ;;  %v4358_v29 = vsub.f32 %v7800_v12, %v4342_v10 }
 0xd10   :  { %8688 = vst [vmem:[#allocation11_spill] sm:$0xff] %v7806_v20  ;;  %v7812_v39 = vpop.eup %5718  ;;  %4481 = vmatpush1.msra.mxu1 %v4365_v15  ;;  %4393 = vmatprep.subr.mxu0 %v4360_v47  ;;  %v4355_v48 = vsub.f32 %v7770_v52, %v4339_v24  ;;  %v4335_v15 = vmul.f32 0.33333334, %v7659_v17  ;;  %v4357_v34 = vsub.f32 %v7806_v20, %v4341_v36  ;;  %v4337_v47 = vmul.f32 0.33333334, %v7705_v54 }
 0xd11   :  { %8689 = vst [vmem:[#allocation51_spill] sm:$0xff] %v7812_v39  ;;  %v7818_v43 = vpop.eup %5720  ;;  %4482 = vmatprep.subr.mxu1 %v4362_v25  ;;  %4394 = vmatpush1.msra.mxu0 %v4359_v44  ;;  %v4352_v28 = vsub.f32 %v7768_v1, %v4336_v2  ;;  %v4354_v25 = vsub.f32 %v7812_v39, %v4338_v18  ;;  %v8691_v18 = vld [vmem:[#allocation38_spill] sm:$0xff] }
 0xd12   :  { %8690 = vst [vmem:[#allocation47_spill] sm:$0xff] %v7818_v43  ;;  %4483 = vmatpush1.msra.mxu1 %v4361_v41  ;;  %4395 = vmatprep.subr.mxu0 %v4356_v27  ;;  %v4351_v10 = vsub.f32 %v7766_v19, %v4335_v15  ;;  %v4353_v44 = vsub.f32 %v7818_v43, %v4337_v47 }
 0xd13   :  { %4484 = vmatprep.subr.mxu1 %v4358_v29  ;;  %4396 = vmatpush1.msra.mxu0 %v4355_v48 }
 0xd14   :  { %4485 = vmatpush1.msra.mxu1 %v4357_v34  ;;  %4397 = vmatprep.subr.mxu0 %v4352_v28  ;;  %v8692_v28 = vld [vmem:[#allocation39_spill] sm:$0xff] }
 0xd15   :  { %4486 = vmatprep.subr.mxu1 %v4354_v25  ;;  %4398 = vmatpush1.msra.mxu0 %v4351_v10 }
 0xd16   :  { %4487 = vmatpush1.msra.mxu1 %v4353_v44  ;;  %5225 = vmatmul.mubr.msk.f32.vlgmr.msra.gmra.mxu0 %vm479_vm2, %v8645_v22 }
 0xd17   :  { %5229 = vmatmul.mubr.msk.f32.vlgmr.msra.gmra.mxu1 %vm479_vm2, %v8645_v22  ;;  %4437 = vmatprep.mubr.f32.mxu0 %v8644_v3 }
 0xd18   :  { %4526 = vmatprep.mubr.f32.mxu1 %v8644_v3 }
 0xd1a   :  { %5226 = vmatmul.mubr.msk.f32.gmra.mxu0 %vm479_vm2, %v8646_v6 }
 0xd1b   :  { %5230 = vmatmul.mubr.msk.f32.gmra.mxu1 %vm479_vm2, %v8646_v6  ;;  %4443 = vmatprep.mubr.f32.mxu0 %v8644_v3 }
 0xd1c   :  { %4532 = vmatprep.mubr.f32.mxu1 %v8644_v3 }
 0xd1e   :  { %5227 = vmatmul.mubr.msk.f32.gmra.mxu0 %vm479_vm2, %v8647_v38 }
 0xd1f   :  { %5231 = vmatmul.mubr.msk.f32.gmra.mxu1 %vm479_vm2, %v8647_v38  ;;  %4449 = vmatprep.mubr.f32.mxu0 %v8644_v3 }
 0xd20   :  { %4538 = vmatprep.mubr.f32.mxu1 %v8644_v3 }
 0xd22   :  { %5228 = vmatmul.mubr.msk.f32.gmra.mxu0 %vm479_vm2, %v8648_v35 }
 0xd23   :  { %5232 = vmatmul.mubr.msk.f32.gmra.mxu1 %vm479_vm2, %v8648_v35  ;;  %4689 = vmatprep.mubr.f32.mxu0 %v8644_v3 }
 0xd24   :  { %4778 = vmatprep.mubr.f32.mxu1 %v8644_v3 }
 0xdd6   :  { %v4433_v36 = vpop.f32.mrf.mxu0 }
 0xdd7   :  { %v4434_v24 = vadd.f32 %v4433_v36, %v8691_v18  ;;  %v4522_v41 = vpop.f32.mrf.mxu1 }
 0xdd8   :  { %v4435_v27 = vpop.f32.mrf.mxu0 }
 0xdd9   :  { %v4545_v2 = vmul.f32 0.25, %v4434_v24  ;;  %v4436_v29 = vadd.f32 %v4435_v27, %v8691_v18  ;;  %v4524_v48 = vpop.f32.mrf.mxu1  ;;  %v8693_v27 = vld [vmem:[#allocation40_spill] sm:$0xff] }
 0xdda   :  { %v4439_v15 = vpop.f32.mrf.mxu0 }
 0xddb   :  { %v4546_v34 = vmul.f32 0.25, %v4436_v29  ;;  %v4440_v47 = vadd.f32 %v4439_v15, %v8692_v28  ;;  %v4528_v25 = vpop.f32.mrf.mxu1  ;;  %v4561_v44 = vadd.f32 %v4545_v2, %v7587_v16  ;;  %v4523_v29 = vadd.f32 %v4522_v41, %v8691_v18 }
 0xddc   :  { %v4441_v10 = vpop.f32.mrf.mxu0 }
 0xddd   :  { %v4549_v35 = vmul.f32 0.25, %v4440_v47  ;;  %v4442_v38 = vadd.f32 %v4441_v10, %v8692_v28  ;;  %v4530_v6 = vpop.f32.mrf.mxu1  ;;  %v4562_v36 = vadd.f32 %v4546_v34, %v7590_v55  ;;  %5722 = vtanh.f32 %v4561_v44 }
 0xdde   :  { %v4445_v3 = vpop.f32.mrf.mxu0  ;;  %v4531_v24 = vadd.f32 %v4530_v6, %v8692_v28  ;;  %v4525_v6 = vadd.f32 %v4524_v48, %v8691_v18 }
 0xddf   :  { %v4550_v22 = vmul.f32 0.25, %v4442_v38  ;;  %v4446_v54 = vadd.f32 %v4445_v3, %v8693_v27  ;;  %v4534_v43 = vpop.f32.mrf.mxu1  ;;  %v4565_v15 = vadd.f32 %v4549_v35, %v7594_v8  ;;  %5724 = vtanh.f32 %v4562_v36  ;;  %v8694_v8 = vld [vmem:[#allocation41_spill] sm:$0xff] }
 0xde0   :  { %v4535_v51 = vadd.f32 %v4534_v43, %v8693_v27  ;;  %v4447_v2 = vpop.f32.mrf.mxu0  ;;  %v4529_v3 = vadd.f32 %v4528_v25, %v8692_v28  ;;  %v4552_v16 = vmul.f32 0.25, %v4531_v24 }
 0xde1   :  { %v4566_v47 = vadd.f32 %v4550_v22, %v7597_v46  ;;  %v4553_v10 = vmul.f32 0.25, %v4446_v54  ;;  %v4448_v34 = vadd.f32 %v4447_v2, %v8693_v27  ;;  %v4536_v55 = vpop.f32.mrf.mxu1  ;;  %5726 = vtanh.f32 %v4565_v15 }
 0xde2   :  { %v4537_v38 = vadd.f32 %v4536_v55, %v8693_v27  ;;  %v4451_v41 = vpop.f32.mrf.mxu0  ;;  %v4555_v22 = vmul.f32 0.25, %v4535_v51 }
 0xde3   :  { %v4569_v35 = vadd.f32 %v4553_v10, %v7602_v63  ;;  %v4554_v43 = vmul.f32 0.25, %v4448_v34  ;;  %v4452_v44 = vadd.f32 %v4451_v41, %v8694_v8  ;;  %v4540_v39 = vpop.f32.mrf.mxu1  ;;  %5728 = vtanh.f32 %v4566_v47 }
 0xde4   :  { %v4556_v54 = vmul.f32 0.25, %v4537_v38  ;;  %v4541_v2 = vadd.f32 %v4540_v39, %v8694_v8  ;;  %v4453_v36 = vpop.f32.mrf.mxu0  ;;  %v4551_v10 = vmul.f32 0.25, %v4529_v3  ;;  %v4548_v39 = vmul.f32 0.25, %v4525_v6 }
 0xde5   :  { %v4570_v18 = vadd.f32 %v4554_v43, %v7606_v50  ;;  %v4557_v48 = vmul.f32 0.25, %v4452_v44  ;;  %v4454_v55 = vadd.f32 %v4453_v36, %v8694_v8  ;;  %v4542_v28 = vpop.f32.mrf.mxu1  ;;  %5730 = vtanh.f32 %v4569_v35 }
 0xde6   :  { %v4572_v25 = vadd.f32 %v4556_v54, %v7631_v59  ;;  %v4559_v24 = vmul.f32 0.25, %v4541_v2  ;;  %v4543_v27 = vadd.f32 %v4542_v28, %v8694_v8  ;;  %v4547_v38 = vmul.f32 0.25, %v4523_v29 }
 0xde7   :  { %5732 = vtanh.f32 %v4570_v18  ;;  %v4573_v51 = vadd.f32 %v4557_v48, %v7615_v32  ;;  %v4558_v15 = vmul.f32 0.25, %v4454_v55  ;;  %v4571_v41 = vadd.f32 %v4555_v22, %v7639_v40 }
 0xde8   :  { %5734 = vtanh.f32 %v4572_v25  ;;  %v4575_v47 = vadd.f32 %v4559_v24, %v7624_v53  ;;  %v4560_v34 = vmul.f32 0.25, %v4543_v27  ;;  %v4568_v43 = vadd.f32 %v4552_v16, %v7643_v23 }
 0xde9   :  { %5736 = vtanh.f32 %v4573_v51  ;;  %v4574_v35 = vadd.f32 %v4558_v15, %v7627_v60  ;;  %v4567_v3 = vadd.f32 %v4551_v10, %v7647_v11  ;;  %v4564_v6 = vadd.f32 %v4548_v39, %v7651_v9 }
 0xdea   :  { %5738 = vtanh.f32 %v4575_v47  ;;  %v4576_v8 = vadd.f32 %v4560_v34, %v7635_v62  ;;  %v4563_v44 = vadd.f32 %v4547_v38, %v7655_v61  ;;  %v7886_v29 = vpop.eup %5722  ;;  %v4606_v28 = vsub.f32 %v7676_v30, %v7785_v56 }
 0xdeb   :  { %5740 = vtanh.f32 %v4574_v35  ;;  %v4608_v24 = vsub.f32 %v7678_v14, %v7789_v26  ;;  %v4605_v27 = vsub.f32 %v7674_v42, %v7780_v31  ;;  %v4594_v10 = vsub.f32 %v7662_v0, %v7768_v1 }
 0xdec   :  { %5742 = vtanh.f32 %v4576_v8  ;;  %v7888_v22 = vpop.eup %5724  ;;  %v4593_v51 = vsub.f32 %v7659_v17, %v7766_v19  ;;  %v4607_v47 = vsub.f32 %v7681_v33, %v7782_v5  ;;  %v4602_v34 = vsub.f32 %v7672_v37, %v7776_v49  ;;  %v8697_v8 = vld [vmem:[#allocation17_spill] sm:$0xff] }
 0xded   :  { %5744 = vtanh.f32 %v4571_v41  ;;  %v4597_v38 = vsub.f32 %v7665_v58, %v7770_v52  ;;  %v4603_v58 = vsub.f32 %v7689_v45, %v7794_v21 }
 0xdee   :  { %5746 = vtanh.f32 %v4568_v43  ;;  %v7890_v16 = vpop.eup %5726 }
 0xdef   :  { %5748 = vtanh.f32 %v4567_v3  ;;  %v4604_v3 = vsub.f32 %v8697_v8, %v7778_v4 }
 0xdf0   :  { %5750 = vtanh.f32 %v4564_v6  ;;  %v7892_v54 = vpop.eup %5728  ;;  %v8698_v6 = vld [vmem:[#allocation49_spill] sm:$0xff] }
 0xdf1   :  { %5752 = vtanh.f32 %v4563_v44  ;;  %8695 = vst [vmem:[#allocation53_spill] sm:$0xff] %v7892_v54  ;;  %v4601_v44 = vsub.f32 %v8698_v6, %v7774_v7 }
 0xdf2   :  { %v7894_v2 = vpop.eup %5730 }
 0xdf3   :  { %v4617_v6 = vadd.f32 %v7894_v2, %v4601_v44  ;;  %v8703_v44 = vld [vmem:[#allocation51_spill] sm:$0xff] }
 0xdf4   :  { %v7896_v36 = vpop.eup %5732 }
 0xdf5   :  { %v7898_v18 = vpop.eup %5734  ;;  %v4618_v33 = vadd.f32 %v7896_v36, %v4602_v34 }
 0xdf6   :  { %v7900_v48 = vpop.eup %5736  ;;  %v4620_v8 = vadd.f32 %v7898_v18, %v4604_v3  ;;  %v4613_v3 = vadd.f32 %v7890_v16, %v4597_v38 }
 0xdf7   :  { %v7902_v55 = vpop.eup %5738  ;;  %v4621_v43 = vadd.f32 %v7900_v48, %v4605_v27 }
 0xdf8   :  { %v7906_v25 = vpop.eup %5740  ;;  %v4623_v37 = vadd.f32 %v7902_v55, %v4607_v47 }
 0xdf9   :  { %v7916_v15 = vpop.eup %5742  ;;  %v4622_v39 = vadd.f32 %v7906_v25, %v4606_v28 }
 0xdfa   :  { %v7925_v41 = vpop.eup %5744  ;;  %v4624_v35 = vadd.f32 %v7916_v15, %v4608_v24  ;;  %v8700_v24 = vld [vmem:[#allocation21_spill] sm:$0xff] }
 0xdfb   :  { %8696 = vst [vmem:[#allocation46_spill] sm:$0xff] %v7925_v41  ;;  %v7933_v28 = vpop.eup %5746  ;;  %4649 = vmatprep.subr.mxu0 %v4622_v39  ;;  %v4598_v42 = vsub.f32 %v8700_v24, %v7772_v57  ;;  %v8702_v39 = vld [vmem:[#allocation27_spill] sm:$0xff]  ;;  %v4619_v34 = vadd.f32 %v7925_v41, %v4603_v58  ;;  %v4599_v24 = vsub.f32 %v7697_v13, %v7806_v20 }
 0xdfc   :  { %8699 = vst [vmem:[#allocation52_spill] sm:$0xff] %v7933_v28  ;;  %v7941_v27 = vpop.eup %5748  ;;  %4738 = vmatprep.subr.mxu1 %v4624_v35  ;;  %4650 = vmatpush1.msra.mxu0 %v4621_v43  ;;  %v4600_v14 = vsub.f32 %v8702_v39, %v7800_v12  ;;  %v8704_v39 = vld [vmem:[#allocation16_spill] sm:$0xff] }
 0xdfd   :  { %8701 = vst [vmem:[#allocation48_spill] sm:$0xff] %v7941_v27  ;;  %v7947_v47 = vpop.eup %5750  ;;  %4739 = vmatpush1.msra.mxu1 %v4623_v37  ;;  %4651 = vmatprep.subr.mxu0 %v4618_v33  ;;  %v4614_v45 = vadd.f32 %v7892_v54, %v4598_v42  ;;  %v4596_v0 = vsub.f32 %v8704_v39, %v8703_v44  ;;  %v8705_v42 = vld [vmem:[#allocation47_spill] sm:$0xff]  ;;  %v8706_v33 = vld [vmem:[#allocation25_spill] sm:$0xff] }
 0xdfe   :  { %v7953_v35 = vpop.eup %5752  ;;  %4740 = vmatprep.subr.mxu1 %v4620_v8  ;;  %4652 = vmatpush1.msra.mxu0 %v4617_v6  ;;  %v4616_v43 = vadd.f32 %v7933_v28, %v4600_v14  ;;  %v4615_v58 = vadd.f32 %v7941_v27, %v4599_v24  ;;  %v4610_v37 = vadd.f32 %v7888_v22, %v4594_v10  ;;  %v8708_v10 = vmov 0.0   ;;  %v8712_v24 = vld [vmem:[#allocation32_spill] sm:$0xff] }
 0xdff   :  { %4741 = vmatpush1.msra.mxu1 %v4619_v34  ;;  %4653 = vmatprep.subr.mxu0 %v4614_v45  ;;  %v4595_v13 = vsub.f32 %v8706_v33, %v8705_v42  ;;  %v4612_v8 = vadd.f32 %v7947_v47, %v4596_v0  ;;  %v4609_v14 = vadd.f32 %v7886_v29, %v4593_v51  ;;  %v8707_v45 = vld [vmem:[#allocation8_spill] sm:$0xff]  ;;  %v8709_v0 = vld [vmem:[#allocation7_spill] sm:$0xff]  ;;  %v8711_v51 = vld [vmem:[#allocation9_spill] sm:$0xff] }
 0xe00   :  { %4742 = vmatprep.subr.mxu1 %v4616_v43  ;;  %4654 = vmatpush1.msra.mxu0 %v4613_v3  ;;  %v8715_v27 = vld [vmem:[#allocation12_spill] sm:$0xff] }
 0xe01   :  { %4743 = vmatpush1.msra.mxu1 %v4615_v58  ;;  %4655 = vmatprep.subr.mxu0 %v4610_v37  ;;  %v4611_v38 = vadd.f32 %v7953_v35, %v4595_v13  ;;  %v8710_v13 = vld [vmem:[#allocation10_spill] sm:$0xff] }
 0xe02   :  { %4744 = vmatprep.subr.mxu1 %v4612_v8  ;;  %4656 = vmatpush1.msra.mxu0 %v4609_v14 }
 0xe03   :  { %4745 = vmatpush1.msra.mxu1 %v4611_v38  ;;  %5233 = vmatmul.mubr.msk.f32.vlgmr.msra.gmra.mxu0 %vm479_vm2, %v8707_v45 }
 0xe04   :  { %5237 = vmatmul.mubr.msk.f32.vlgmr.msra.gmra.mxu1 %vm479_vm2, %v8707_v45  ;;  %4695 = vmatprep.mubr.f32.mxu0 %v8708_v10  ;;  %v8713_v45 = vld [vmem:[#allocation33_spill] sm:$0xff] }
 0xe05   :  { %4784 = vmatprep.mubr.f32.mxu1 %v8708_v10 }
 0xe07   :  { %5234 = vmatmul.mubr.msk.f32.gmra.mxu0 %vm479_vm2, %v8709_v0 }
 0xe08   :  { %5238 = vmatmul.mubr.msk.f32.gmra.mxu1 %vm479_vm2, %v8709_v0  ;;  %4701 = vmatprep.mubr.f32.mxu0 %v8708_v10 }
 0xe09   :  { %4790 = vmatprep.mubr.f32.mxu1 %v8708_v10 }
 0xe0b   :  { %5235 = vmatmul.mubr.msk.f32.gmra.mxu0 %vm479_vm2, %v8710_v13 }
 0xe0c   :  { %5239 = vmatmul.mubr.msk.f32.gmra.mxu1 %vm479_vm2, %v8710_v13  ;;  %4707 = vmatprep.mubr.f32.mxu0 %v8708_v10 }
 0xe0d   :  { %4796 = vmatprep.mubr.f32.mxu1 %v8708_v10 }
 0xe0f   :  { %5236 = vmatmul.mubr.msk.f32.gmra.mxu0 %vm479_vm2, %v8711_v51 }
 0xe10   :  { %5240 = vmatmul.mubr.msk.f32.gmra.mxu1 %vm479_vm2, %v8711_v51  ;;  %4979 = vmatprep.mubr.f32.mxu0 %v8708_v10  ;;  %v8714_v51 = vld [vmem:[#allocation5_spill] sm:$0xff] }
 0xe11   :  { %5050 = vmatprep.mubr.f32.mxu1 %v8708_v10 }
 0xec3   :  { %v4691_v6 = vpop.f32.mrf.mxu0 }
 0xec4   :  { %v4692_v34 = vadd.f32 %v4691_v6, %v8712_v24  ;;  %v4780_v43 = vpop.f32.mrf.mxu1 }
 0xec5   :  { %v4693_v3 = vpop.f32.mrf.mxu0 }
 0xec6   :  { %v4803_v58 = vmul.f32 0.25, %v4692_v34  ;;  %v4694_v37 = vadd.f32 %v4693_v3, %v8712_v24  ;;  %v4782_v8 = vpop.f32.mrf.mxu1  ;;  %v8716_v3 = vld [vmem:[#allocation30_spill] sm:$0xff] }
 0xec7   :  { %v4697_v14 = vpop.f32.mrf.mxu0 }
 0xec8   :  { %v4804_v38 = vmul.f32 0.25, %v4694_v37  ;;  %v4698_v0 = vadd.f32 %v4697_v14, %v8713_v45  ;;  %v4786_v13 = vpop.f32.mrf.mxu1  ;;  %v4819_v39 = vadd.f32 %v4803_v58, %v8714_v51  ;;  %v4781_v37 = vadd.f32 %v4780_v43, %v8712_v24  ;;  %v8717_v14 = vld [vmem:[#allocation6_spill] sm:$0xff] }
 0xec9   :  { %v4699_v33 = vpop.f32.mrf.mxu0 }
 0xeca   :  { %v4807_v30 = vmul.f32 0.25, %v4698_v0  ;;  %v4700_v10 = vadd.f32 %v4699_v33, %v8713_v45  ;;  %v4788_v17 = vpop.f32.mrf.mxu1  ;;  %v4820_v6 = vadd.f32 %v4804_v38, %v8715_v27  ;;  %5754 = vtanh.f32 %v4819_v39 }
 0xecb   :  { %v4703_v20 = vpop.f32.mrf.mxu0  ;;  %v4789_v34 = vadd.f32 %v4788_v17, %v8713_v45  ;;  %v4783_v17 = vadd.f32 %v4782_v8, %v8712_v24 }
 0xecc   :  { %v4808_v28 = vmul.f32 0.25, %v4700_v10  ;;  %v4704_v12 = vadd.f32 %v4703_v20, %v8716_v3  ;;  %v4792_v54 = vpop.f32.mrf.mxu1  ;;  %v4823_v57 = vadd.f32 %v4807_v30, %v8717_v14  ;;  %5756 = vtanh.f32 %v4820_v6  ;;  %v8718_v14 = vld [vmem:[#allocation31_spill] sm:$0xff] }
 0xecd   :  { %v4793_v41 = vadd.f32 %v4792_v54, %v8716_v3  ;;  %v4705_v58 = vpop.f32.mrf.mxu0  ;;  %v4787_v20 = vadd.f32 %v4786_v13, %v8713_v45  ;;  %v4810_v10 = vmul.f32 0.25, %v4789_v34 }
 0xece   :  { %v4824_v33 = vadd.f32 %v4808_v28, %v7597_v46  ;;  %v4811_v0 = vmul.f32 0.25, %v4704_v12  ;;  %v4706_v27 = vadd.f32 %v4705_v58, %v8716_v3  ;;  %v4794_v38 = vpop.f32.mrf.mxu1  ;;  %5758 = vtanh.f32 %v4823_v57 }
 0xecf   :  { %v4795_v51 = vadd.f32 %v4794_v38, %v8716_v3  ;;  %v4709_v43 = vpop.f32.mrf.mxu0  ;;  %v4813_v46 = vmul.f32 0.25, %v4793_v41  ;;  %v4809_v58 = vmul.f32 0.25, %v4787_v20 }
 0xed0   :  { %v4827_v30 = vadd.f32 %v4811_v0, %v7602_v63  ;;  %v4812_v54 = vmul.f32 0.25, %v4706_v27  ;;  %v4710_v39 = vadd.f32 %v4709_v43, %v8718_v14  ;;  %v4798_v21 = vpop.f32.mrf.mxu1  ;;  %5760 = vtanh.f32 %v4824_v33 }
 0xed1   :  { %v4814_v12 = vmul.f32 0.25, %v4795_v51  ;;  %v4799_v28 = vadd.f32 %v4798_v21, %v8718_v14  ;;  %v4711_v6 = vpop.f32.mrf.mxu0  ;;  %v4806_v21 = vmul.f32 0.25, %v4783_v17  ;;  %v4805_v0 = vmul.f32 0.25, %v4781_v37 }
 0xed2   :  { %v4828_v24 = vadd.f32 %v4812_v54, %v7606_v50  ;;  %v4815_v8 = vmul.f32 0.25, %v4710_v39  ;;  %v4712_v45 = vadd.f32 %v4711_v6, %v8718_v14  ;;  %v4800_v13 = vpop.f32.mrf.mxu1  ;;  %5762 = vtanh.f32 %v4827_v30 }
 0xed3   :  { %v4830_v63 = vadd.f32 %v4814_v12, %v7631_v59  ;;  %v4817_v34 = vmul.f32 0.25, %v4799_v28  ;;  %v4801_v3 = vadd.f32 %v4800_v13, %v8718_v14  ;;  %v4829_v27 = vadd.f32 %v4813_v46, %v7639_v40 }
 0xed4   :  { %5764 = vtanh.f32 %v4828_v24  ;;  %v4831_v57 = vadd.f32 %v4815_v8, %v7615_v32  ;;  %v4816_v41 = vmul.f32 0.25, %v4712_v45  ;;  %v4826_v59 = vadd.f32 %v4810_v10, %v7643_v23  ;;  %v8727_v8 = vld [vmem:[#allocation35_spill] sm:$0xff] }
 0xed5   :  { %5766 = vtanh.f32 %v4830_v63  ;;  %v4833_v33 = vadd.f32 %v4817_v34, %v7624_v53  ;;  %v4818_v50 = vmul.f32 0.25, %v4801_v3  ;;  %v4825_v51 = vadd.f32 %v4809_v58, %v7647_v11  ;;  %v8728_v63 = vld [vmem:[#allocation24_spill] sm:$0xff] }
 0xed6   :  { %5768 = vtanh.f32 %v4831_v57  ;;  %v4832_v38 = vadd.f32 %v4816_v41, %v7627_v60  ;;  %v4822_v32 = vadd.f32 %v4806_v21, %v7651_v9  ;;  %v4821_v53 = vadd.f32 %v4805_v0, %v7655_v61  ;;  %v8729_v57 = vld [vmem:[#allocation44_spill] sm:$0xff]  ;;  %v8731_v0 = vld [vmem:[#allocation55_spill] sm:$0xff] }
 0xed7   :  { %5770 = vtanh.f32 %v4833_v33  ;;  %v4834_v20 = vadd.f32 %v4818_v50, %v7635_v62  ;;  %v8022_v37 = vpop.eup %5754  ;;  %v4851_v60 = vadd.f32 %v7886_v29, %v7766_v19  ;;  %v4864_v62 = vadd.f32 %v7906_v25, %v7785_v56  ;;  %v8730_v33 = vld [vmem:[#allocation18_spill] sm:$0xff] }
 0xed8   :  { %5772 = vtanh.f32 %v4832_v38  ;;  %v4852_v23 = vadd.f32 %v7888_v22, %v7768_v1  ;;  %v4866_v11 = vadd.f32 %v7916_v15, %v7789_v26  ;;  %v4863_v9 = vadd.f32 %v7900_v48, %v7780_v31 }
 0xed9   :  { %5774 = vtanh.f32 %v4834_v20  ;;  %v8026_v40 = vpop.eup %5756  ;;  %v4853_v61 = vadd.f32 %v7953_v35, %v8705_v42  ;;  %v4865_v29 = vadd.f32 %v7902_v55, %v7782_v5  ;;  %v4860_v56 = vadd.f32 %v7896_v36, %v7776_v49  ;;  %v8719_v5 = vld [vmem:[#allocation19_spill] sm:$0xff]  ;;  %v8720_v55 = vld [vmem:[#allocation46_spill] sm:$0xff]  ;;  %v8721_v49 = vld [vmem:[#allocation28_spill] sm:$0xff] }
 0xeda   :  { %5776 = vtanh.f32 %v4829_v27  ;;  %v4855_v1 = vadd.f32 %v7890_v16, %v7770_v52  ;;  %v4862_v26 = vadd.f32 %v7898_v18, %v7778_v4  ;;  %v4859_v31 = vadd.f32 %v7894_v2, %v7774_v7  ;;  %v8722_v36 = vld [vmem:[#allocation53_spill] sm:$0xff]  ;;  %v8724_v18 = vld [vmem:[#allocation52_spill] sm:$0xff]  ;;  %v8725_v7 = vld [vmem:[#allocation11_spill] sm:$0xff] }
 0xedb   :  { %5778 = vtanh.f32 %v4826_v59  ;;  %v8038_v19 = vpop.eup %5758  ;;  %v4854_v48 = vadd.f32 %v7947_v47, %v8703_v44  ;;  %v4867_v25 = vmul.f32 3.0, %v4851_v60  ;;  %v4880_v35 = vmul.f32 3.0, %v4864_v62  ;;  %v8723_v4 = vld [vmem:[#allocation29_spill] sm:$0xff]  ;;  %v8726_v2 = vld [vmem:[#allocation48_spill] sm:$0xff]  ;;  %v8733_v60 = vld [vmem:[#allocation26_spill] sm:$0xff] }
 0xedc   :  { %5780 = vtanh.f32 %v4825_v51  ;;  %v4861_v42 = vadd.f32 %v8720_v55, %v8719_v5  ;;  %v4856_v17 = vadd.f32 %v8722_v36, %v8721_v49  ;;  %v4868_v52 = vmul.f32 3.0, %v4852_v23  ;;  %v8734_v23 = vld [vmem:[#allocation43_spill] sm:$0xff]  ;;  %v8737_v5 = vld [vmem:[#allocation22_spill] sm:$0xff] }
 0xedd   :  { %5782 = vtanh.f32 %v4822_v32  ;;  %v5761_v22 = vpop.eup %5760  ;;  %v4882_v43 = vmul.f32 3.0, %v4866_v11  ;;  %v4879_v10 = vmul.f32 3.0, %v4863_v9  ;;  %v4858_v30 = vadd.f32 %v8724_v18, %v8723_v4  ;;  %v8732_v32 = vld [vmem:[#allocation23_spill] sm:$0xff] }
 0xede   :  { %5784 = vtanh.f32 %v4821_v53  ;;  %v4857_v54 = vadd.f32 %v8726_v2, %v8725_v7  ;;  %v4881_v44 = vmul.f32 3.0, %v4865_v29  ;;  %v4876_v14 = vmul.f32 3.0, %v4860_v56  ;;  %v8735_v56 = vld [vmem:[#allocation17_spill] sm:$0xff]  ;;  %v8740_v7 = vld [vmem:[#allocation20_spill] sm:$0xff] }
 0xedf   :  { %v5763_v15 = vpop.eup %5762  ;;  %v4871_v39 = vmul.f32 3.0, %v4855_v1  ;;  %v4869_v46 = vmul.f32 3.0, %v4853_v61  ;;  %v4878_v28 = vmul.f32 3.0, %v4862_v26  ;;  %v4875_v6 = vmul.f32 3.0, %v4859_v31  ;;  %v8736_v26 = vld [vmem:[#allocation49_spill] sm:$0xff] }
 0xee0   :  { %v4870_v24 = vmul.f32 3.0, %v4854_v48  ;;  %v4883_v45 = vadd.f32 %v8727_v8, %v4867_v25  ;;  %v4896_v34 = vadd.f32 %v8728_v63, %v4880_v35  ;;  %v4877_v3 = vmul.f32 3.0, %v4861_v42  ;;  %v8738_v42 = vld [vmem:[#allocation21_spill] sm:$0xff]  ;;  %v8744_v63 = vld [vmem:[#allocation15_spill] sm:$0xff] }
 0xee1   :  { %v5765_v16 = vpop.eup %5764  ;;  %v4872_v58 = vmul.f32 3.0, %v4856_v17  ;;  %v4884_v41 = vadd.f32 %v8729_v57, %v4868_v52  ;;  %v4898_v50 = vadd.f32 %v8730_v33, %v4882_v43  ;;  %v4895_v27 = vadd.f32 %v8731_v0, %v4879_v10  ;;  %v8739_v43 = vld [vmem:[#allocation27_spill] sm:$0xff]  ;;  %v8746_v57 = vld [vmem:[#allocation42_spill] sm:$0xff] }
 0xee2   :  { %v5767_v47 = vpop.eup %5766  ;;  %v4874_v38 = vmul.f32 3.0, %v4858_v30  ;;  %v4873_v59 = vmul.f32 3.0, %v4857_v54  ;;  %v4897_v53 = vadd.f32 %v8732_v32, %v4881_v44  ;;  %v4892_v62 = vadd.f32 %v8733_v60, %v4876_v14  ;;  %v8741_v14 = vld [vmem:[#allocation16_spill] sm:$0xff] }
 0xee3   :  { %v5769_v12 = vpop.eup %5768  ;;  %v4887_v11 = vadd.f32 %v8734_v23, %v4871_v39  ;;  %v4894_v1 = vadd.f32 %v8735_v56, %v4878_v28  ;;  %v4891_v31 = vadd.f32 %v8736_v26, %v4875_v6  ;;  %v4893_v55 = vadd.f32 %v8737_v5, %v4877_v3 }
 0xee4   :  { %v5771_v13 = vpop.eup %5770  ;;  %v4911_v29 = vadd.f32 %v5769_v12, %v4895_v27  ;;  %v4908_v35 = vadd.f32 %v5765_v16, %v4892_v62  ;;  %v4888_v49 = vadd.f32 %v8738_v42, %v4872_v58  ;;  %v4890_v10 = vadd.f32 %v8739_v43, %v4874_v38  ;;  %v8742_v12 = vld [vmem:[#allocation25_spill] sm:$0xff] }
 0xee5   :  { %v5773_v21 = vpop.eup %5772  ;;  %v4913_v25 = vadd.f32 %v5771_v13, %v4897_v53  ;;  %v4910_v17 = vadd.f32 %v5767_v47, %v4894_v1  ;;  %v4907_v52 = vadd.f32 %v5763_v15, %v4891_v31  ;;  %v4889_v2 = vadd.f32 %v8740_v7, %v4873_v59  ;;  %v8743_v13 = vld [vmem:[#allocation50_spill] sm:$0xff]  ;;  %v8747_v27 = vld [vmem:[#allocation13_spill] sm:$0xff] }
 0xee6   :  { %v5775_v20 = vpop.eup %5774  ;;  %v4912_v51 = vadd.f32 %v5773_v21, %v4896_v34  ;;  %v4904_v30 = vadd.f32 %v5761_v22, %v4888_v49  ;;  %v4903_v44 = vadd.f32 %v8038_v19, %v4887_v11  ;;  %v4886_v39 = vadd.f32 %v8741_v14, %v4870_v24  ;;  %v5791_v19 = vld [vmem:[%s8104_s3] sm:$0xf]  ;;  %s5816_s3 = smov [#allocation2]  }
 0xee7   :  { %v5777_v9 = vpop.eup %5776  ;;  %v4914_v61 = vadd.f32 %v5775_v20, %v4898_v50  ;;  %v4900_v47 = vadd.f32 %v8026_v40, %v4884_v41  ;;  %v4885_v28 = vadd.f32 %v8742_v12, %v4869_v46  ;;  %v4899_v6 = vadd.f32 %v8022_v37, %v4883_v45  ;;  %v8745_v45 = vld [vmem:[#allocation34_spill] sm:$0xff]  ;;  %s5085_s28 = sshll.u32 %s5816_s3, 4  ;;  %s5086_s28 = int_to_ptr.vmem [resolvable:$true] %s5085_s28 }
 0xee8   :  { %v5779_v48 = vpop.eup %5778  ;;  %4939 = vmatprep.subr.mxu0 %v4912_v51  ;;  %v4909_v18 = vadd.f32 %v5777_v9, %v4893_v55  ;;  %v3863_v37 = vadd.f32 %v8744_v63, %v8743_v13  ;;  %v3865_v34 = vadd.f32 %v8745_v45, %v8743_v13  ;;  %v3864_v41 = vadd.f32 %v8746_v57, %v8743_v13  ;;  %s5792_s29 = scalar_lea.vmem %s5086_s28, 256  ;;  %p5797_p1 = scmp.lt.s32.totalorder %s5086_s28, %s5086_s28 }
 0xee9   :  { %v5781_v36 = vpop.eup %5780  ;;  %5010 = vmatprep.subr.mxu1 %v4914_v61  ;;  %4940 = vmatpush1.msra.mxu0 %v4911_v29  ;;  %v4906_v16 = vadd.f32 %v5779_v48, %v4890_v10  ;;  %v3866_v38 = vadd.f32 %v8747_v27, %v8743_v13  ;;  %p5793_p0 = scmp.ne.s32.totalorder %s5086_s28, %s5792_s29  ;;  %p5798_p2 = scmp.lt.s32.totalorder %s5792_s29, %s5792_s29 }
 0xeea   :  { %v5783_v4 = vpop.eup %5782  ;;  %5011 = vmatpush1.msra.mxu1 %v4913_v25  ;;  %4941 = vmatprep.subr.mxu0 %v4908_v35  ;;  %v4905_v15 = vadd.f32 %v5781_v36, %v4889_v2 }
 0xeeb   :  { %v5785_v54 = vpop.eup %5784  ;;  %5012 = vmatprep.subr.mxu1 %v4910_v17  ;;  %4942 = vmatpush1.msra.mxu0 %v4907_v52  ;;  %v4902_v22 = vadd.f32 %v5783_v4, %v4886_v39  ;;  %p5799_p3 = por %p5798_p2, %p5797_p1 }
 0xeec   :  { %5013 = vmatpush1.msra.mxu1 %v4909_v18  ;;  %4943 = vmatprep.subr.mxu0 %v4904_v30  ;;  %v4901_v8 = vadd.f32 %v5785_v54, %v4885_v28 }
 0xeed   :  { %5014 = vmatprep.subr.mxu1 %v4906_v16  ;;  %4944 = vmatpush1.msra.mxu0 %v4903_v44  ;;  %p5800_p4 = pnand %p5799_p3, %p5793_p0 }
 0xeee   :  { %5015 = vmatpush1.msra.mxu1 %v4905_v15  ;;  %4945 = vmatprep.subr.mxu0 %v4900_v47 }
 0xeef   :  { %5016 = vmatprep.subr.mxu1 %v4902_v22  ;;  %4946 = vmatpush1.msra.mxu0 %v4899_v6 }
 0xef0   :  { %5017 = vmatpush1.msra.mxu1 %v4901_v8  ;;  %5241 = vmatmul.mubr.msk.f32.vlgmr.msra.gmra.mxu0 %vm479_vm2, %v5791_v19 }
 0xef1   :  { %5242 = vmatmul.mubr.msk.f32.vlgmr.msra.gmra.mxu1 %vm479_vm2, %v5791_v19 }
 0xfb0   :  { %v4981_v40 = vpop.f32.mrf.mxu0 }
 0xfb1   :  { %v5057_v46 = vmul.f32 0.03125, %v4981_v40  ;;  %v5052_v24 = vpop.f32.mrf.mxu1 }
 0xfb2   :  { %v5059_v3 = vmul.f32 0.03125, %v5052_v24  ;;  %v4983_v58 = vpop.f32.mrf.mxu0 }
 0xfb3   :  { %v5058_v21 = vmul.f32 0.03125, %v4983_v58  ;;  %v5054_v33 = vpop.f32.mrf.mxu1  ;;  %v5061_v50 = vadd.f32 %v5057_v46, %v3863_v37 }
 0xfb4   :  { %v5063_v0 = vadd.f32 %v5059_v3, %v3865_v34  ;;  %v5060_v59 = vmul.f32 0.03125, %v5054_v33 }
 0xfb5   :  { %v5062_v51 = vadd.f32 %v5058_v21, %v3864_v41  ;;  %v5065_v53 = vadd.f32 %v5061_v50, %v8743_v13 }
 0xfb6   :  { %v5067_v20 = vadd.f32 %v5063_v0, %v8743_v13  ;;  %v5064_v32 = vadd.f32 %v5060_v59, %v3866_v38 }
 0xfb7   :  { %v5066_v23 = vadd.f32 %v5062_v51, %v8743_v13 }
 0xfb8   :  { %v5071_v60 = vrot.slane %v5067_v20, 4  ;;  %v5068_v62 = vadd.f32 %v5064_v32, %v8743_v13 }
 0xfba   :  { %v5072_v11 = vrot.slane %v5068_v62, 4  ;;  %v5075_v9 = vsel %vm49_vm0, %v5065_v53, %v5071_v60 }
 0xfbb   :  { %5077 = vst [vmem:[#allocation2] sm:$0xff] %v5075_v9 }
 0xfbc   :  { %v5076_v61 = vsel %vm49_vm0, %v5066_v23, %v5072_v11 }
 0xfbd   :  { %5078 = vst [vmem:[#allocation2 + $0x8] sm:$0xff] %v5076_v61 }
 0xfbe   :  { %5803 = shalt.err (!%p5800_p4)
}
 0xfbf   :  { %5088 = dma.vmem_to_hbm [thread:$0]  %s5086_s28, 256, %s8106_s5, [#allocation3]  }
 0xfc0   :  { %5812 = dma.done.wait [#allocation3], 256  }
 0xfc1   :  { %5813 = vsyncadd [#allocation3], 4294967040 }
 0xfc2   :  { %5092 = vsyncpa [#allocation3], 1 }

</bundles_post_ra>
